<compile_context>
chip_gen: v5e
topology: v5e:2x2
jax: 0.10.0
libtpu: 0.0.40
codegen_flags: <defaults>
</compile_context>

<pallas_src>
import functools

import jax
import jax.numpy as jnp
from jax.experimental import pallas as pl
from jax.experimental.pallas import tpu as pltpu

IN_FEATURES = 2048
HIDDEN = 512
NUM_CLASSES = 102
PADDED_CLASSES = 128          # lane-dense output width (multiple of 128)
NEG_PAD_BIAS = -1e30          # finite "minus infinity" for padded class lanes


def _round_up(x, m):
    return ((x + m - 1) // m) * m


def _parallel_core_count():
    """Number of TensorCores a 'parallel' grid axis shards across (2 on v7x)."""
    try:
        kind = jax.devices()[0].device_kind.lower()
    except Exception:
        return 1
    return 2 if "v7" in kind else 1


def classifier_kernel(x_ref, w1_ref, b1_ref, w2_ref, b2_ref, o_ref):
    # In-kernel cast: x streams at its native dtype (f32 or bf16); cast here so
    # the wrapper does not need a separate cast+pad round trip through HBM.
    xb = x_ref[...].astype(jnp.bfloat16)

    # fc1: bf16 x bf16 -> f32 accumulation on the MXU, then bias + ReLU.
    h = jnp.dot(xb, w1_ref[...], preferred_element_type=jnp.float32)
    h = jnp.maximum(h + b1_ref[...], 0.0)

    # Dropout(p=0.25): identity in eval/inference mode.
    # TODO(synk): training-mode dropout (PRNG mask + 1/(1-p) scaling) not emitted.

    # fc2 -- output padded to 128 lanes; padded columns have w=0, b=-1e30.
    logits = jnp.dot(h.astype(w2_ref.dtype), w2_ref[...],
                     preferred_element_type=jnp.float32) + b2_ref[...]

    # Numerically stable log_softmax over the last axis. Padded columns sit at
    # ~-1e30: exp underflows to exactly 0 and max() ignores them, so they add
    # no probability mass (no inf arithmetic involved).
    m = jnp.max(logits, axis=-1, keepdims=True)
    shifted = logits - m
    lse = jnp.log(jnp.sum(jnp.exp(shifted), axis=-1, keepdims=True))
    o_ref[...] = (shifted - lse).astype(o_ref.dtype)


def prepare_params(w1, b1, w2, b2):
    """Pack f32 params (already transposed to (in, out)) into kernel-ready
    arrays: bf16 weights, lane-padded fc2 (zero weights / -1e30 bias in pads)."""
    pad = PADDED_CLASSES - NUM_CLASSES
    w1p = w1.astype(jnp.bfloat16)                                    # (2048, 512)
    b1p = b1.reshape(1, HIDDEN).astype(jnp.float32)                  # (1, 512)
    w2p = jnp.pad(w2, ((0, 0), (0, pad))).astype(jnp.bfloat16)       # (512, 128)
    b2p = jnp.pad(b2.reshape(1, NUM_CLASSES), ((0, 0), (0, pad)),
                  constant_values=NEG_PAD_BIAS).astype(jnp.float32)  # (1, 128)
    return w1p, b1p, w2p, b2p


@functools.partial(jax.jit, static_argnames=("block_batch", "out_dtype"))
def classifier_forward(x, w1p, b1p, w2p, b2p, *, block_batch=1024,
                       out_dtype=jnp.float32):
    batch = x.shape[0]

    # Batch tile selection (all static, derived from shapes):
    #  * at least ceil(batch / block_batch) steps so a tile never exceeds
    #    ~block_batch rows (keeps the working set under the v7x 64 MiB/TC VMEM),
    #  * at least 2 steps on two-core chips (v7x) so the "parallel" grid axis
    #    actually uses both TensorCores,
    #  * tb = round_up(ceil(batch/steps), 8): remainder padding < 8 rows.
    min_steps = _parallel_core_count() if batch >= 16 else 1
    steps = max(min_steps, pl.cdiv(batch, block_batch))
    tb = _round_up(max(pl.cdiv(batch, steps), 8), 8)
    grid = (pl.cdiv(batch, tb),)
    rows_computed = grid[0] * tb   # includes (< 8 rows of) boundary padding

    flops = 2 * rows_computed * (IN_FEATURES * HIDDEN + HIDDEN * PADDED_CLASSES)
    transcendentals = rows_computed * (PADDED_CLASSES + 1)  # exp + log per row
    bytes_accessed = (
        rows_computed * IN_FEATURES * x.dtype.itemsize           # x stream (native dtype)
        + IN_FEATURES * HIDDEN * 2                                # w1 (bf16, resident)
        + HIDDEN * 4                                              # b1 (f32)
        + HIDDEN * PADDED_CLASSES * 2                             # w2 (bf16)
        + PADDED_CLASSES * 4                                      # b2 (f32)
        + rows_computed * PADDED_CLASSES * jnp.dtype(out_dtype).itemsize  # out
    )

    out = pl.pallas_call(
        classifier_kernel,
        out_shape=jax.ShapeDtypeStruct((batch, PADDED_CLASSES), out_dtype),
        grid=grid,
        in_specs=[
            pl.BlockSpec((tb, IN_FEATURES), lambda i: (i, 0)),          # x tile (streamed)
            pl.BlockSpec((IN_FEATURES, HIDDEN), lambda i: (0, 0)),      # w1 (VMEM-resident)
            pl.BlockSpec((1, HIDDEN), lambda i: (0, 0)),                # b1 (resident)
            pl.BlockSpec((HIDDEN, PADDED_CLASSES), lambda i: (0, 0)),   # w2 (resident)
            pl.BlockSpec((1, PADDED_CLASSES), lambda i: (0, 0)),        # b2 (resident)
        ],
        out_specs=pl.BlockSpec((tb, PADDED_CLASSES), lambda i: (i, 0)),
        compiler_params=pltpu.CompilerParams(
            dimension_semantics=("parallel",),
            vmem_limit_bytes=48 * 1024 * 1024,
        ),
        cost_estimate=pl.CostEstimate(
            flops=flops,
            transcendentals=transcendentals,
            bytes_accessed=bytes_accessed,
        ),
    )(x, w1p, b1p, w2p, b2p)

    # Strip the 26 padded class lanes (batch rows are exact: boundary blocks
    # use masked writeback, so no row padding ever reaches HBM).
    return out[:, :NUM_CLASSES]


def classifier_reference(x, w1p, b1p, w2p, b2p):
    """Pure-JAX reference using the same bf16 operands / f32 accumulation."""
    xb = x.astype(jnp.bfloat16)
    h = jnp.maximum(
        jnp.dot(xb, w1p, preferred_element_type=jnp.float32) + b1p, 0.0)
    logits = jnp.dot(h.astype(jnp.bfloat16), w2p[:, :NUM_CLASSES],
                     preferred_element_type=jnp.float32) + b2p[:, :NUM_CLASSES]
    return jax.nn.log_softmax(logits, axis=1)


def init_params(key):
    """Deterministic init mirroring PyTorch nn.Linear default:
    U(-1/sqrt(fan_in), 1/sqrt(fan_in)); weights stored as (in, out) == W.T."""
    k1, k2, k3, k4 = jax.random.split(key, 4)
    bound1 = 1.0 / float(jnp.sqrt(IN_FEATURES))
    bound2 = 1.0 / float(jnp.sqrt(HIDDEN))
    w1 = jax.random.uniform(k1, (IN_FEATURES, HIDDEN), jnp.float32, -bound1, bound1)
    b1 = jax.random.uniform(k2, (HIDDEN,), jnp.float32, -bound1, bound1)
    w2 = jax.random.uniform(k3, (HIDDEN, NUM_CLASSES), jnp.float32, -bound2, bound2)
    b2 = jax.random.uniform(k4, (NUM_CLASSES,), jnp.float32, -bound2, bound2)
    return w1, b1, w2, b2


if __name__ == "__main__":
    key = jax.random.PRNGKey(0)
    kx, kp = jax.random.split(key)

    w1, b1, w2, b2 = init_params(kp)
    w1p, b1p, w2p, b2p = prepare_params(w1, b1, w2, b2)

    # Exercise: (a) single-step grid, (b) multi-step pipelined grid,
    # (c) batch not a multiple of the 8-row sublane group (masked boundary block).
    for batch, block_batch in ((8, 1024), (24, 8), (5, 1024)):
        kx, sub = jax.random.split(kx)
        x = jax.random.normal(sub, (batch, IN_FEATURES), jnp.float32)

        out = jax.block_until_ready(
            classifier_forward(x, w1p, b1p, w2p, b2p, block_batch=block_batch))
        ref = classifier_reference(x, w1p, b1p, w2p, b2p)

        assert out.shape == (batch, NUM_CLASSES)
        assert bool(jnp.all(jnp.isfinite(out)))
        max_err = float(jnp.max(jnp.abs(out - ref)))
        assert jnp.allclose(out, ref, atol=2e-3, rtol=2e-3), max_err

    print("KERNEL_OK")
</pallas_src>

<mosaic_0001>
module attributes {stable_mosaic.version = 11 : i64} {
  func.func @classifier_kernel(%arg0: i32, %arg1: memref<8x2048xf32, #tpu.memory_space<vmem>>, %arg2: memref<2048x512xbf16, #tpu.memory_space<vmem>>, %arg3: memref<1x512xf32, #tpu.memory_space<vmem>>, %arg4: memref<512x128xbf16, #tpu.memory_space<vmem>>, %arg5: memref<1x128xf32, #tpu.memory_space<vmem>>, %arg6: memref<8x128xf32, #tpu.memory_space<vmem>>) attributes {dimension_semantics = [#tpu.dimension_semantics<parallel>], iteration_bounds = array<i64: 1>, scalar_prefetch = 0 : i64, scratch_operands = 0 : i64, tpu.core_type = #tpu.core_type<tc>, window_params = [{transform_indices = @transform_0, window_bounds = array<i64: 8, 2048>}, {pipeline_mode = #tpu.pipeline_mode<synchronous>, transform_indices = @transform_1, window_bounds = array<i64: 2048, 512>}, {pipeline_mode = #tpu.pipeline_mode<synchronous>, transform_indices = @transform_2, window_bounds = array<i64: 1, 512>}, {pipeline_mode = #tpu.pipeline_mode<synchronous>, transform_indices = @transform_3, window_bounds = array<i64: 512, 128>}, {pipeline_mode = #tpu.pipeline_mode<synchronous>, transform_indices = @transform_4, window_bounds = array<i64: 1, 128>}, {transform_indices = @transform_5, window_bounds = array<i64: 8, 128>}]} {
    %c0 = arith.constant 0 : index
    %c0_0 = arith.constant 0 : index
    %0 = vector.load %arg1[%c0, %c0_0] : memref<8x2048xf32, #tpu.memory_space<vmem>>, vector<8x2048xf32>
    %1 = arith.truncf %0 : vector<8x2048xf32> to vector<8x2048xbf16>
    %c0_1 = arith.constant 0 : index
    %c0_2 = arith.constant 0 : index
    %2 = vector.load %arg2[%c0_1, %c0_2] : memref<2048x512xbf16, #tpu.memory_space<vmem>>, vector<2048x512xbf16>
    %cst = arith.constant dense<0.000000e+00> : vector<8x512xf32>
    %3 = tpu.matmul %1, %2, %cst {dimension_numbers = #tpu.dot_dimension_numbers<[1], [0], [0], [1], [0, 0, 1, 1], [], []>} : vector<8x2048xbf16>, vector<2048x512xbf16>, vector<8x512xf32> -> vector<8x512xf32>
    %c0_3 = arith.constant 0 : index
    %c0_4 = arith.constant 0 : index
    %4 = vector.load %arg3[%c0_3, %c0_4] : memref<1x512xf32, #tpu.memory_space<vmem>>, vector<1x512xf32>
    %5 = vector.broadcast %4 : vector<1x512xf32> to vector<8x512xf32>
    %6 = arith.addf %3, %5 : vector<8x512xf32>
    %cst_5 = arith.constant 0.000000e+00 : f32
    %7 = vector.broadcast %cst_5 : f32 to vector<8x512xf32>
    %8 = arith.maximumf %6, %7 : vector<8x512xf32>
    %9 = arith.truncf %8 : vector<8x512xf32> to vector<8x512xbf16>
    %c0_6 = arith.constant 0 : index
    %c0_7 = arith.constant 0 : index
    %10 = vector.load %arg4[%c0_6, %c0_7] : memref<512x128xbf16, #tpu.memory_space<vmem>>, vector<512x128xbf16>
    %cst_8 = arith.constant dense<0.000000e+00> : vector<8x128xf32>
    %11 = tpu.matmul %9, %10, %cst_8 {dimension_numbers = #tpu.dot_dimension_numbers<[1], [0], [0], [1], [0, 0, 1, 1], [], []>} : vector<8x512xbf16>, vector<512x128xbf16>, vector<8x128xf32> -> vector<8x128xf32>
    %c0_9 = arith.constant 0 : index
    %c0_10 = arith.constant 0 : index
    %12 = vector.load %arg5[%c0_9, %c0_10] : memref<1x128xf32, #tpu.memory_space<vmem>>, vector<1x128xf32>
    %13 = vector.broadcast %12 : vector<1x128xf32> to vector<8x128xf32>
    %14 = arith.addf %11, %13 : vector<8x128xf32>
    %cst_11 = arith.constant dense<0xFF800000> : vector<8xf32>
    %15 = vector.multi_reduction <maximumf>, %14, %cst_11 [1] : vector<8x128xf32> to vector<8xf32>
    %16 = vector.shape_cast %15 : vector<8xf32> to vector<8x1xf32>
    %17 = vector.broadcast %16 : vector<8x1xf32> to vector<8x128xf32>
    %18 = arith.subf %14, %17 : vector<8x128xf32>
    %19 = math.exp %18 : vector<8x128xf32>
    %cst_12 = arith.constant dense<0.000000e+00> : vector<8xf32>
    %20 = vector.multi_reduction <add>, %19, %cst_12 [1] : vector<8x128xf32> to vector<8xf32>
    %21 = vector.shape_cast %20 : vector<8xf32> to vector<8x1xf32>
    %22 = math.log %21 : vector<8x1xf32>
    %23 = vector.broadcast %22 : vector<8x1xf32> to vector<8x128xf32>
    %24 = arith.subf %18, %23 : vector<8x128xf32>
    %c0_13 = arith.constant 0 : index
    %c0_14 = arith.constant 0 : index
    %25 = vector.load %arg6[%c0_13, %c0_14] : memref<8x128xf32, #tpu.memory_space<vmem>>, vector<8x128xf32>
    tpu.vector_store %arg6[%c0_13, %c0_14], %24 {strides = array<i32>} : memref<8x128xf32, #tpu.memory_space<vmem>>, vector<8x128xf32>,
    return
  }
  func.func @transform_0(%arg0: i32) -> (i32, i32) {
    %c0_i32 = arith.constant 0 : i32
    %c0_i32_0 = arith.constant 0 : i32
    return %arg0, %c0_i32 : i32, i32
  }
  func.func @transform_1(%arg0: i32) -> (i32, i32) {
    %c0_i32 = arith.constant 0 : i32
    %c0_i32_0 = arith.constant 0 : i32
    %c0_i32_1 = arith.constant 0 : i32
    return %c0_i32, %c0_i32_0 : i32, i32
  }
  func.func @transform_2(%arg0: i32) -> (i32, i32) {
    %c0_i32 = arith.constant 0 : i32
    %c0_i32_0 = arith.constant 0 : i32
    %c0_i32_1 = arith.constant 0 : i32
    return %c0_i32, %c0_i32_0 : i32, i32
  }
  func.func @transform_3(%arg0: i32) -> (i32, i32) {
    %c0_i32 = arith.constant 0 : i32
    %c0_i32_0 = arith.constant 0 : i32
    %c0_i32_1 = arith.constant 0 : i32
    return %c0_i32, %c0_i32_0 : i32, i32
  }
  func.func @transform_4(%arg0: i32) -> (i32, i32) {
    %c0_i32 = arith.constant 0 : i32
    %c0_i32_0 = arith.constant 0 : i32
    %c0_i32_1 = arith.constant 0 : i32
    return %c0_i32, %c0_i32_0 : i32, i32
  }
  func.func @transform_5(%arg0: i32) -> (i32, i32) {
    %c0_i32 = arith.constant 0 : i32
    %c0_i32_0 = arith.constant 0 : i32
    return %arg0, %c0_i32 : i32, i32
  }
}

</mosaic_0001>

<bundles_post_ra>
// kernel: classifier_forward.1
= control target key start
LH: loop header
LB: loop body
LE: loop exit
PB: predicated region body
PF: predicated region fallthrough
CT: control target
= control target key end

     0   :  { %10 = vsyncpa [#allocation3], 0  ;;  %s7487_s0 = inlined_call_operand.hbm [shape: f32[8,2048], index: 0, kind: input, shape index: {}]   ;;  %s7488_s1 = inlined_call_operand.hbm [shape: bf16[2048,512], index: 1, kind: input, shape index: {}]   ;;  %s7489_s2 = inlined_call_operand.hbm [shape: f32[1,512], index: 2, kind: input, shape index: {}]   ;;  %s7490_s3 = inlined_call_operand.hbm [shape: bf16[512,128], index: 3, kind: input, shape index: {}]   ;;  %s7491_s4 = inlined_call_operand.hbm [shape: f32[1,128], index: 4, kind: input, shape index: {}]   ;;  %s7492_s5 = inlined_call_operand.hbm [shape: f32[8,128], index: 5, kind: output, shape index: {}]  }
   0x1   :  { %11 = vsyncpa [#allocation6], 0 }
   0x2   :  { %12 = vsyncpa [#allocation9], 0  ;;  %s29_s20 = sshll.u32 %s7488_s1, 4  ;;  %s30_s20 = int_to_ptr.hbm [resolvable:$true] %s29_s20 }
   0x3   :  { %13 = vsyncpa [#allocation4], 0  ;;  %s7278_s21 = smov [#allocation5]   ;;  %s53_s25 = sshll.u32 %s7490_s3, 4  ;;  %s54_s25 = int_to_ptr.hbm [resolvable:$true] %s53_s25 }
   0x4   :  { %s31_s22 = sshll.u32 %s7278_s21, 4  ;;  %s7279_s26 = smov 256   ;;  %s32_s22 = int_to_ptr.vmem [resolvable:$true] %s31_s22 }
   0x5   :  { %s7280_s27 = smov 16   ;;  %s7281_s28 = smov [#allocation8]  }
   0x6   :  { %37 = dma.hbm_to_vmem [thread:$0]  %s30_s20, 65536, %s32_s22, [#allocation6], %s7279_s26, %s7279_s26, %s7280_s27  }
   0x7   :  { %s55_s29 = sshll.u32 %s7281_s28, 4  ;;  %s7282_s30 = smov 64   ;;  %s56_s29 = int_to_ptr.vmem [resolvable:$true] %s55_s29 }
   0x8   :  { %s7283_s6 = smov 4   ;;  %s19_s8 = sshll.u32 %s7487_s0, 4  ;;  %s20_s8 = int_to_ptr.hbm [resolvable:$true] %s19_s8 }
   0x9   :  { %61 = dma.hbm_to_vmem [thread:$0]  %s54_s25, 4096, %s56_s29, [#allocation9], %s7282_s30, %s7282_s30, %s7283_s6  }
   0xa   :  { %s7284_s9 = smov [#allocation2]   ;;  %s43_s12 = sshll.u32 %s7489_s2, 4  ;;  %s44_s12 = int_to_ptr.hbm [resolvable:$true] %s43_s12 }
   0xb   :  { %s21_s10 = sshll.u32 %s7284_s9, 4  ;;  %s7285_s13 = smov [#allocation7]   ;;  %s22_s10 = int_to_ptr.vmem [resolvable:$true] %s21_s10 }
   0xc   :  { %24 = dma.hbm_to_vmem [thread:$0]  %s20_s8, 2048, %s22_s10, [#allocation3]  }
   0xd   :  { %s45_s14 = sshll.u32 %s7285_s13, 4  ;;  %s67_s17 = sshll.u32 %s7491_s4, 4  ;;  %s46_s14 = int_to_ptr.vmem [resolvable:$true] %s45_s14  ;;  %s68_s17 = int_to_ptr.hbm [resolvable:$true] %s67_s17 }
   0xe   :  { %48 = dma.hbm_to_vmem [thread:$0]  %s44_s12, 64, %s46_s14, [#allocation6]  }
   0xf   :  { %s7286_s0 = smov [#allocation10]  }
  0x10   :  { %s69_s18 = sshll.u32 %s7286_s0, 4  ;;  %s70_s18 = int_to_ptr.vmem [resolvable:$true] %s69_s18 }
  0x11   :  { %72 = dma.hbm_to_vmem [thread:$0]  %s68_s17, 16, %s70_s18, [#allocation9]  }
  0x12   :  { %7270 = dma.done.wait [#allocation3], 2048  }
  0x13   :  { %7271 = vsyncadd [#allocation3], 4294965248 }
  0x14   :  { %7272 = dma.done.wait [#allocation6], 65600  }
  0x15   :  { %7273 = vsyncadd [#allocation6], 4294901696 }
  0x16   :  { %7274 = dma.done.wait [#allocation9], 4112  }
  0x17   :  { %7275 = vsyncadd [#allocation9], 4294963184  ;;  %v4503_v0 = vld [vmem:[#allocation5 + $0xe0] sm:$0xf]  ;;  %v6595_v1 = vld [vmem:[#allocation5 + $0xec] sm:$0xf0] }
  0x18   :  { %v4631_v2 = vld [vmem:[#allocation5 + $0x1e0] sm:$0xf]  ;;  %v4504_v3 = vor.u32 %v6595_v1, %v4503_v0  ;;  %v6627_v4 = vld [vmem:[#allocation5 + $0x1ec] sm:$0xf0]  ;;  %s7287_s2 = smov [#allocation11]   ;;  %s4377_s21 = sshll.u32 %s7492_s5, 4  ;;  %s4378_s21 = int_to_ptr.hbm [resolvable:$true] %s4377_s21 }
  0x19   :  { %v4759_v5 = vld [vmem:[#allocation5 + $0x2e0] sm:$0xf]  ;;  %v6659_v6 = vld [vmem:[#allocation5 + $0x2ec] sm:$0xf0]  ;;  %v4632_v7 = vor.u32 %v6627_v4, %v4631_v2  ;;  %s4375_s4 = sshll.u32 %s7287_s2, 4  ;;  %s4376_s4 = int_to_ptr.vmem [resolvable:$true] %s4375_s4 }
  0x1a   :  { %v4760_v8 = vor.u32 %v6659_v6, %v4759_v5  ;;  %v4887_v9 = vld [vmem:[#allocation5 + $0x3e0] sm:$0xf]  ;;  %v6691_v10 = vld [vmem:[#allocation5 + $0x3ec] sm:$0xf0]  ;;  %3207 = vmatpush.bf16.msra.mxu0 %v4504_v3 }
  0x1b   :  { %v4487_v11 = vld [vmem:[#allocation5 + $0xc0] sm:$0xf]  ;;  %v4888_v12 = vor.u32 %v6691_v10, %v4887_v9  ;;  %v6591_v13 = vld [vmem:[#allocation5 + $0xcc] sm:$0xf0]  ;;  %3220 = vmatpush.bf16.msra.mxu1 %v4632_v7 }
  0x1c   :  { %v4615_v14 = vld [vmem:[#allocation5 + $0x1c0] sm:$0xf]  ;;  %v6623_v15 = vld [vmem:[#allocation5 + $0x1cc] sm:$0xf0]  ;;  %3233 = vmatpush.bf16.msra.mxu2 %v4760_v8  ;;  %v4488_v16 = vor.u32 %v6591_v13, %v4487_v11 }
  0x1d   :  { %v4616_v17 = vor.u32 %v6623_v15, %v4615_v14  ;;  %v4743_v18 = vld [vmem:[#allocation5 + $0x2c0] sm:$0xf]  ;;  %v6655_v19 = vld [vmem:[#allocation5 + $0x2cc] sm:$0xf0]  ;;  %3246 = vmatpush.bf16.msra.mxu3 %v4888_v12 }
  0x1e   :  { %v4871_v20 = vld [vmem:[#allocation5 + $0x3c0] sm:$0xf]  ;;  %v4744_v21 = vor.u32 %v6655_v19, %v4743_v18  ;;  %v6687_v22 = vld [vmem:[#allocation5 + $0x3cc] sm:$0xf0]  ;;  %3208 = vmatpush.bf16.msra.mxu0 %v4488_v16 }
  0x1f   :  { %v4471_v23 = vld [vmem:[#allocation5 + $0xa0] sm:$0xf]  ;;  %v6587_v24 = vld [vmem:[#allocation5 + $0xac] sm:$0xf0]  ;;  %v4872_v25 = vor.u32 %v6687_v22, %v4871_v20  ;;  %3221 = vmatpush.bf16.msra.mxu1 %v4616_v17 }
  0x20   :  { %v4599_v26 = vld [vmem:[#allocation5 + $0x1a0] sm:$0xf]  ;;  %v6619_v27 = vld [vmem:[#allocation5 + $0x1ac] sm:$0xf0]  ;;  %v4472_v29 = vor.u32 %v6587_v24, %v4471_v23  ;;  %3234 = vmatpush.bf16.msra.mxu2 %v4744_v21 }
  0x21   :  { %v4727_v28 = vld [vmem:[#allocation5 + $0x2a0] sm:$0xf]  ;;  %v6651_v30 = vld [vmem:[#allocation5 + $0x2ac] sm:$0xf0]  ;;  %v4600_v33 = vor.u32 %v6619_v27, %v4599_v26  ;;  %3247 = vmatpush.bf16.msra.mxu3 %v4872_v25 }
  0x22   :  { %v4855_v31 = vld [vmem:[#allocation5 + $0x3a0] sm:$0xf]  ;;  %v6683_v32 = vld [vmem:[#allocation5 + $0x3ac] sm:$0xf0]  ;;  %v4728_v34 = vor.u32 %v6651_v30, %v4727_v28  ;;  %3209 = vmatpush.bf16.msra.mxu0 %v4472_v29 }
  0x23   :  { %v4455_v35 = vld [vmem:[#allocation5 + $0x80] sm:$0xf]  ;;  %v6583_v36 = vld [vmem:[#allocation5 + $0x8c] sm:$0xf0]  ;;  %v4856_v38 = vor.u32 %v6683_v32, %v4855_v31  ;;  %3222 = vmatpush.bf16.msra.mxu1 %v4600_v33 }
  0x24   :  { %v4583_v37 = vld [vmem:[#allocation5 + $0x180] sm:$0xf]  ;;  %v6615_v39 = vld [vmem:[#allocation5 + $0x18c] sm:$0xf0]  ;;  %v4456_v44 = vor.u32 %v6583_v36, %v4455_v35  ;;  %3235 = vmatpush.bf16.msra.mxu2 %v4728_v34 }
  0x25   :  { %v4711_v40 = vld [vmem:[#allocation5 + $0x280] sm:$0xf]  ;;  %v6647_v41 = vld [vmem:[#allocation5 + $0x28c] sm:$0xf0]  ;;  %v4584_v45 = vor.u32 %v6615_v39, %v4583_v37  ;;  %3248 = vmatpush.bf16.msra.mxu3 %v4856_v38 }
  0x26   :  { %v4839_v42 = vld [vmem:[#allocation5 + $0x380] sm:$0xf]  ;;  %v6679_v43 = vld [vmem:[#allocation5 + $0x38c] sm:$0xf0]  ;;  %v4712_v46 = vor.u32 %v6647_v41, %v4711_v40  ;;  %3210 = vmatpush.bf16.msra.mxu0 %v4456_v44 }
  0x27   :  { %v4439_v47 = vld [vmem:[#allocation5 + $0x60] sm:$0xf]  ;;  %v6579_v48 = vld [vmem:[#allocation5 + $0x6c] sm:$0xf0]  ;;  %v4840_v50 = vor.u32 %v6679_v43, %v4839_v42  ;;  %3223 = vmatpush.bf16.msra.mxu1 %v4584_v45 }
  0x28   :  { %v4567_v49 = vld [vmem:[#allocation5 + $0x160] sm:$0xf]  ;;  %v6611_v51 = vld [vmem:[#allocation5 + $0x16c] sm:$0xf0]  ;;  %v4440_v56 = vor.u32 %v6579_v48, %v4439_v47  ;;  %3236 = vmatpush.bf16.msra.mxu2 %v4712_v46 }
  0x29   :  { %v4695_v52 = vld [vmem:[#allocation5 + $0x260] sm:$0xf]  ;;  %v6643_v53 = vld [vmem:[#allocation5 + $0x26c] sm:$0xf0]  ;;  %v4568_v57 = vor.u32 %v6611_v51, %v4567_v49  ;;  %3249 = vmatpush.bf16.msra.mxu3 %v4840_v50 }
  0x2a   :  { %v4823_v54 = vld [vmem:[#allocation5 + $0x360] sm:$0xf]  ;;  %v6675_v55 = vld [vmem:[#allocation5 + $0x36c] sm:$0xf0]  ;;  %v4696_v58 = vor.u32 %v6643_v53, %v4695_v52  ;;  %3211 = vmatpush.bf16.msra.mxu0 %v4440_v56 }
  0x2b   :  { %v4423_v59 = vld [vmem:[#allocation5 + $0x40] sm:$0xf]  ;;  %v6575_v60 = vld [vmem:[#allocation5 + $0x4c] sm:$0xf0]  ;;  %v4824_v62 = vor.u32 %v6675_v55, %v4823_v54  ;;  %3224 = vmatpush.bf16.msra.mxu1 %v4568_v57 }
  0x2c   :  { %v4551_v61 = vld [vmem:[#allocation5 + $0x140] sm:$0xf]  ;;  %v6607_v63 = vld [vmem:[#allocation5 + $0x14c] sm:$0xf0]  ;;  %v4424_v4 = vor.u32 %v6575_v60, %v4423_v59  ;;  %3237 = vmatpush.bf16.msra.mxu2 %v4696_v58 }
  0x2d   :  { %v4679_v0 = vld [vmem:[#allocation5 + $0x240] sm:$0xf]  ;;  %v6639_v1 = vld [vmem:[#allocation5 + $0x24c] sm:$0xf0]  ;;  %v4552_v5 = vor.u32 %v6607_v63, %v4551_v61  ;;  %3250 = vmatpush.bf16.msra.mxu3 %v4824_v62 }
  0x2e   :  { %v4807_v2 = vld [vmem:[#allocation5 + $0x340] sm:$0xf]  ;;  %v6671_v3 = vld [vmem:[#allocation5 + $0x34c] sm:$0xf0]  ;;  %v4680_v6 = vor.u32 %v6639_v1, %v4679_v0  ;;  %3212 = vmatpush.bf16.msra.mxu0 %v4424_v4 }
  0x2f   :  { %v4407_v7 = vld [vmem:[#allocation5 + $0x20] sm:$0xf]  ;;  %v6571_v8 = vld [vmem:[#allocation5 + $0x2c] sm:$0xf0]  ;;  %v4808_v10 = vor.u32 %v6671_v3, %v4807_v2  ;;  %3225 = vmatpush.bf16.msra.mxu1 %v4552_v5 }
  0x30   :  { %v4535_v9 = vld [vmem:[#allocation5 + $0x120] sm:$0xf]  ;;  %v6603_v11 = vld [vmem:[#allocation5 + $0x12c] sm:$0xf0]  ;;  %v4408_v16 = vor.u32 %v6571_v8, %v4407_v7  ;;  %3238 = vmatpush.bf16.msra.mxu2 %v4680_v6 }
  0x31   :  { %v4663_v12 = vld [vmem:[#allocation5 + $0x220] sm:$0xf]  ;;  %v6635_v13 = vld [vmem:[#allocation5 + $0x22c] sm:$0xf0]  ;;  %v4536_v19 = vor.u32 %v6603_v11, %v4535_v9  ;;  %3251 = vmatpush.bf16.msra.mxu3 %v4808_v10  ;;  %v96_v10 = vld [vmem:[#allocation2 + $0x18] sm:$0xff] }
  0x32   :  { %v4791_v14 = vld [vmem:[#allocation5 + $0x320] sm:$0xf]  ;;  %v6667_v15 = vld [vmem:[#allocation5 + $0x32c] sm:$0xf0]  ;;  %v4664_v20 = vor.u32 %v6635_v13, %v4663_v12  ;;  %3213 = vmatpush.bf16.msra.mxu0 %v4408_v16 }
  0x33   :  { %v4391_v17 = vld [vmem:[#allocation5] sm:$0xf]  ;;  %v6567_v18 = vld [vmem:[#allocation5 + $0xc] sm:$0xf0]  ;;  %v4792_v24 = vor.u32 %v6667_v15, %v4791_v14  ;;  %3226 = vmatpush.bf16.msra.mxu1 %v4536_v19  ;;  %v7337_v15 = vpack.c.bf16 %v96_v10, %v96_v10  ;;  %v94_v19 = vld [vmem:[#allocation2 + $0x8] sm:$0xff] }
  0x34   :  { %v4519_v21 = vld [vmem:[#allocation5 + $0x100] sm:$0xf]  ;;  %v6599_v22 = vld [vmem:[#allocation5 + $0x10c] sm:$0xf0]  ;;  %v4392_v31 = vor.u32 %v6567_v18, %v4391_v17  ;;  %3239 = vmatpush.bf16.msra.mxu2 %v4664_v20 }
  0x35   :  { %v4647_v23 = vld [vmem:[#allocation5 + $0x200] sm:$0xf]  ;;  %v6631_v25 = vld [vmem:[#allocation5 + $0x20c] sm:$0xf0]  ;;  %v4520_v35 = vor.u32 %v6599_v22, %v4519_v21  ;;  %3252 = vmatpush.bf16.msra.mxu3 %v4792_v24 }
  0x36   :  { %v4775_v26 = vld [vmem:[#allocation5 + $0x300] sm:$0xf]  ;;  %v6663_v27 = vld [vmem:[#allocation5 + $0x30c] sm:$0xf0]  ;;  %v4648_v36 = vor.u32 %v6631_v25, %v4647_v23  ;;  %3214 = vmatpush.bf16.msra.mxu0 %v4392_v31  ;;  %v7342_v25 = vpack.c.bf16 %v94_v19, %v94_v19 }
  0x37   :  { %v5015_v28 = vld [vmem:[#allocation5 + $0x4e0] sm:$0xf]  ;;  %v6723_v29 = vld [vmem:[#allocation5 + $0x4ec] sm:$0xf0]  ;;  %v4776_v39 = vor.u32 %v6663_v27, %v4775_v26  ;;  %3227 = vmatpush.bf16.msra.mxu1 %v4520_v35 }
  0x38   :  { %v5143_v30 = vld [vmem:[#allocation5 + $0x5e0] sm:$0xf]  ;;  %v6755_v32 = vld [vmem:[#allocation5 + $0x5ec] sm:$0xf0]  ;;  %v5016_v40 = vor.u32 %v6723_v29, %v5015_v28  ;;  %3240 = vmatpush.bf16.msra.mxu2 %v4648_v36 }
  0x39   :  { %v5271_v33 = vld [vmem:[#allocation5 + $0x6e0] sm:$0xf]  ;;  %v6787_v34 = vld [vmem:[#allocation5 + $0x6ec] sm:$0xf0]  ;;  %v5144_v41 = vor.u32 %v6755_v32, %v5143_v30  ;;  %3253 = vmatpush.bf16.msra.mxu3 %v4776_v39 }
  0x3a   :  { %v5399_v37 = vld [vmem:[#allocation5 + $0x7e0] sm:$0xf]  ;;  %v6819_v38 = vld [vmem:[#allocation5 + $0x7ec] sm:$0xf0]  ;;  %v5272_v42 = vor.u32 %v6787_v34, %v5271_v33  ;;  %3259 = vmatpush.bf16.msrb.mxu0 %v5016_v40  ;;  %3228 = vmatmul.bf16.vlgmr.msra.gmra.mxu1 %v7342_v25 }
  0x3b   :  { %v4999_v43 = vld [vmem:[#allocation5 + $0x4c0] sm:$0xf]  ;;  %v6719_v44 = vld [vmem:[#allocation5 + $0x4cc] sm:$0xf0]  ;;  %v5400_v46 = vor.u32 %v6819_v38, %v5399_v37  ;;  %3272 = vmatpush.bf16.msrb.mxu1 %v5144_v41 }
  0x3c   :  { %v5127_v45 = vld [vmem:[#allocation5 + $0x5c0] sm:$0xf]  ;;  %v6751_v47 = vld [vmem:[#allocation5 + $0x5cc] sm:$0xf0]  ;;  %v5000_v52 = vor.u32 %v6719_v44, %v4999_v43  ;;  %3285 = vmatpush.bf16.msrb.mxu2 %v5272_v42  ;;  %3254 = vmatmul.bf16.vlgmr.msra.gmra.mxu3 %v7337_v15 }
  0x3d   :  { %v5255_v48 = vld [vmem:[#allocation5 + $0x6c0] sm:$0xf]  ;;  %v6783_v49 = vld [vmem:[#allocation5 + $0x6cc] sm:$0xf0]  ;;  %v5128_v54 = vor.u32 %v6751_v47, %v5127_v45  ;;  %3298 = vmatpush.bf16.msrb.mxu3 %v5400_v46 }
  0x3e   :  { %v5383_v50 = vld [vmem:[#allocation5 + $0x7c0] sm:$0xf]  ;;  %v6815_v51 = vld [vmem:[#allocation5 + $0x7cc] sm:$0xf0]  ;;  %v5256_v55 = vor.u32 %v6783_v49, %v5255_v48  ;;  %3260 = vmatpush.bf16.msrb.mxu0 %v5000_v52 }
  0x3f   :  { %v4983_v53 = vld [vmem:[#allocation5 + $0x4a0] sm:$0xf]  ;;  %v6715_v56 = vld [vmem:[#allocation5 + $0x4ac] sm:$0xf0]  ;;  %v5384_v59 = vor.u32 %v6815_v51, %v5383_v50  ;;  %3273 = vmatpush.bf16.msrb.mxu1 %v5128_v54 }
  0x40   :  { %v5111_v57 = vld [vmem:[#allocation5 + $0x5a0] sm:$0xf]  ;;  %v6747_v58 = vld [vmem:[#allocation5 + $0x5ac] sm:$0xf0]  ;;  %v4984_v0 = vor.u32 %v6715_v56, %v4983_v53  ;;  %3286 = vmatpush.bf16.msrb.mxu2 %v5256_v55 }
  0x41   :  { %v5239_v60 = vld [vmem:[#allocation5 + $0x6a0] sm:$0xf]  ;;  %v6779_v61 = vld [vmem:[#allocation5 + $0x6ac] sm:$0xf0]  ;;  %v5112_v1 = vor.u32 %v6747_v58, %v5111_v57  ;;  %3299 = vmatpush.bf16.msrb.mxu3 %v5384_v59 }
  0x42   :  { %v5367_v62 = vld [vmem:[#allocation5 + $0x7a0] sm:$0xf]  ;;  %v6811_v63 = vld [vmem:[#allocation5 + $0x7ac] sm:$0xf0]  ;;  %v5240_v5 = vor.u32 %v6779_v61, %v5239_v60  ;;  %3261 = vmatpush.bf16.msrb.mxu0 %v4984_v0 }
  0x43   :  { %v4967_v2 = vld [vmem:[#allocation5 + $0x480] sm:$0xf]  ;;  %v95_v3 = vld [vmem:[#allocation2 + $0x10] sm:$0xff]  ;;  %v5368_v11 = vor.u32 %v6811_v63, %v5367_v62  ;;  %3274 = vmatpush.bf16.msrb.mxu1 %v5112_v1 }
  0x44   :  { %v93_v4 = vld [vmem:[#allocation2] sm:$0xff]  ;;  %v6711_v6 = vld [vmem:[#allocation5 + $0x48c] sm:$0xf0]  ;;  %v7333_v8 = vpack.c.bf16 %v95_v3, %v95_v3  ;;  %3287 = vmatpush.bf16.msrb.mxu2 %v5240_v5 }
  0x45   :  { %v5095_v7 = vld [vmem:[#allocation5 + $0x580] sm:$0xf]  ;;  %v7335_v9 = vpack.c.bf16 %v93_v4, %v93_v4  ;;  %v6743_v12 = vld [vmem:[#allocation5 + $0x58c] sm:$0xf0]  ;;  %v4968_v18 = vor.u32 %v6711_v6, %v4967_v2  ;;  %3300 = vmatpush.bf16.msrb.mxu3 %v5368_v11 }
  0x46   :  { %v5223_v13 = vld [vmem:[#allocation5 + $0x680] sm:$0xf]  ;;  %v6775_v14 = vld [vmem:[#allocation5 + $0x68c] sm:$0xf0]  ;;  %3241 = vmatmul.bf16.vlgmr.msra.gmra.mxu2 %v7333_v8  ;;  %v5096_v20 = vor.u32 %v6743_v12, %v5095_v7 }
  0x47   :  { %v5351_v16 = vld [vmem:[#allocation5 + $0x780] sm:$0xf]  ;;  %v6807_v17 = vld [vmem:[#allocation5 + $0x78c] sm:$0xf0]  ;;  %3215 = vmatmul.bf16.vlgmr.msra.gmra.mxu0 %v7335_v9  ;;  %v5224_v21 = vor.u32 %v6775_v14, %v5223_v13 }
  0x48   :  { %v4951_v22 = vld [vmem:[#allocation5 + $0x460] sm:$0xf]  ;;  %v6707_v23 = vld [vmem:[#allocation5 + $0x46c] sm:$0xf0]  ;;  %v5352_v26 = vor.u32 %v6807_v17, %v5351_v16  ;;  %3262 = vmatpush.bf16.msrb.mxu0 %v4968_v18  ;;  %3275 = vmatpush.bf16.msrb.mxu1 %v5096_v20 }
  0x49   :  { %v5079_v24 = vld [vmem:[#allocation5 + $0x560] sm:$0xf]  ;;  %v6739_v27 = vld [vmem:[#allocation5 + $0x56c] sm:$0xf0]  ;;  %v4952_v32 = vor.u32 %v6707_v23, %v4951_v22  ;;  %3288 = vmatpush.bf16.msrb.mxu2 %v5224_v21  ;;  %v100_v23 = vld [vmem:[#allocation2 + $0x38] sm:$0xff] }
  0x4a   :  { %v5207_v28 = vld [vmem:[#allocation5 + $0x660] sm:$0xf]  ;;  %v6771_v29 = vld [vmem:[#allocation5 + $0x66c] sm:$0xf0]  ;;  %v5080_v33 = vor.u32 %v6739_v27, %v5079_v24  ;;  %3301 = vmatpush.bf16.msrb.mxu3 %v5352_v26 }
  0x4b   :  { %v5335_v30 = vld [vmem:[#allocation5 + $0x760] sm:$0xf]  ;;  %v6803_v31 = vld [vmem:[#allocation5 + $0x76c] sm:$0xf0]  ;;  %v5208_v34 = vor.u32 %v6771_v29, %v5207_v28  ;;  %v98_v29 = vld [vmem:[#allocation2 + $0x28] sm:$0xff] }
  0x4c   :  { %v4935_v35 = vld [vmem:[#allocation5 + $0x440] sm:$0xf]  ;;  %v6703_v36 = vld [vmem:[#allocation5 + $0x44c] sm:$0xf0]  ;;  %v5336_v38 = vor.u32 %v6803_v31, %v5335_v30  ;;  %3263 = vmatpush.bf16.msrb.mxu0 %v4952_v32  ;;  %3276 = vmatpush.bf16.msrb.mxu1 %v5080_v33 }
  0x4d   :  { %v5063_v37 = vld [vmem:[#allocation5 + $0x540] sm:$0xf]  ;;  %v6735_v39 = vld [vmem:[#allocation5 + $0x54c] sm:$0xf0]  ;;  %v4936_v44 = vor.u32 %v6703_v36, %v4935_v35  ;;  %3289 = vmatpush.bf16.msrb.mxu2 %v5208_v34 }
  0x4e   :  { %v5191_v40 = vld [vmem:[#allocation5 + $0x640] sm:$0xf]  ;;  %v6767_v41 = vld [vmem:[#allocation5 + $0x64c] sm:$0xf0]  ;;  %v5064_v45 = vor.u32 %v6735_v39, %v5063_v37  ;;  %3302 = vmatpush.bf16.msrb.mxu3 %v5336_v38  ;;  %v7349_v38 = vpack.c.bf16 %v100_v23, %v100_v23 }
  0x4f   :  { %v5319_v42 = vld [vmem:[#allocation5 + $0x740] sm:$0xf]  ;;  %v6799_v43 = vld [vmem:[#allocation5 + $0x74c] sm:$0xf0]  ;;  %v5192_v46 = vor.u32 %v6767_v41, %v5191_v40  ;;  %v7351_v40 = vpack.c.bf16 %v98_v29, %v98_v29 }
  0x50   :  { %v4919_v47 = vld [vmem:[#allocation5 + $0x420] sm:$0xf]  ;;  %v6699_v48 = vld [vmem:[#allocation5 + $0x42c] sm:$0xf0]  ;;  %v5320_v50 = vor.u32 %v6799_v43, %v5319_v42  ;;  %3264 = vmatpush.bf16.msrb.mxu0 %v4936_v44  ;;  %3277 = vmatpush.bf16.msrb.mxu1 %v5064_v45 }
  0x51   :  { %v5047_v49 = vld [vmem:[#allocation5 + $0x520] sm:$0xf]  ;;  %v6731_v51 = vld [vmem:[#allocation5 + $0x52c] sm:$0xf0]  ;;  %v4920_v56 = vor.u32 %v6699_v48, %v4919_v47  ;;  %3290 = vmatpush.bf16.msrb.mxu2 %v5192_v46 }
  0x52   :  { %v5175_v52 = vld [vmem:[#allocation5 + $0x620] sm:$0xf]  ;;  %v6763_v53 = vld [vmem:[#allocation5 + $0x62c] sm:$0xf0]  ;;  %v5048_v59 = vor.u32 %v6731_v51, %v5047_v49  ;;  %3303 = vmatpush.bf16.msrb.mxu3 %v5320_v50 }
  0x53   :  { %v5303_v54 = vld [vmem:[#allocation5 + $0x720] sm:$0xf]  ;;  %v6795_v55 = vld [vmem:[#allocation5 + $0x72c] sm:$0xf0]  ;;  %v5176_v60 = vor.u32 %v6763_v53, %v5175_v52 }
  0x54   :  { %v4903_v57 = vld [vmem:[#allocation5 + $0x400] sm:$0xf]  ;;  %v6695_v58 = vld [vmem:[#allocation5 + $0x40c] sm:$0xf0]  ;;  %v5304_v0 = vor.u32 %v6795_v55, %v5303_v54  ;;  %3265 = vmatpush.bf16.msrb.mxu0 %v4920_v56  ;;  %3278 = vmatpush.bf16.msrb.mxu1 %v5048_v59 }
  0x55   :  { %v5031_v61 = vld [vmem:[#allocation5 + $0x500] sm:$0xf]  ;;  %v6727_v62 = vld [vmem:[#allocation5 + $0x50c] sm:$0xf0]  ;;  %v4904_v7 = vor.u32 %v6695_v58, %v4903_v57  ;;  %3291 = vmatpush.bf16.msrb.mxu2 %v5176_v60 }
  0x56   :  { %v5159_v63 = vld [vmem:[#allocation5 + $0x600] sm:$0xf]  ;;  %v6759_v1 = vld [vmem:[#allocation5 + $0x60c] sm:$0xf0]  ;;  %v5032_v13 = vor.u32 %v6727_v62, %v5031_v61  ;;  %3304 = vmatpush.bf16.msrb.mxu3 %v5304_v0 }
  0x57   :  { %v5287_v2 = vld [vmem:[#allocation5 + $0x700] sm:$0xf]  ;;  %v6791_v3 = vld [vmem:[#allocation5 + $0x70c] sm:$0xf0]  ;;  %v5160_v14 = vor.u32 %v6759_v1, %v5159_v63 }
  0x58   :  { %v5527_v4 = vld [vmem:[#allocation5 + $0x8e0] sm:$0xf]  ;;  %v6851_v5 = vld [vmem:[#allocation5 + $0x8ec] sm:$0xf0]  ;;  %v5288_v19 = vor.u32 %v6791_v3, %v5287_v2  ;;  %3266 = vmatpush.bf16.msrb.mxu0 %v4904_v7  ;;  %3279 = vmatpush.bf16.msrb.mxu1 %v5032_v13 }
  0x59   :  { %v5655_v6 = vld [vmem:[#allocation5 + $0x9e0] sm:$0xf]  ;;  %v6883_v10 = vld [vmem:[#allocation5 + $0x9ec] sm:$0xf0]  ;;  %v5528_v20 = vor.u32 %v6851_v5, %v5527_v4  ;;  %3292 = vmatpush.bf16.msrb.mxu2 %v5160_v14 }
  0x5a   :  { %v5783_v11 = vld [vmem:[#allocation5 + $0xae0] sm:$0xf]  ;;  %v6915_v12 = vld [vmem:[#allocation5 + $0xaec] sm:$0xf0]  ;;  %v5656_v24 = vor.u32 %v6883_v10, %v5655_v6  ;;  %3305 = vmatpush.bf16.msrb.mxu3 %v5288_v19 }
  0x5b   :  { %v5911_v16 = vld [vmem:[#allocation5 + $0xbe0] sm:$0xf]  ;;  %v6947_v17 = vld [vmem:[#allocation5 + $0xbec] sm:$0xf0]  ;;  %v5784_v26 = vor.u32 %v6915_v12, %v5783_v11  ;;  %3280 = vmatmul.bf16.vlgmr.msrb.gmra.mxu1 %v7351_v40 }
  0x5c   :  { %v99_v18 = vld [vmem:[#allocation2 + $0x30] sm:$0xff]  ;;  %v5511_v21 = vld [vmem:[#allocation5 + $0x8c0] sm:$0xf]  ;;  %v5912_v30 = vor.u32 %v6947_v17, %v5911_v16  ;;  %3311 = vmatpush.bf16.msra.mxu0 %v5528_v20  ;;  %3324 = vmatpush.bf16.msra.mxu1 %v5656_v24 }
  0x5d   :  { %v97_v22 = vld [vmem:[#allocation2 + $0x20] sm:$0xff]  ;;  %v6847_v27 = vld [vmem:[#allocation5 + $0x8cc] sm:$0xf0]  ;;  %v7345_v34 = vpack.c.bf16 %v99_v18, %v99_v18  ;;  %3337 = vmatpush.bf16.msra.mxu2 %v5784_v26  ;;  %3306 = vmatmul.bf16.vlgmr.msrb.gmra.mxu3 %v7349_v38 }
  0x5e   :  { %v5639_v28 = vld [vmem:[#allocation5 + $0x9c0] sm:$0xf]  ;;  %v6879_v31 = vld [vmem:[#allocation5 + $0x9cc] sm:$0xf0]  ;;  %v7347_v37 = vpack.c.bf16 %v97_v22, %v97_v22  ;;  %v5512_v39 = vor.u32 %v6847_v27, %v5511_v21  ;;  %3350 = vmatpush.bf16.msra.mxu3 %v5912_v30 }
  0x5f   :  { %v5767_v32 = vld [vmem:[#allocation5 + $0xac0] sm:$0xf]  ;;  %v6911_v33 = vld [vmem:[#allocation5 + $0xacc] sm:$0xf0]  ;;  %v5640_v41 = vor.u32 %v6879_v31, %v5639_v28  ;;  %3293 = vmatmul.bf16.vlgmr.msrb.gmra.mxu2 %v7345_v34 }
  0x60   :  { %v5895_v35 = vld [vmem:[#allocation5 + $0xbc0] sm:$0xf]  ;;  %v6943_v36 = vld [vmem:[#allocation5 + $0xbcc] sm:$0xf0]  ;;  %v5768_v42 = vor.u32 %v6911_v33, %v5767_v32  ;;  %3267 = vmatmul.bf16.vlgmr.msrb.gmra.mxu0 %v7347_v37 }
  0x61   :  { %v5495_v43 = vld [vmem:[#allocation5 + $0x8a0] sm:$0xf]  ;;  %v6843_v44 = vld [vmem:[#allocation5 + $0x8ac] sm:$0xf0]  ;;  %v5896_v46 = vor.u32 %v6943_v36, %v5895_v35  ;;  %3312 = vmatpush.bf16.msra.mxu0 %v5512_v39  ;;  %3325 = vmatpush.bf16.msra.mxu1 %v5640_v41 }
  0x62   :  { %v5623_v45 = vld [vmem:[#allocation5 + $0x9a0] sm:$0xf]  ;;  %v6875_v47 = vld [vmem:[#allocation5 + $0x9ac] sm:$0xf0]  ;;  %v5496_v52 = vor.u32 %v6843_v44, %v5495_v43  ;;  %3338 = vmatpush.bf16.msra.mxu2 %v5768_v42 }
  0x63   :  { %v5751_v48 = vld [vmem:[#allocation5 + $0xaa0] sm:$0xf]  ;;  %v6907_v49 = vld [vmem:[#allocation5 + $0xaac] sm:$0xf0]  ;;  %v5624_v53 = vor.u32 %v6875_v47, %v5623_v45  ;;  %3351 = vmatpush.bf16.msra.mxu3 %v5896_v46 }
  0x64   :  { %v5879_v50 = vld [vmem:[#allocation5 + $0xba0] sm:$0xf]  ;;  %v6939_v51 = vld [vmem:[#allocation5 + $0xbac] sm:$0xf0]  ;;  %v5752_v54 = vor.u32 %v6907_v49, %v5751_v48 }
  0x65   :  { %v5479_v55 = vld [vmem:[#allocation5 + $0x880] sm:$0xf]  ;;  %v6839_v56 = vld [vmem:[#allocation5 + $0x88c] sm:$0xf0]  ;;  %v5880_v58 = vor.u32 %v6939_v51, %v5879_v50  ;;  %3313 = vmatpush.bf16.msra.mxu0 %v5496_v52  ;;  %3326 = vmatpush.bf16.msra.mxu1 %v5624_v53 }
  0x66   :  { %v5607_v57 = vld [vmem:[#allocation5 + $0x980] sm:$0xf]  ;;  %v6871_v59 = vld [vmem:[#allocation5 + $0x98c] sm:$0xf0]  ;;  %v5480_v0 = vor.u32 %v6839_v56, %v5479_v55  ;;  %3339 = vmatpush.bf16.msra.mxu2 %v5752_v54 }
  0x67   :  { %v5735_v60 = vld [vmem:[#allocation5 + $0xa80] sm:$0xf]  ;;  %v6903_v61 = vld [vmem:[#allocation5 + $0xa8c] sm:$0xf0]  ;;  %v5608_v1 = vor.u32 %v6871_v59, %v5607_v57  ;;  %3352 = vmatpush.bf16.msra.mxu3 %v5880_v58 }
  0x68   :  { %v5863_v62 = vld [vmem:[#allocation5 + $0xb80] sm:$0xf]  ;;  %v6935_v63 = vld [vmem:[#allocation5 + $0xb8c] sm:$0xf0]  ;;  %v5736_v2 = vor.u32 %v6903_v61, %v5735_v60 }
  0x69   :  { %v5463_v3 = vld [vmem:[#allocation5 + $0x860] sm:$0xf]  ;;  %v6835_v4 = vld [vmem:[#allocation5 + $0x86c] sm:$0xf0]  ;;  %v5864_v6 = vor.u32 %v6935_v63, %v5863_v62  ;;  %3314 = vmatpush.bf16.msra.mxu0 %v5480_v0  ;;  %3327 = vmatpush.bf16.msra.mxu1 %v5608_v1 }
  0x6a   :  { %v5591_v5 = vld [vmem:[#allocation5 + $0x960] sm:$0xf]  ;;  %v6867_v7 = vld [vmem:[#allocation5 + $0x96c] sm:$0xf0]  ;;  %v5464_v14 = vor.u32 %v6835_v4, %v5463_v3  ;;  %3340 = vmatpush.bf16.msra.mxu2 %v5736_v2 }
  0x6b   :  { %v5719_v10 = vld [vmem:[#allocation5 + $0xa60] sm:$0xf]  ;;  %v6899_v11 = vld [vmem:[#allocation5 + $0xa6c] sm:$0xf0]  ;;  %v5592_v16 = vor.u32 %v6867_v7, %v5591_v5  ;;  %3353 = vmatpush.bf16.msra.mxu3 %v5864_v6  ;;  %v102_v7 = vld [vmem:[#allocation2 + $0x48] sm:$0xff] }
  0x6c   :  { %v5847_v12 = vld [vmem:[#allocation5 + $0xb60] sm:$0xf]  ;;  %v6931_v13 = vld [vmem:[#allocation5 + $0xb6c] sm:$0xf0]  ;;  %v5720_v17 = vor.u32 %v6899_v11, %v5719_v10  ;;  %v104_v10 = vld [vmem:[#allocation2 + $0x58] sm:$0xff] }
  0x6d   :  { %v5447_v18 = vld [vmem:[#allocation5 + $0x840] sm:$0xf]  ;;  %v6831_v19 = vld [vmem:[#allocation5 + $0x84c] sm:$0xf0]  ;;  %v5848_v21 = vor.u32 %v6931_v13, %v5847_v12  ;;  %3315 = vmatpush.bf16.msra.mxu0 %v5464_v14  ;;  %3328 = vmatpush.bf16.msra.mxu1 %v5592_v16 }
  0x6e   :  { %v5575_v20 = vld [vmem:[#allocation5 + $0x940] sm:$0xf]  ;;  %v6863_v22 = vld [vmem:[#allocation5 + $0x94c] sm:$0xf0]  ;;  %v5448_v28 = vor.u32 %v6831_v19, %v5447_v18  ;;  %3341 = vmatpush.bf16.msra.mxu2 %v5720_v17 }
  0x6f   :  { %v5703_v23 = vld [vmem:[#allocation5 + $0xa40] sm:$0xf]  ;;  %v6895_v24 = vld [vmem:[#allocation5 + $0xa4c] sm:$0xf0]  ;;  %v5576_v29 = vor.u32 %v6863_v22, %v5575_v20  ;;  %3354 = vmatpush.bf16.msra.mxu3 %v5848_v21 }
  0x70   :  { %v5831_v26 = vld [vmem:[#allocation5 + $0xb40] sm:$0xf]  ;;  %v6927_v27 = vld [vmem:[#allocation5 + $0xb4c] sm:$0xf0]  ;;  %v5704_v30 = vor.u32 %v6895_v24, %v5703_v23  ;;  %v7361_v23 = vpack.c.bf16 %v102_v7, %v102_v7 }
  0x71   :  { %v5431_v31 = vld [vmem:[#allocation5 + $0x820] sm:$0xf]  ;;  %v6827_v32 = vld [vmem:[#allocation5 + $0x82c] sm:$0xf0]  ;;  %v5832_v35 = vor.u32 %v6927_v27, %v5831_v26  ;;  %3316 = vmatpush.bf16.msra.mxu0 %v5448_v28  ;;  %3329 = vmatpush.bf16.msra.mxu1 %v5576_v29  ;;  %v7363_v27 = vpack.c.bf16 %v104_v10, %v104_v10 }
  0x72   :  { %v5559_v33 = vld [vmem:[#allocation5 + $0x920] sm:$0xf]  ;;  %v6859_v36 = vld [vmem:[#allocation5 + $0x92c] sm:$0xf0]  ;;  %v5432_v44 = vor.u32 %v6827_v32, %v5431_v31  ;;  %3342 = vmatpush.bf16.msra.mxu2 %v5704_v30 }
  0x73   :  { %v5687_v39 = vld [vmem:[#allocation5 + $0xa20] sm:$0xf]  ;;  %v6891_v41 = vld [vmem:[#allocation5 + $0xa2c] sm:$0xf0]  ;;  %v5560_v48 = vor.u32 %v6859_v36, %v5559_v33  ;;  %3355 = vmatpush.bf16.msra.mxu3 %v5832_v35 }
  0x74   :  { %v5815_v42 = vld [vmem:[#allocation5 + $0xb20] sm:$0xf]  ;;  %v6923_v43 = vld [vmem:[#allocation5 + $0xb2c] sm:$0xf0]  ;;  %v5688_v49 = vor.u32 %v6891_v41, %v5687_v39 }
  0x75   :  { %v5415_v45 = vld [vmem:[#allocation5 + $0x800] sm:$0xf]  ;;  %v6823_v46 = vld [vmem:[#allocation5 + $0x80c] sm:$0xf0]  ;;  %v5816_v53 = vor.u32 %v6923_v43, %v5815_v42  ;;  %3317 = vmatpush.bf16.msra.mxu0 %v5432_v44  ;;  %3330 = vmatpush.bf16.msra.mxu1 %v5560_v48 }
  0x76   :  { %v5543_v47 = vld [vmem:[#allocation5 + $0x900] sm:$0xf]  ;;  %v6855_v50 = vld [vmem:[#allocation5 + $0x90c] sm:$0xf0]  ;;  %v5416_v59 = vor.u32 %v6823_v46, %v5415_v45  ;;  %3343 = vmatpush.bf16.msra.mxu2 %v5688_v49 }
  0x77   :  { %v5671_v51 = vld [vmem:[#allocation5 + $0xa00] sm:$0xf]  ;;  %v6887_v52 = vld [vmem:[#allocation5 + $0xa0c] sm:$0xf0]  ;;  %v5544_v63 = vor.u32 %v6855_v50, %v5543_v47  ;;  %3356 = vmatpush.bf16.msra.mxu3 %v5816_v53 }
  0x78   :  { %v5799_v54 = vld [vmem:[#allocation5 + $0xb00] sm:$0xf]  ;;  %v6919_v55 = vld [vmem:[#allocation5 + $0xb0c] sm:$0xf0]  ;;  %v5672_v0 = vor.u32 %v6887_v52, %v5671_v51 }
  0x79   :  { %v6039_v56 = vld [vmem:[#allocation5 + $0xce0] sm:$0xf]  ;;  %v6979_v57 = vld [vmem:[#allocation5 + $0xcec] sm:$0xf0]  ;;  %v5800_v4 = vor.u32 %v6919_v55, %v5799_v54  ;;  %3318 = vmatpush.bf16.msra.mxu0 %v5416_v59  ;;  %3331 = vmatpush.bf16.msra.mxu1 %v5544_v63 }
  0x7a   :  { %v6167_v58 = vld [vmem:[#allocation5 + $0xde0] sm:$0xf]  ;;  %v7011_v60 = vld [vmem:[#allocation5 + $0xdec] sm:$0xf0]  ;;  %v6040_v5 = vor.u32 %v6979_v57, %v6039_v56  ;;  %3344 = vmatpush.bf16.msra.mxu2 %v5672_v0 }
  0x7b   :  { %v6295_v61 = vld [vmem:[#allocation5 + $0xee0] sm:$0xf]  ;;  %v7043_v62 = vld [vmem:[#allocation5 + $0xeec] sm:$0xf0]  ;;  %v6168_v11 = vor.u32 %v7011_v60, %v6167_v58  ;;  %3357 = vmatpush.bf16.msra.mxu3 %v5800_v4 }
  0x7c   :  { %v6423_v1 = vld [vmem:[#allocation5 + $0xfe0] sm:$0xf]  ;;  %v7075_v2 = vld [vmem:[#allocation5 + $0xfec] sm:$0xf0]  ;;  %v6296_v12 = vor.u32 %v7043_v62, %v6295_v61  ;;  %3332 = vmatmul.bf16.vlgmr.msra.gmra.mxu1 %v7361_v23 }
  0x7d   :  { %v101_v3 = vld [vmem:[#allocation2 + $0x40] sm:$0xff]  ;;  %v103_v6 = vld [vmem:[#allocation2 + $0x50] sm:$0xff]  ;;  %v6424_v17 = vor.u32 %v7075_v2, %v6423_v1  ;;  %3363 = vmatpush.bf16.msrb.mxu0 %v6040_v5  ;;  %3376 = vmatpush.bf16.msrb.mxu1 %v6168_v11 }
  0x7e   :  { %v6023_v13 = vld [vmem:[#allocation5 + $0xcc0] sm:$0xf]  ;;  %v6975_v14 = vld [vmem:[#allocation5 + $0xccc] sm:$0xf0]  ;;  %v7357_v18 = vpack.c.bf16 %v101_v3, %v101_v3  ;;  %v7359_v22 = vpack.c.bf16 %v103_v6, %v103_v6  ;;  %3389 = vmatpush.bf16.msrb.mxu2 %v6296_v12  ;;  %3358 = vmatmul.bf16.vlgmr.msra.gmra.mxu3 %v7363_v27 }
  0x7f   :  { %v6151_v16 = vld [vmem:[#allocation5 + $0xdc0] sm:$0xf]  ;;  %v7007_v19 = vld [vmem:[#allocation5 + $0xdcc] sm:$0xf0]  ;;  %v6024_v28 = vor.u32 %v6975_v14, %v6023_v13  ;;  %3402 = vmatpush.bf16.msrb.mxu3 %v6424_v17 }
  0x80   :  { %v6279_v20 = vld [vmem:[#allocation5 + $0xec0] sm:$0xf]  ;;  %v7039_v21 = vld [vmem:[#allocation5 + $0xecc] sm:$0xf0]  ;;  %v6152_v29 = vor.u32 %v7007_v19, %v6151_v16  ;;  %3319 = vmatmul.bf16.vlgmr.msra.gmra.mxu0 %v7357_v18  ;;  %3345 = vmatmul.bf16.vlgmr.msra.gmra.mxu2 %v7359_v22 }
  0x81   :  { %v6407_v24 = vld [vmem:[#allocation5 + $0xfc0] sm:$0xf]  ;;  %v7071_v26 = vld [vmem:[#allocation5 + $0xfcc] sm:$0xf0]  ;;  %v6280_v30 = vor.u32 %v7039_v21, %v6279_v20  ;;  %3364 = vmatpush.bf16.msrb.mxu0 %v6024_v28 }
  0x82   :  { %v6007_v31 = vld [vmem:[#allocation5 + $0xca0] sm:$0xf]  ;;  %v6971_v32 = vld [vmem:[#allocation5 + $0xcac] sm:$0xf0]  ;;  %v6408_v35 = vor.u32 %v7071_v26, %v6407_v24  ;;  %3377 = vmatpush.bf16.msrb.mxu1 %v6152_v29 }
  0x83   :  { %v6135_v33 = vld [vmem:[#allocation5 + $0xda0] sm:$0xf]  ;;  %v7003_v36 = vld [vmem:[#allocation5 + $0xdac] sm:$0xf0]  ;;  %v6008_v44 = vor.u32 %v6971_v32, %v6007_v31  ;;  %3390 = vmatpush.bf16.msrb.mxu2 %v6280_v30 }
  0x84   :  { %v6263_v39 = vld [vmem:[#allocation5 + $0xea0] sm:$0xf]  ;;  %v7035_v41 = vld [vmem:[#allocation5 + $0xeac] sm:$0xf0]  ;;  %v6136_v45 = vor.u32 %v7003_v36, %v6135_v33  ;;  %3403 = vmatpush.bf16.msrb.mxu3 %v6408_v35 }
  0x85   :  { %v6391_v42 = vld [vmem:[#allocation5 + $0xfa0] sm:$0xf]  ;;  %v7067_v43 = vld [vmem:[#allocation5 + $0xfac] sm:$0xf0]  ;;  %v6264_v46 = vor.u32 %v7035_v41, %v6263_v39  ;;  %3365 = vmatpush.bf16.msrb.mxu0 %v6008_v44 }
  0x86   :  { %v5991_v47 = vld [vmem:[#allocation5 + $0xc80] sm:$0xf]  ;;  %v6967_v48 = vld [vmem:[#allocation5 + $0xc8c] sm:$0xf0]  ;;  %v6392_v50 = vor.u32 %v7067_v43, %v6391_v42  ;;  %3378 = vmatpush.bf16.msrb.mxu1 %v6136_v45 }
  0x87   :  { %v6119_v49 = vld [vmem:[#allocation5 + $0xd80] sm:$0xf]  ;;  %v6999_v51 = vld [vmem:[#allocation5 + $0xd8c] sm:$0xf0]  ;;  %v5992_v56 = vor.u32 %v6967_v48, %v5991_v47  ;;  %3391 = vmatpush.bf16.msrb.mxu2 %v6264_v46 }
  0x88   :  { %v6247_v52 = vld [vmem:[#allocation5 + $0xe80] sm:$0xf]  ;;  %v7031_v53 = vld [vmem:[#allocation5 + $0xe8c] sm:$0xf0]  ;;  %v6120_v57 = vor.u32 %v6999_v51, %v6119_v49  ;;  %3404 = vmatpush.bf16.msrb.mxu3 %v6392_v50 }
  0x89   :  { %v6375_v54 = vld [vmem:[#allocation5 + $0xf80] sm:$0xf]  ;;  %v7063_v55 = vld [vmem:[#allocation5 + $0xf8c] sm:$0xf0]  ;;  %v6248_v58 = vor.u32 %v7031_v53, %v6247_v52  ;;  %3366 = vmatpush.bf16.msrb.mxu0 %v5992_v56  ;;  %v6593_v52 = vld [vmem:[#allocation5 + $0xe4] sm:$0xf] }
  0x8a   :  { %v5975_v59 = vld [vmem:[#allocation5 + $0xc60] sm:$0xf]  ;;  %v6963_v60 = vld [vmem:[#allocation5 + $0xc6c] sm:$0xf0]  ;;  %v6376_v62 = vor.u32 %v7063_v55, %v6375_v54  ;;  %3379 = vmatpush.bf16.msrb.mxu1 %v6120_v57  ;;  %v4505_v53 = vld [vmem:[#allocation5 + $0xf0] sm:$0xf0] }
  0x8b   :  { %v6103_v61 = vld [vmem:[#allocation5 + $0xd60] sm:$0xf]  ;;  %v6995_v63 = vld [vmem:[#allocation5 + $0xd6c] sm:$0xf0]  ;;  %v5976_v4 = vor.u32 %v6963_v60, %v5975_v59  ;;  %3392 = vmatpush.bf16.msrb.mxu2 %v6248_v58  ;;  %v6625_v54 = vld [vmem:[#allocation5 + $0x1e4] sm:$0xf] }
  0x8c   :  { %v6231_v0 = vld [vmem:[#allocation5 + $0xe60] sm:$0xf]  ;;  %v7027_v1 = vld [vmem:[#allocation5 + $0xe6c] sm:$0xf0]  ;;  %v6104_v5 = vor.u32 %v6995_v63, %v6103_v61  ;;  %3405 = vmatpush.bf16.msrb.mxu3 %v6376_v62  ;;  %v4633_v56 = vld [vmem:[#allocation5 + $0x1f0] sm:$0xf0] }
  0x8d   :  { %v6359_v2 = vld [vmem:[#allocation5 + $0xf60] sm:$0xf]  ;;  %v7059_v3 = vld [vmem:[#allocation5 + $0xf6c] sm:$0xf0]  ;;  %v6232_v6 = vor.u32 %v7027_v1, %v6231_v0  ;;  %3367 = vmatpush.bf16.msrb.mxu0 %v5976_v4  ;;  %v6657_v57 = vld [vmem:[#allocation5 + $0x2e4] sm:$0xf]  ;;  %v4508_v1 = vor.u32 %v6593_v52, %v4505_v53 }
  0x8e   :  { %v5959_v7 = vld [vmem:[#allocation5 + $0xc40] sm:$0xf]  ;;  %v6959_v10 = vld [vmem:[#allocation5 + $0xc4c] sm:$0xf0]  ;;  %v6360_v12 = vor.u32 %v7059_v3, %v6359_v2  ;;  %3380 = vmatpush.bf16.msrb.mxu1 %v6104_v5  ;;  %v4761_v58 = vld [vmem:[#allocation5 + $0x2f0] sm:$0xf0]  ;;  %v4636_v5 = vor.u32 %v6625_v54, %v4633_v56 }
  0x8f   :  { %v6087_v11 = vld [vmem:[#allocation5 + $0xd40] sm:$0xf]  ;;  %v6991_v13 = vld [vmem:[#allocation5 + $0xd4c] sm:$0xf0]  ;;  %v5960_v20 = vor.u32 %v6959_v10, %v5959_v7  ;;  %3393 = vmatpush.bf16.msrb.mxu2 %v6232_v6  ;;  %v6689_v61 = vld [vmem:[#allocation5 + $0x3e4] sm:$0xf]  ;;  %v4764_v6 = vor.u32 %v6657_v57, %v4761_v58 }
  0x90   :  { %v6215_v14 = vld [vmem:[#allocation5 + $0xe40] sm:$0xf]  ;;  %v7023_v16 = vld [vmem:[#allocation5 + $0xe4c] sm:$0xf0]  ;;  %v6088_v21 = vor.u32 %v6991_v13, %v6087_v11  ;;  %3406 = vmatpush.bf16.msrb.mxu3 %v6360_v12  ;;  %v4889_v62 = vld [vmem:[#allocation5 + $0x3f0] sm:$0xf0] }
  0x91   :  { %v6343_v17 = vld [vmem:[#allocation5 + $0xf40] sm:$0xf]  ;;  %v7055_v19 = vld [vmem:[#allocation5 + $0xf4c] sm:$0xf0]  ;;  %v6216_v24 = vor.u32 %v7023_v16, %v6215_v14  ;;  %3368 = vmatpush.bf16.msrb.mxu0 %v5960_v20  ;;  %v106_v3 = vld [vmem:[#allocation2 + $0x68] sm:$0xff]  ;;  %v4892_v12 = vor.u32 %v6689_v61, %v4889_v62 }
  0x92   :  { %v5943_v26 = vld [vmem:[#allocation5 + $0xc20] sm:$0xf]  ;;  %v6955_v28 = vld [vmem:[#allocation5 + $0xc2c] sm:$0xf0]  ;;  %v6344_v30 = vor.u32 %v7055_v19, %v6343_v17  ;;  %3381 = vmatpush.bf16.msrb.mxu1 %v6088_v21  ;;  %v108_v4 = vld [vmem:[#allocation2 + $0x78] sm:$0xff]  ;;  %v7373_v20 = vpack.c.bf16 %v106_v3, %v106_v3 }
  0x93   :  { %v6071_v29 = vld [vmem:[#allocation5 + $0xd20] sm:$0xf]  ;;  %v6987_v31 = vld [vmem:[#allocation5 + $0xd2c] sm:$0xf0]  ;;  %v5944_v39 = vor.u32 %v6955_v28, %v5943_v26  ;;  %3394 = vmatpush.bf16.msrb.mxu2 %v6216_v24  ;;  %v6589_v7 = vld [vmem:[#allocation5 + $0xc4] sm:$0xf]  ;;  %v7375_v26 = vpack.c.bf16 %v108_v4, %v108_v4 }
  0x94   :  { %v6199_v32 = vld [vmem:[#allocation5 + $0xe20] sm:$0xf]  ;;  %v7019_v33 = vld [vmem:[#allocation5 + $0xe2c] sm:$0xf0]  ;;  %v6072_v43 = vor.u32 %v6987_v31, %v6071_v29  ;;  %3407 = vmatpush.bf16.msrb.mxu3 %v6344_v30  ;;  %v4489_v10 = vld [vmem:[#allocation5 + $0xd0] sm:$0xf0] }
  0x95   :  { %v6327_v35 = vld [vmem:[#allocation5 + $0xf20] sm:$0xf]  ;;  %v7051_v36 = vld [vmem:[#allocation5 + $0xf2c] sm:$0xf0]  ;;  %v6200_v44 = vor.u32 %v7019_v33, %v6199_v32  ;;  %3369 = vmatpush.bf16.msrb.mxu0 %v5944_v39  ;;  %v6621_v11 = vld [vmem:[#allocation5 + $0x1c4] sm:$0xf]  ;;  %v4492_v28 = vor.u32 %v6589_v7, %v4489_v10 }
  0x96   :  { %v5927_v41 = vld [vmem:[#allocation5 + $0xc00] sm:$0xf]  ;;  %v6951_v42 = vld [vmem:[#allocation5 + $0xc0c] sm:$0xf0]  ;;  %v6328_v48 = vor.u32 %v7051_v36, %v6327_v35  ;;  %3382 = vmatpush.bf16.msrb.mxu1 %v6072_v43  ;;  %v4617_v14 = vld [vmem:[#allocation5 + $0x1d0] sm:$0xf0] }
  0x97   :  { %v6055_v45 = vld [vmem:[#allocation5 + $0xd00] sm:$0xf]  ;;  %v6983_v46 = vld [vmem:[#allocation5 + $0xd0c] sm:$0xf0]  ;;  %v5928_v55 = vor.u32 %v6951_v42, %v5927_v41  ;;  %3395 = vmatpush.bf16.msrb.mxu2 %v6200_v44  ;;  %v6653_v16 = vld [vmem:[#allocation5 + $0x2c4] sm:$0xf]  ;;  %v4620_v29 = vor.u32 %v6621_v11, %v4617_v14 }
  0x98   :  { %v6183_v47 = vld [vmem:[#allocation5 + $0xe00] sm:$0xf]  ;;  %v7015_v49 = vld [vmem:[#allocation5 + $0xe0c] sm:$0xf0]  ;;  %v6056_v59 = vor.u32 %v6983_v46, %v6055_v45  ;;  %3408 = vmatpush.bf16.msrb.mxu3 %v6328_v48  ;;  %v4745_v17 = vld [vmem:[#allocation5 + $0x2d0] sm:$0xf0] }
  0x99   :  { %v6311_v50 = vld [vmem:[#allocation5 + $0xf00] sm:$0xf]  ;;  %v7047_v51 = vld [vmem:[#allocation5 + $0xf0c] sm:$0xf0]  ;;  %v6184_v60 = vor.u32 %v7015_v49, %v6183_v47  ;;  %3370 = vmatpush.bf16.msrb.mxu0 %v5928_v55  ;;  %v6685_v21 = vld [vmem:[#allocation5 + $0x3c4] sm:$0xf]  ;;  %v4748_v30 = vor.u32 %v6653_v16, %v4745_v17 }
  0x9a   :  { %v105_v63 = vld [vmem:[#allocation2 + $0x60] sm:$0xff]  ;;  %v6312_v0 = vor.u32 %v7047_v51, %v6311_v50  ;;  %v107_v2 = vld [vmem:[#allocation2 + $0x70] sm:$0xff]  ;;  %3383 = vmatpush.bf16.msrb.mxu1 %v6056_v59 }
  0x9b   :  { %v7369_v13 = vpack.c.bf16 %v105_v63, %v105_v63  ;;  %3396 = vmatpush.bf16.msrb.mxu2 %v6184_v60  ;;  %v7371_v19 = vpack.c.bf16 %v107_v2, %v107_v2  ;;  %v4873_v24 = vld [vmem:[#allocation5 + $0x3d0] sm:$0xf0]  ;;  %v6585_v31 = vld [vmem:[#allocation5 + $0xa4] sm:$0xf] }
  0x9c   :  { %3409 = vmatpush.bf16.msrb.mxu3 %v6312_v0  ;;  %v4473_v32 = vld [vmem:[#allocation5 + $0xb0] sm:$0xf0]  ;;  %v6617_v33 = vld [vmem:[#allocation5 + $0x1a4] sm:$0xf]  ;;  %v4876_v35 = vor.u32 %v6685_v21, %v4873_v24 }
  0x9d   :  { %3415 = vmatpush.bf16.msra.mxu0 %v4508_v1  ;;  %v4601_v36 = vld [vmem:[#allocation5 + $0x1b0] sm:$0xf0]  ;;  %v6649_v39 = vld [vmem:[#allocation5 + $0x2a4] sm:$0xf]  ;;  %3384 = vmatmul.bf16.vlgmr.msrb.gmra.mxu1 %v7373_v20  ;;  %v4476_v44 = vor.u32 %v6585_v31, %v4473_v32 }
  0x9e   :  { %3428 = vmatpush.bf16.msra.mxu1 %v4636_v5  ;;  %3371 = vmatmul.bf16.vlgmr.msrb.gmra.mxu0 %v7369_v13  ;;  %v4729_v41 = vld [vmem:[#allocation5 + $0x2b0] sm:$0xf0]  ;;  %v6681_v42 = vld [vmem:[#allocation5 + $0x3a4] sm:$0xf]  ;;  %v4604_v45 = vor.u32 %v6617_v33, %v4601_v36 }
  0x9f   :  { %3441 = vmatpush.bf16.msra.mxu2 %v4764_v6  ;;  %v4857_v43 = vld [vmem:[#allocation5 + $0x3b0] sm:$0xf0]  ;;  %3410 = vmatmul.bf16.vlgmr.msrb.gmra.mxu3 %v7375_v26  ;;  %v4732_v46 = vor.u32 %v6649_v39, %v4729_v41  ;;  %v6581_v47 = vld [vmem:[#allocation5 + $0x84] sm:$0xf] }
  0xa0   :  { %3454 = vmatpush.bf16.msra.mxu3 %v4892_v12  ;;  %3397 = vmatmul.bf16.vlgmr.msrb.gmra.mxu2 %v7371_v19  ;;  %v4457_v48 = vld [vmem:[#allocation5 + $0x90] sm:$0xf0]  ;;  %v6613_v49 = vld [vmem:[#allocation5 + $0x184] sm:$0xf]  ;;  %v4860_v50 = vor.u32 %v6681_v42, %v4857_v43 }
  0xa1   :  { %3416 = vmatpush.bf16.msra.mxu0 %v4492_v28  ;;  %v4585_v51 = vld [vmem:[#allocation5 + $0x190] sm:$0xf0]  ;;  %v6645_v52 = vld [vmem:[#allocation5 + $0x284] sm:$0xf]  ;;  %v4460_v56 = vor.u32 %v6581_v47, %v4457_v48 }
  0xa2   :  { %3429 = vmatpush.bf16.msra.mxu1 %v4620_v29  ;;  %v4713_v53 = vld [vmem:[#allocation5 + $0x290] sm:$0xf0]  ;;  %v6677_v54 = vld [vmem:[#allocation5 + $0x384] sm:$0xf]  ;;  %v4588_v57 = vor.u32 %v6613_v49, %v4585_v51 }
  0xa3   :  { %3442 = vmatpush.bf16.msra.mxu2 %v4748_v30  ;;  %v4841_v55 = vld [vmem:[#allocation5 + $0x390] sm:$0xf0]  ;;  %v4716_v58 = vor.u32 %v6645_v52, %v4713_v53  ;;  %v6577_v59 = vld [vmem:[#allocation5 + $0x64] sm:$0xf] }
  0xa4   :  { %3455 = vmatpush.bf16.msra.mxu3 %v4876_v35  ;;  %v4441_v60 = vld [vmem:[#allocation5 + $0x70] sm:$0xf0]  ;;  %v6609_v61 = vld [vmem:[#allocation5 + $0x164] sm:$0xf]  ;;  %v4844_v62 = vor.u32 %v6677_v54, %v4841_v55 }
  0xa5   :  { %3417 = vmatpush.bf16.msra.mxu0 %v4476_v44  ;;  %v4569_v63 = vld [vmem:[#allocation5 + $0x170] sm:$0xf0]  ;;  %v6641_v0 = vld [vmem:[#allocation5 + $0x264] sm:$0xf]  ;;  %v4444_v4 = vor.u32 %v6577_v59, %v4441_v60 }
  0xa6   :  { %3430 = vmatpush.bf16.msra.mxu1 %v4604_v45  ;;  %v4697_v1 = vld [vmem:[#allocation5 + $0x270] sm:$0xf0]  ;;  %v6673_v2 = vld [vmem:[#allocation5 + $0x364] sm:$0xf]  ;;  %v4572_v5 = vor.u32 %v6609_v61, %v4569_v63 }
  0xa7   :  { %3443 = vmatpush.bf16.msra.mxu2 %v4732_v46  ;;  %v4825_v3 = vld [vmem:[#allocation5 + $0x370] sm:$0xf0]  ;;  %v4700_v6 = vor.u32 %v6641_v0, %v4697_v1  ;;  %v6573_v7 = vld [vmem:[#allocation5 + $0x44] sm:$0xf] }
  0xa8   :  { %3456 = vmatpush.bf16.msra.mxu3 %v4860_v50  ;;  %v4425_v10 = vld [vmem:[#allocation5 + $0x50] sm:$0xf0]  ;;  %v6605_v11 = vld [vmem:[#allocation5 + $0x144] sm:$0xf]  ;;  %v4828_v12 = vor.u32 %v6673_v2, %v4825_v3 }
  0xa9   :  { %3418 = vmatpush.bf16.msra.mxu0 %v4460_v56  ;;  %v4553_v14 = vld [vmem:[#allocation5 + $0x150] sm:$0xf0]  ;;  %v6637_v16 = vld [vmem:[#allocation5 + $0x244] sm:$0xf]  ;;  %v4428_v28 = vor.u32 %v6573_v7, %v4425_v10 }
  0xaa   :  { %3431 = vmatpush.bf16.msra.mxu1 %v4588_v57  ;;  %v4681_v17 = vld [vmem:[#allocation5 + $0x250] sm:$0xf0]  ;;  %v6669_v21 = vld [vmem:[#allocation5 + $0x344] sm:$0xf]  ;;  %v4556_v29 = vor.u32 %v6605_v11, %v4553_v14 }
  0xab   :  { %3444 = vmatpush.bf16.msra.mxu2 %v4716_v58  ;;  %v4809_v24 = vld [vmem:[#allocation5 + $0x350] sm:$0xf0]  ;;  %v4684_v30 = vor.u32 %v6637_v16, %v4681_v17  ;;  %v6569_v31 = vld [vmem:[#allocation5 + $0x24] sm:$0xf] }
  0xac   :  { %3457 = vmatpush.bf16.msra.mxu3 %v4844_v62  ;;  %v4409_v32 = vld [vmem:[#allocation5 + $0x30] sm:$0xf0]  ;;  %v6601_v33 = vld [vmem:[#allocation5 + $0x124] sm:$0xf]  ;;  %v4812_v35 = vor.u32 %v6669_v21, %v4809_v24 }
  0xad   :  { %3419 = vmatpush.bf16.msra.mxu0 %v4444_v4  ;;  %v4537_v36 = vld [vmem:[#allocation5 + $0x130] sm:$0xf0]  ;;  %v6633_v39 = vld [vmem:[#allocation5 + $0x224] sm:$0xf]  ;;  %v4412_v44 = vor.u32 %v6569_v31, %v4409_v32 }
  0xae   :  { %3432 = vmatpush.bf16.msra.mxu1 %v4572_v5  ;;  %v4665_v41 = vld [vmem:[#allocation5 + $0x230] sm:$0xf0]  ;;  %v6665_v42 = vld [vmem:[#allocation5 + $0x324] sm:$0xf]  ;;  %v4540_v47 = vor.u32 %v6601_v33, %v4537_v36 }
  0xaf   :  { %3445 = vmatpush.bf16.msra.mxu2 %v4700_v6  ;;  %v4793_v43 = vld [vmem:[#allocation5 + $0x330] sm:$0xf0]  ;;  %v6565_v45 = vld [vmem:[#allocation5 + $0x4] sm:$0xf]  ;;  %v4668_v48 = vor.u32 %v6633_v39, %v4665_v41 }
  0xb0   :  { %3458 = vmatpush.bf16.msra.mxu3 %v4828_v12  ;;  %v4393_v46 = vld [vmem:[#allocation5 + $0x10] sm:$0xf0]  ;;  %v6597_v49 = vld [vmem:[#allocation5 + $0x104] sm:$0xf]  ;;  %v4796_v52 = vor.u32 %v6665_v42, %v4793_v43 }
  0xb1   :  { %3420 = vmatpush.bf16.msra.mxu0 %v4428_v28  ;;  %v4521_v50 = vld [vmem:[#allocation5 + $0x110] sm:$0xf0]  ;;  %v6629_v51 = vld [vmem:[#allocation5 + $0x204] sm:$0xf]  ;;  %v4396_v59 = vor.u32 %v6565_v45, %v4393_v46 }
  0xb2   :  { %3433 = vmatpush.bf16.msra.mxu1 %v4556_v29  ;;  %v4649_v53 = vld [vmem:[#allocation5 + $0x210] sm:$0xf0]  ;;  %v6661_v54 = vld [vmem:[#allocation5 + $0x304] sm:$0xf]  ;;  %v4524_v63 = vor.u32 %v6597_v49, %v4521_v50 }
  0xb3   :  { %3446 = vmatpush.bf16.msra.mxu2 %v4684_v30  ;;  %v4777_v55 = vld [vmem:[#allocation5 + $0x310] sm:$0xf0]  ;;  %v6721_v56 = vld [vmem:[#allocation5 + $0x4e4] sm:$0xf]  ;;  %v4652_v0 = vor.u32 %v6629_v51, %v4649_v53 }
  0xb4   :  { %3459 = vmatpush.bf16.msra.mxu3 %v4812_v35  ;;  %v5017_v57 = vld [vmem:[#allocation5 + $0x4f0] sm:$0xf0]  ;;  %v6753_v58 = vld [vmem:[#allocation5 + $0x5e4] sm:$0xf]  ;;  %v4780_v3 = vor.u32 %v6661_v54, %v4777_v55  ;;  %v637_v54 = vld [vmem:[#allocation7] sm:$0xf] }
  0xb5   :  { %3421 = vmatpush.bf16.msra.mxu0 %v4412_v44  ;;  %v5145_v60 = vld [vmem:[#allocation5 + $0x5f0] sm:$0xf0]  ;;  %v6785_v61 = vld [vmem:[#allocation5 + $0x6e4] sm:$0xf]  ;;  %v5020_v4 = vor.u32 %v6721_v56, %v5017_v57 }
  0xb6   :  { %v5273_v62 = vld [vmem:[#allocation5 + $0x6f0] sm:$0xf0]  ;;  %3434 = vmatpush.bf16.msra.mxu1 %v4540_v47  ;;  %v6817_v1 = vld [vmem:[#allocation5 + $0x7e4] sm:$0xf]  ;;  %v5148_v5 = vor.u32 %v6753_v58, %v5145_v60 }
  0xb7   :  { %3447 = vmatpush.bf16.msra.mxu2 %v4668_v48  ;;  %v5401_v2 = vld [vmem:[#allocation5 + $0x7f0] sm:$0xf0]  ;;  %v5276_v6 = vor.u32 %v6785_v61, %v5273_v62  ;;  %v6717_v7 = vld [vmem:[#allocation5 + $0x4c4] sm:$0xf] }
  0xb8   :  { %3460 = vmatpush.bf16.msra.mxu3 %v4796_v52  ;;  %v5001_v10 = vld [vmem:[#allocation5 + $0x4d0] sm:$0xf0]  ;;  %v6749_v11 = vld [vmem:[#allocation5 + $0x5c4] sm:$0xf]  ;;  %v5404_v12 = vor.u32 %v6817_v1, %v5401_v2 }
  0xb9   :  { %3422 = vmatpush.bf16.msra.mxu0 %v4396_v59  ;;  %v5129_v14 = vld [vmem:[#allocation5 + $0x5d0] sm:$0xf0]  ;;  %v6781_v16 = vld [vmem:[#allocation5 + $0x6c4] sm:$0xf]  ;;  %v5004_v28 = vor.u32 %v6717_v7, %v5001_v10 }
  0xba   :  { %v5257_v17 = vld [vmem:[#allocation5 + $0x6d0] sm:$0xf0]  ;;  %3435 = vmatpush.bf16.msra.mxu1 %v4524_v63  ;;  %v6813_v21 = vld [vmem:[#allocation5 + $0x7c4] sm:$0xf]  ;;  %v5132_v29 = vor.u32 %v6749_v11, %v5129_v14  ;;  %v639_v63 = vperm.slane %v637_v54, 0 }
  0xbb   :  { %3448 = vmatpush.bf16.msra.mxu2 %v4652_v0  ;;  %v5385_v24 = vld [vmem:[#allocation5 + $0x7d0] sm:$0xf0]  ;;  %v5260_v30 = vor.u32 %v6781_v16, %v5257_v17  ;;  %v6713_v31 = vld [vmem:[#allocation5 + $0x4a4] sm:$0xf] }
  0xbc   :  { %3461 = vmatpush.bf16.msra.mxu3 %v4780_v3  ;;  %v4985_v32 = vld [vmem:[#allocation5 + $0x4b0] sm:$0xf0]  ;;  %v6745_v33 = vld [vmem:[#allocation5 + $0x5a4] sm:$0xf]  ;;  %v5388_v35 = vor.u32 %v6813_v21, %v5385_v24  ;;  %3423 = vmatmul.bf16.vlgmr.msra.gmra.mxu0 %v7335_v9 }
  0xbd   :  { %3467 = vmatpush.bf16.msrb.mxu0 %v5020_v4  ;;  %v5113_v36 = vld [vmem:[#allocation5 + $0x5b0] sm:$0xf0]  ;;  %v6777_v39 = vld [vmem:[#allocation5 + $0x6a4] sm:$0xf]  ;;  %v4988_v44 = vor.u32 %v6713_v31, %v4985_v32  ;;  %3436 = vmatmul.bf16.vlgmr.msra.gmra.mxu1 %v7342_v25 }
  0xbe   :  { %3480 = vmatpush.bf16.msrb.mxu1 %v5148_v5  ;;  %v5241_v41 = vld [vmem:[#allocation5 + $0x6b0] sm:$0xf0]  ;;  %3449 = vmatmul.bf16.vlgmr.msra.gmra.mxu2 %v7333_v8  ;;  %v6809_v42 = vld [vmem:[#allocation5 + $0x7a4] sm:$0xf]  ;;  %v5116_v46 = vor.u32 %v6745_v33, %v5113_v36  ;;  %v3229_v33 = vpop.f32.mrf.mxu1 }
  0xbf   :  { %3493 = vmatpush.bf16.msrb.mxu2 %v5276_v6  ;;  %v5369_v43 = vld [vmem:[#allocation5 + $0x7b0] sm:$0xf0]  ;;  %3462 = vmatmul.bf16.vlgmr.msra.gmra.mxu3 %v7337_v15  ;;  %v6709_v45 = vld [vmem:[#allocation5 + $0x484] sm:$0xf]  ;;  %v5244_v47 = vor.u32 %v6777_v39, %v5241_v41 }
  0xc0   :  { %3506 = vmatpush.bf16.msrb.mxu3 %v5404_v12  ;;  %v4969_v48 = vld [vmem:[#allocation5 + $0x490] sm:$0xf0]  ;;  %v6741_v49 = vld [vmem:[#allocation5 + $0x584] sm:$0xf]  ;;  %v5372_v51 = vor.u32 %v6809_v42, %v5369_v43 }
  0xc1   :  { %3468 = vmatpush.bf16.msrb.mxu0 %v5004_v28  ;;  %v5097_v50 = vld [vmem:[#allocation5 + $0x590] sm:$0xf0]  ;;  %v6773_v52 = vld [vmem:[#allocation5 + $0x684] sm:$0xf]  ;;  %v4972_v57 = vor.u32 %v6709_v45, %v4969_v48 }
  0xc2   :  { %3481 = vmatpush.bf16.msrb.mxu1 %v5132_v29  ;;  %v5225_v53 = vld [vmem:[#allocation5 + $0x690] sm:$0xf0]  ;;  %v6805_v55 = vld [vmem:[#allocation5 + $0x784] sm:$0xf]  ;;  %v5100_v59 = vor.u32 %v6741_v49, %v5097_v50 }
  0xc3   :  { %3494 = vmatpush.bf16.msrb.mxu2 %v5260_v30  ;;  %v5353_v56 = vld [vmem:[#allocation5 + $0x790] sm:$0xf0]  ;;  %v6705_v58 = vld [vmem:[#allocation5 + $0x464] sm:$0xf]  ;;  %v5228_v60 = vor.u32 %v6773_v52, %v5225_v53  ;;  %v3255_v52 = vpop.f32.mrf.mxu3 }
  0xc4   :  { %3507 = vmatpush.bf16.msrb.mxu3 %v5388_v35  ;;  %v4953_v61 = vld [vmem:[#allocation5 + $0x470] sm:$0xf0]  ;;  %v6737_v62 = vld [vmem:[#allocation5 + $0x564] sm:$0xf]  ;;  %v5356_v0 = vor.u32 %v6805_v55, %v5353_v56  ;;  %v3216_v7 = vpop.f32.mrf.mxu0 }
  0xc5   :  { %3469 = vmatpush.bf16.msrb.mxu0 %v4988_v44  ;;  %v5081_v1 = vld [vmem:[#allocation5 + $0x570] sm:$0xf0]  ;;  %v6769_v2 = vld [vmem:[#allocation5 + $0x664] sm:$0xf]  ;;  %v4956_v6 = vor.u32 %v6705_v58, %v4953_v61  ;;  %v3217_v17 = vadd.f32 %v3216_v7, %v639_v63 }
  0xc6   :  { %3482 = vmatpush.bf16.msrb.mxu1 %v5116_v46  ;;  %v5209_v3 = vld [vmem:[#allocation5 + $0x670] sm:$0xf0]  ;;  %v6801_v4 = vld [vmem:[#allocation5 + $0x764] sm:$0xf]  ;;  %v5084_v10 = vor.u32 %v6737_v62, %v5081_v1 }
  0xc7   :  { %3495 = vmatpush.bf16.msrb.mxu2 %v5244_v47  ;;  %v5337_v5 = vld [vmem:[#allocation5 + $0x770] sm:$0xf0]  ;;  %v5212_v11 = vor.u32 %v6769_v2, %v5209_v3  ;;  %v6701_v12 = vld [vmem:[#allocation5 + $0x444] sm:$0xf]  ;;  %v3230_v43 = vadd.f32 %v3229_v33, %v3217_v17 }
  0xc8   :  { %3508 = vmatpush.bf16.msrb.mxu3 %v5372_v51  ;;  %v4937_v14 = vld [vmem:[#allocation5 + $0x450] sm:$0xf0]  ;;  %v6733_v16 = vld [vmem:[#allocation5 + $0x544] sm:$0xf]  ;;  %v5340_v21 = vor.u32 %v6801_v4, %v5337_v5 }
  0xc9   :  { %3470 = vmatpush.bf16.msrb.mxu0 %v4972_v57  ;;  %v5065_v24 = vld [vmem:[#allocation5 + $0x550] sm:$0xf0]  ;;  %v6765_v28 = vld [vmem:[#allocation5 + $0x644] sm:$0xf]  ;;  %v4940_v32 = vor.u32 %v6701_v12, %v4937_v14  ;;  %v3242_v48 = vpop.f32.mrf.mxu2  ;;  %v3231_v12 = vpop.f32.mrf.mxu1 }
  0xca   :  { %3483 = vmatpush.bf16.msrb.mxu1 %v5100_v59  ;;  %v5193_v29 = vld [vmem:[#allocation5 + $0x650] sm:$0xf0]  ;;  %v6797_v30 = vld [vmem:[#allocation5 + $0x744] sm:$0xf]  ;;  %v5068_v35 = vor.u32 %v6733_v16, %v5065_v24  ;;  %v3243_v51 = vadd.f32 %v3242_v48, %v3230_v43 }
  0xcb   :  { %3496 = vmatpush.bf16.msrb.mxu2 %v5228_v60  ;;  %v5321_v31 = vld [vmem:[#allocation5 + $0x750] sm:$0xf0]  ;;  %v5196_v36 = vor.u32 %v6765_v28, %v5193_v29  ;;  %v6697_v39 = vld [vmem:[#allocation5 + $0x424] sm:$0xf] }
  0xcc   :  { %3509 = vmatpush.bf16.msrb.mxu3 %v5356_v0  ;;  %v4921_v41 = vld [vmem:[#allocation5 + $0x430] sm:$0xf0]  ;;  %v6729_v42 = vld [vmem:[#allocation5 + $0x524] sm:$0xf]  ;;  %v5324_v44 = vor.u32 %v6797_v30, %v5321_v31  ;;  %v3218_v56 = vpop.f32.mrf.mxu0  ;;  %v7385_v62 = vadd.f32 %v3255_v52, %v3243_v51 }
  0xcd   :  { %3471 = vmatpush.bf16.msrb.mxu0 %v4956_v6  ;;  %v5049_v45 = vld [vmem:[#allocation5 + $0x530] sm:$0xf0]  ;;  %v6761_v46 = vld [vmem:[#allocation5 + $0x624] sm:$0xf]  ;;  %v4924_v53 = vor.u32 %v6697_v39, %v4921_v41 }
  0xce   :  { %3484 = vmatpush.bf16.msrb.mxu1 %v5084_v10  ;;  %v5177_v47 = vld [vmem:[#allocation5 + $0x630] sm:$0xf0]  ;;  %v6793_v49 = vld [vmem:[#allocation5 + $0x724] sm:$0xf]  ;;  %v5052_v57 = vor.u32 %v6729_v42, %v5049_v45 }
  0xcf   :  { %3497 = vmatpush.bf16.msrb.mxu2 %v5212_v11  ;;  %v5305_v50 = vld [vmem:[#allocation5 + $0x730] sm:$0xf0]  ;;  %v6693_v54 = vld [vmem:[#allocation5 + $0x404] sm:$0xf]  ;;  %v5180_v58 = vor.u32 %v6761_v46, %v5177_v47 }
  0xd0   :  { %3510 = vmatpush.bf16.msrb.mxu3 %v5340_v21  ;;  %v4905_v55 = vld [vmem:[#allocation5 + $0x410] sm:$0xf0]  ;;  %v6725_v59 = vld [vmem:[#allocation5 + $0x504] sm:$0xf]  ;;  %v5308_v63 = vor.u32 %v6793_v49, %v5305_v50 }
  0xd1   :  { %3472 = vmatpush.bf16.msrb.mxu0 %v4940_v32  ;;  %v5033_v60 = vld [vmem:[#allocation5 + $0x510] sm:$0xf0]  ;;  %v6757_v61 = vld [vmem:[#allocation5 + $0x604] sm:$0xf]  ;;  %v4908_v6 = vor.u32 %v6693_v54, %v4905_v55  ;;  %v3244_v29 = vpop.f32.mrf.mxu2 }
  0xd2   :  { %3485 = vmatpush.bf16.msrb.mxu1 %v5068_v35  ;;  %v5161_v0 = vld [vmem:[#allocation5 + $0x610] sm:$0xf0]  ;;  %v6789_v1 = vld [vmem:[#allocation5 + $0x704] sm:$0xf]  ;;  %v5036_v14 = vor.u32 %v6725_v59, %v5033_v60 }
  0xd3   :  { %3498 = vmatpush.bf16.msrb.mxu2 %v5196_v36  ;;  %v5289_v2 = vld [vmem:[#allocation5 + $0x710] sm:$0xf0]  ;;  %v6849_v3 = vld [vmem:[#allocation5 + $0x8e4] sm:$0xf]  ;;  %v5164_v16 = vor.u32 %v6757_v61, %v5161_v0  ;;  %v3257_v36 = vpop.f32.mrf.mxu3 }
  0xd4   :  { %3511 = vmatpush.bf16.msrb.mxu3 %v5324_v44  ;;  %v5529_v4 = vld [vmem:[#allocation5 + $0x8f0] sm:$0xf0]  ;;  %v6881_v5 = vld [vmem:[#allocation5 + $0x9e4] sm:$0xf]  ;;  %v5292_v24 = vor.u32 %v6789_v1, %v5289_v2 }
  0xd5   :  { %3473 = vmatpush.bf16.msrb.mxu0 %v4924_v53  ;;  %v5657_v7 = vld [vmem:[#allocation5 + $0x9f0] sm:$0xf0]  ;;  %v6913_v10 = vld [vmem:[#allocation5 + $0xae4] sm:$0xf]  ;;  %v5532_v28 = vor.u32 %v6849_v3, %v5529_v4 }
  0xd6   :  { %v5785_v11 = vld [vmem:[#allocation5 + $0xaf0] sm:$0xf0]  ;;  %3486 = vmatpush.bf16.msrb.mxu1 %v5052_v57  ;;  %v6945_v17 = vld [vmem:[#allocation5 + $0xbe4] sm:$0xf]  ;;  %v5660_v30 = vor.u32 %v6881_v5, %v5657_v7 }
  0xd7   :  { %3499 = vmatpush.bf16.msrb.mxu2 %v5180_v58  ;;  %v5913_v21 = vld [vmem:[#allocation5 + $0xbf0] sm:$0xf0]  ;;  %v5788_v31 = vor.u32 %v6913_v10, %v5785_v11  ;;  %v6845_v32 = vld [vmem:[#allocation5 + $0x8c4] sm:$0xf] }
  0xd8   :  { %3512 = vmatpush.bf16.msrb.mxu3 %v5308_v63  ;;  %v5513_v33 = vld [vmem:[#allocation5 + $0x8d0] sm:$0xf0]  ;;  %v6877_v35 = vld [vmem:[#allocation5 + $0x9c4] sm:$0xf]  ;;  %v5916_v39 = vor.u32 %v6945_v17, %v5913_v21 }
  0xd9   :  { %3474 = vmatpush.bf16.msrb.mxu0 %v4908_v6  ;;  %v5641_v41 = vld [vmem:[#allocation5 + $0x9d0] sm:$0xf0]  ;;  %v6909_v42 = vld [vmem:[#allocation5 + $0xac4] sm:$0xf]  ;;  %v5516_v46 = vor.u32 %v6845_v32, %v5513_v33 }
  0xda   :  { %v5769_v43 = vld [vmem:[#allocation5 + $0xad0] sm:$0xf0]  ;;  %3487 = vmatpush.bf16.msrb.mxu1 %v5036_v14  ;;  %v6941_v44 = vld [vmem:[#allocation5 + $0xbc4] sm:$0xf]  ;;  %v5644_v47 = vor.u32 %v6877_v35, %v5641_v41 }
  0xdb   :  { %3500 = vmatpush.bf16.msrb.mxu2 %v5164_v16  ;;  %v5897_v45 = vld [vmem:[#allocation5 + $0xbd0] sm:$0xf0]  ;;  %v5772_v48 = vor.u32 %v6909_v42, %v5769_v43  ;;  %v6841_v49 = vld [vmem:[#allocation5 + $0x8a4] sm:$0xf] }
  0xdc   :  { %3513 = vmatpush.bf16.msrb.mxu3 %v5292_v24  ;;  %v5497_v50 = vld [vmem:[#allocation5 + $0x8b0] sm:$0xf0]  ;;  %v6873_v51 = vld [vmem:[#allocation5 + $0x9a4] sm:$0xf]  ;;  %v5900_v52 = vor.u32 %v6941_v44, %v5897_v45  ;;  %3475 = vmatmul.bf16.vlgmr.msrb.gmra.mxu0 %v7347_v37  ;;  %v3281_v24 = vpop.f32.mrf.mxu1 }
  0xdd   :  { %3519 = vmatpush.bf16.msra.mxu0 %v5532_v28  ;;  %v5625_v53 = vld [vmem:[#allocation5 + $0x9b0] sm:$0xf0]  ;;  %v6905_v54 = vld [vmem:[#allocation5 + $0xaa4] sm:$0xf]  ;;  %v5500_v58 = vor.u32 %v6841_v49, %v5497_v50  ;;  %3488 = vmatmul.bf16.vlgmr.msrb.gmra.mxu1 %v7351_v40  ;;  %v3268_v10 = vpop.f32.mrf.mxu0 }
  0xde   :  { %3532 = vmatpush.bf16.msra.mxu1 %v5660_v30  ;;  %3501 = vmatmul.bf16.vlgmr.msrb.gmra.mxu2 %v7345_v34  ;;  %v5753_v55 = vld [vmem:[#allocation5 + $0xab0] sm:$0xf0]  ;;  %v6937_v56 = vld [vmem:[#allocation5 + $0xba4] sm:$0xf]  ;;  %v5628_v59 = vor.u32 %v6873_v51, %v5625_v53  ;;  %v3269_v21 = vadd.f32 %v3268_v10, %v7385_v62 }
  0xdf   :  { %3545 = vmatpush.bf16.msra.mxu2 %v5788_v31  ;;  %v5881_v57 = vld [vmem:[#allocation5 + $0xbb0] sm:$0xf0]  ;;  %3514 = vmatmul.bf16.vlgmr.msrb.gmra.mxu3 %v7349_v38  ;;  %v5756_v60 = vor.u32 %v6905_v54, %v5753_v55  ;;  %v6837_v61 = vld [vmem:[#allocation5 + $0x884] sm:$0xf] }
  0xe0   :  { %3558 = vmatpush.bf16.msra.mxu3 %v5916_v39  ;;  %v5481_v63 = vld [vmem:[#allocation5 + $0x890] sm:$0xf0]  ;;  %v6869_v0 = vld [vmem:[#allocation5 + $0x984] sm:$0xf]  ;;  %v5884_v1 = vor.u32 %v6937_v56, %v5881_v57  ;;  %v3282_v35 = vadd.f32 %v3281_v24, %v3269_v21  ;;  %v3307_v50 = vpop.f32.mrf.mxu3 }
  0xe1   :  { %3520 = vmatpush.bf16.msra.mxu0 %v5516_v46  ;;  %v5609_v2 = vld [vmem:[#allocation5 + $0x990] sm:$0xf0]  ;;  %v6901_v3 = vld [vmem:[#allocation5 + $0xa84] sm:$0xf]  ;;  %v5484_v7 = vor.u32 %v6837_v61, %v5481_v63 }
  0xe2   :  { %3533 = vmatpush.bf16.msra.mxu1 %v5644_v47  ;;  %v5737_v4 = vld [vmem:[#allocation5 + $0xa90] sm:$0xf0]  ;;  %v6933_v5 = vld [vmem:[#allocation5 + $0xb84] sm:$0xf]  ;;  %v5612_v11 = vor.u32 %v6869_v0, %v5609_v2  ;;  %v3294_v45 = vpop.f32.mrf.mxu2 }
  0xe3   :  { %3546 = vmatpush.bf16.msra.mxu2 %v5772_v48  ;;  %v5865_v6 = vld [vmem:[#allocation5 + $0xb90] sm:$0xf0]  ;;  %v5740_v12 = vor.u32 %v6901_v3, %v5737_v4  ;;  %v6833_v14 = vld [vmem:[#allocation5 + $0x864] sm:$0xf]  ;;  %v3295_v49 = vadd.f32 %v3294_v45, %v3282_v35 }
  0xe4   :  { %3559 = vmatpush.bf16.msra.mxu3 %v5900_v52  ;;  %v5465_v16 = vld [vmem:[#allocation5 + $0x870] sm:$0xf0]  ;;  %v6865_v17 = vld [vmem:[#allocation5 + $0x964] sm:$0xf]  ;;  %v5868_v28 = vor.u32 %v6933_v5, %v5865_v6  ;;  %v3283_v61 = vpop.f32.mrf.mxu1 }
  0xe5   :  { %3521 = vmatpush.bf16.msra.mxu0 %v5500_v58  ;;  %v5593_v29 = vld [vmem:[#allocation5 + $0x970] sm:$0xf0]  ;;  %v6897_v30 = vld [vmem:[#allocation5 + $0xa64] sm:$0xf]  ;;  %v5468_v36 = vor.u32 %v6833_v14, %v5465_v16  ;;  %v7392_v54 = vadd.f32 %v3307_v50, %v3295_v49  ;;  %v3270_v55 = vpop.f32.mrf.mxu0 }
  0xe6   :  { %3534 = vmatpush.bf16.msra.mxu1 %v5628_v59  ;;  %v5721_v31 = vld [vmem:[#allocation5 + $0xa70] sm:$0xf0]  ;;  %v6929_v32 = vld [vmem:[#allocation5 + $0xb64] sm:$0xf]  ;;  %v5596_v39 = vor.u32 %v6865_v17, %v5593_v29 }
  0xe7   :  { %3547 = vmatpush.bf16.msra.mxu2 %v5756_v60  ;;  %v5849_v33 = vld [vmem:[#allocation5 + $0xb70] sm:$0xf0]  ;;  %v5724_v41 = vor.u32 %v6897_v30, %v5721_v31  ;;  %v6829_v42 = vld [vmem:[#allocation5 + $0x844] sm:$0xf] }
  0xe8   :  { %3560 = vmatpush.bf16.msra.mxu3 %v5884_v1  ;;  %v5449_v43 = vld [vmem:[#allocation5 + $0x850] sm:$0xf0]  ;;  %v6861_v44 = vld [vmem:[#allocation5 + $0x944] sm:$0xf]  ;;  %v5852_v62 = vor.u32 %v6929_v32, %v5849_v33  ;;  %v3309_v30 = vpop.f32.mrf.mxu3 }
  0xe9   :  { %3522 = vmatpush.bf16.msra.mxu0 %v5484_v7  ;;  %v5577_v46 = vld [vmem:[#allocation5 + $0x950] sm:$0xf0]  ;;  %v6893_v47 = vld [vmem:[#allocation5 + $0xa44] sm:$0xf]  ;;  %v5452_v53 = vor.u32 %v6829_v42, %v5449_v43 }
  0xea   :  { %3535 = vmatpush.bf16.msra.mxu1 %v5612_v11  ;;  %v5705_v48 = vld [vmem:[#allocation5 + $0xa50] sm:$0xf0]  ;;  %v6925_v51 = vld [vmem:[#allocation5 + $0xb44] sm:$0xf]  ;;  %v5580_v56 = vor.u32 %v6861_v44, %v5577_v46  ;;  %v3296_v17 = vpop.f32.mrf.mxu2 }
  0xeb   :  { %3548 = vmatpush.bf16.msra.mxu2 %v5740_v12  ;;  %v5833_v52 = vld [vmem:[#allocation5 + $0xb50] sm:$0xf0]  ;;  %v5708_v57 = vor.u32 %v6893_v47, %v5705_v48  ;;  %v6825_v58 = vld [vmem:[#allocation5 + $0x824] sm:$0xf] }
  0xec   :  { %3561 = vmatpush.bf16.msra.mxu3 %v5868_v28  ;;  %v5433_v59 = vld [vmem:[#allocation5 + $0x830] sm:$0xf0]  ;;  %v6857_v60 = vld [vmem:[#allocation5 + $0x924] sm:$0xf]  ;;  %v5836_v63 = vor.u32 %v6925_v51, %v5833_v52 }
  0xed   :  { %3523 = vmatpush.bf16.msra.mxu0 %v5468_v36  ;;  %v5561_v0 = vld [vmem:[#allocation5 + $0x930] sm:$0xf0]  ;;  %v6889_v1 = vld [vmem:[#allocation5 + $0xa24] sm:$0xf]  ;;  %v5436_v5 = vor.u32 %v6825_v58, %v5433_v59 }
  0xee   :  { %3536 = vmatpush.bf16.msra.mxu1 %v5596_v39  ;;  %v5689_v2 = vld [vmem:[#allocation5 + $0xa30] sm:$0xf0]  ;;  %v6921_v3 = vld [vmem:[#allocation5 + $0xb24] sm:$0xf]  ;;  %v5564_v10 = vor.u32 %v6857_v60, %v5561_v0 }
  0xef   :  { %3549 = vmatpush.bf16.msra.mxu2 %v5724_v41  ;;  %v5817_v4 = vld [vmem:[#allocation5 + $0xb30] sm:$0xf0]  ;;  %v6821_v6 = vld [vmem:[#allocation5 + $0x804] sm:$0xf]  ;;  %v5692_v11 = vor.u32 %v6889_v1, %v5689_v2 }
  0xf0   :  { %3562 = vmatpush.bf16.msra.mxu3 %v5852_v62  ;;  %v5417_v7 = vld [vmem:[#allocation5 + $0x810] sm:$0xf0]  ;;  %v6853_v12 = vld [vmem:[#allocation5 + $0x904] sm:$0xf]  ;;  %v5820_v21 = vor.u32 %v6921_v3, %v5817_v4 }
  0xf1   :  { %3524 = vmatpush.bf16.msra.mxu0 %v5452_v53  ;;  %v5545_v14 = vld [vmem:[#allocation5 + $0x910] sm:$0xf0]  ;;  %v6885_v16 = vld [vmem:[#allocation5 + $0xa04] sm:$0xf]  ;;  %v5420_v35 = vor.u32 %v6821_v6, %v5417_v7 }
  0xf2   :  { %3537 = vmatpush.bf16.msra.mxu1 %v5580_v56  ;;  %v5673_v24 = vld [vmem:[#allocation5 + $0xa10] sm:$0xf0]  ;;  %v6917_v28 = vld [vmem:[#allocation5 + $0xb04] sm:$0xf]  ;;  %v5548_v42 = vor.u32 %v6853_v12, %v5545_v14 }
  0xf3   :  { %3550 = vmatpush.bf16.msra.mxu2 %v5708_v57  ;;  %v5801_v29 = vld [vmem:[#allocation5 + $0xb10] sm:$0xf0]  ;;  %v6977_v31 = vld [vmem:[#allocation5 + $0xce4] sm:$0xf]  ;;  %v5676_v43 = vor.u32 %v6885_v16, %v5673_v24 }
  0xf4   :  { %3563 = vmatpush.bf16.msra.mxu3 %v5836_v63  ;;  %v6041_v32 = vld [vmem:[#allocation5 + $0xcf0] sm:$0xf0]  ;;  %v7009_v33 = vld [vmem:[#allocation5 + $0xde4] sm:$0xf]  ;;  %v5804_v62 = vor.u32 %v6917_v28, %v5801_v29 }
  0xf5   :  { %3525 = vmatpush.bf16.msra.mxu0 %v5436_v5  ;;  %v6169_v36 = vld [vmem:[#allocation5 + $0xdf0] sm:$0xf0]  ;;  %v7041_v39 = vld [vmem:[#allocation5 + $0xee4] sm:$0xf]  ;;  %v6044_v46 = vor.u32 %v6977_v31, %v6041_v32 }
  0xf6   :  { %v6297_v41 = vld [vmem:[#allocation5 + $0xef0] sm:$0xf0]  ;;  %3538 = vmatpush.bf16.msra.mxu1 %v5564_v10  ;;  %v7073_v44 = vld [vmem:[#allocation5 + $0xfe4] sm:$0xf]  ;;  %v6172_v47 = vor.u32 %v7009_v33, %v6169_v36 }
  0xf7   :  { %3551 = vmatpush.bf16.msra.mxu2 %v5692_v11  ;;  %v6425_v45 = vld [vmem:[#allocation5 + $0xff0] sm:$0xf0]  ;;  %v6300_v48 = vor.u32 %v7041_v39, %v6297_v41  ;;  %v6973_v49 = vld [vmem:[#allocation5 + $0xcc4] sm:$0xf] }
  0xf8   :  { %3564 = vmatpush.bf16.msra.mxu3 %v5820_v21  ;;  %v6025_v50 = vld [vmem:[#allocation5 + $0xcd0] sm:$0xf0]  ;;  %v7005_v51 = vld [vmem:[#allocation5 + $0xdc4] sm:$0xf]  ;;  %v6428_v52 = vor.u32 %v7073_v44, %v6425_v45 }
  0xf9   :  { %3526 = vmatpush.bf16.msra.mxu0 %v5420_v35  ;;  %v6153_v53 = vld [vmem:[#allocation5 + $0xdd0] sm:$0xf0]  ;;  %v7037_v55 = vld [vmem:[#allocation5 + $0xec4] sm:$0xf]  ;;  %v6028_v59 = vor.u32 %v6973_v49, %v6025_v50  ;;  %v3333_v36 = vpop.f32.mrf.mxu1 }
  0xfa   :  { %v6281_v56 = vld [vmem:[#allocation5 + $0xed0] sm:$0xf0]  ;;  %3539 = vmatpush.bf16.msra.mxu1 %v5548_v42  ;;  %v7069_v57 = vld [vmem:[#allocation5 + $0xfc4] sm:$0xf]  ;;  %v6156_v60 = vor.u32 %v7005_v51, %v6153_v53 }
  0xfb   :  { %3552 = vmatpush.bf16.msra.mxu2 %v5676_v43  ;;  %v6409_v58 = vld [vmem:[#allocation5 + $0xfd0] sm:$0xf0]  ;;  %v6284_v61 = vor.u32 %v7037_v55, %v6281_v56  ;;  %v6969_v63 = vld [vmem:[#allocation5 + $0xca4] sm:$0xf] }
  0xfc   :  { %3565 = vmatpush.bf16.msra.mxu3 %v5804_v62  ;;  %v6009_v0 = vld [vmem:[#allocation5 + $0xcb0] sm:$0xf0]  ;;  %v7001_v1 = vld [vmem:[#allocation5 + $0xda4] sm:$0xf]  ;;  %3527 = vmatmul.bf16.vlgmr.msra.gmra.mxu0 %v7357_v18  ;;  %v6412_v2 = vor.u32 %v7069_v57, %v6409_v58 }
  0xfd   :  { %3571 = vmatpush.bf16.msrb.mxu0 %v6044_v46  ;;  %v6137_v3 = vld [vmem:[#allocation5 + $0xdb0] sm:$0xf0]  ;;  %v7033_v4 = vld [vmem:[#allocation5 + $0xea4] sm:$0xf]  ;;  %3540 = vmatmul.bf16.vlgmr.msra.gmra.mxu1 %v7361_v23  ;;  %v6012_v10 = vor.u32 %v6969_v63, %v6009_v0  ;;  %v3320_v30 = vpop.f32.mrf.mxu0 }
  0xfe   :  { %3584 = vmatpush.bf16.msrb.mxu1 %v6172_v47  ;;  %v6265_v5 = vld [vmem:[#allocation5 + $0xeb0] sm:$0xf0]  ;;  %3553 = vmatmul.bf16.vlgmr.msra.gmra.mxu2 %v7359_v22  ;;  %v7065_v6 = vld [vmem:[#allocation5 + $0xfa4] sm:$0xf]  ;;  %v6140_v11 = vor.u32 %v7001_v1, %v6137_v3  ;;  %v3321_v33 = vadd.f32 %v3320_v30, %v7392_v54 }
  0xff   :  { %3597 = vmatpush.bf16.msrb.mxu2 %v6300_v48  ;;  %v6393_v7 = vld [vmem:[#allocation5 + $0xfb0] sm:$0xf0]  ;;  %3566 = vmatmul.bf16.vlgmr.msra.gmra.mxu3 %v7363_v27  ;;  %v6268_v12 = vor.u32 %v7033_v4, %v6265_v5  ;;  %v6965_v14 = vld [vmem:[#allocation5 + $0xc84] sm:$0xf] }
 0x100   :  { %3610 = vmatpush.bf16.msrb.mxu3 %v6428_v52  ;;  %v5993_v16 = vld [vmem:[#allocation5 + $0xc90] sm:$0xf0]  ;;  %v6997_v17 = vld [vmem:[#allocation5 + $0xd84] sm:$0xf]  ;;  %v6396_v21 = vor.u32 %v7065_v6, %v6393_v7  ;;  %v3334_v62 = vadd.f32 %v3333_v36, %v3321_v33 }
 0x101   :  { %3572 = vmatpush.bf16.msrb.mxu0 %v6028_v59  ;;  %v6121_v24 = vld [vmem:[#allocation5 + $0xd90] sm:$0xf0]  ;;  %v7029_v28 = vld [vmem:[#allocation5 + $0xe84] sm:$0xf]  ;;  %v5996_v35 = vor.u32 %v6965_v14, %v5993_v16  ;;  %v3359_v0 = vpop.f32.mrf.mxu3  ;;  %v3335_v5 = vpop.f32.mrf.mxu1 }
 0x102   :  { %3585 = vmatpush.bf16.msrb.mxu1 %v6156_v60  ;;  %v6249_v29 = vld [vmem:[#allocation5 + $0xe90] sm:$0xf0]  ;;  %v7061_v31 = vld [vmem:[#allocation5 + $0xf84] sm:$0xf]  ;;  %v6124_v39 = vor.u32 %v6997_v17, %v6121_v24  ;;  %v6656_v5 = vld [vmem:[#allocation5 + $0x2d4] sm:$0xf0] }
 0x103   :  { %3598 = vmatpush.bf16.msrb.mxu2 %v6284_v61  ;;  %v6377_v32 = vld [vmem:[#allocation5 + $0xf90] sm:$0xf0]  ;;  %v6252_v41 = vor.u32 %v7029_v28, %v6249_v29  ;;  %v6961_v42 = vld [vmem:[#allocation5 + $0xc64] sm:$0xf]  ;;  %v3346_v58 = vpop.f32.mrf.mxu2 }
 0x104   :  { %3611 = vmatpush.bf16.msrb.mxu3 %v6412_v2  ;;  %v5977_v43 = vld [vmem:[#allocation5 + $0xc70] sm:$0xf0]  ;;  %v6993_v44 = vld [vmem:[#allocation5 + $0xd64] sm:$0xf]  ;;  %v6380_v45 = vor.u32 %v7061_v31, %v6377_v32  ;;  %v3347_v63 = vadd.f32 %v3346_v58, %v3334_v62 }
 0x105   :  { %3573 = vmatpush.bf16.msrb.mxu0 %v6012_v10  ;;  %v6105_v46 = vld [vmem:[#allocation5 + $0xd70] sm:$0xf0]  ;;  %v7025_v47 = vld [vmem:[#allocation5 + $0xe64] sm:$0xf]  ;;  %v5980_v51 = vor.u32 %v6961_v42, %v5977_v43  ;;  %v3322_v3 = vpop.f32.mrf.mxu0 }
 0x106   :  { %3586 = vmatpush.bf16.msrb.mxu1 %v6140_v11  ;;  %v6233_v48 = vld [vmem:[#allocation5 + $0xe70] sm:$0xf0]  ;;  %v7057_v49 = vld [vmem:[#allocation5 + $0xf64] sm:$0xf]  ;;  %v6108_v54 = vor.u32 %v6993_v44, %v6105_v46  ;;  %v7399_v6 = vadd.f32 %v3359_v0, %v3347_v63  ;;  %v4511_v46 = vld [vmem:[#allocation5 + $0xe8] sm:$0xf] }
 0x107   :  { %3599 = vmatpush.bf16.msrb.mxu2 %v6268_v12  ;;  %v6361_v50 = vld [vmem:[#allocation5 + $0xf70] sm:$0xf0]  ;;  %v6236_v52 = vor.u32 %v7025_v47, %v6233_v48  ;;  %v6957_v53 = vld [vmem:[#allocation5 + $0xc44] sm:$0xf]  ;;  %v6596_v47 = vld [vmem:[#allocation5 + $0xf4] sm:$0xf0] }
 0x108   :  { %3612 = vmatpush.bf16.msrb.mxu3 %v6396_v21  ;;  %v5961_v55 = vld [vmem:[#allocation5 + $0xc50] sm:$0xf0]  ;;  %v6989_v56 = vld [vmem:[#allocation5 + $0xd44] sm:$0xf]  ;;  %v6364_v57 = vor.u32 %v7057_v49, %v6361_v50  ;;  %v4639_v48 = vld [vmem:[#allocation5 + $0x1e8] sm:$0xf] }
 0x109   :  { %3574 = vmatpush.bf16.msrb.mxu0 %v5996_v35  ;;  %v6089_v59 = vld [vmem:[#allocation5 + $0xd50] sm:$0xf0]  ;;  %v7021_v60 = vld [vmem:[#allocation5 + $0xe44] sm:$0xf]  ;;  %v5964_v4 = vor.u32 %v6957_v53, %v5961_v55  ;;  %v3361_v49 = vpop.f32.mrf.mxu3  ;;  %v4495_v63 = vld [vmem:[#allocation5 + $0xc8] sm:$0xf] }
 0x10a   :  { %3587 = vmatpush.bf16.msrb.mxu1 %v6124_v39  ;;  %v6217_v61 = vld [vmem:[#allocation5 + $0xe50] sm:$0xf0]  ;;  %v7053_v1 = vld [vmem:[#allocation5 + $0xf44] sm:$0xf]  ;;  %v6092_v7 = vor.u32 %v6989_v56, %v6089_v59  ;;  %v4895_v56 = vld [vmem:[#allocation5 + $0x3e8] sm:$0xf]  ;;  %v4512_v59 = vor.u32 %v6596_v47, %v4511_v46 }
 0x10b   :  { %3600 = vmatpush.bf16.msrb.mxu2 %v6252_v41  ;;  %v6345_v2 = vld [vmem:[#allocation5 + $0xf50] sm:$0xf0]  ;;  %v6220_v10 = vor.u32 %v7021_v60, %v6217_v61  ;;  %v6953_v11 = vld [vmem:[#allocation5 + $0xc24] sm:$0xf]  ;;  %v3348_v62 = vpop.f32.mrf.mxu2  ;;  %v6592_v0 = vld [vmem:[#allocation5 + $0xd4] sm:$0xf0] }
 0x10c   :  { %3613 = vmatpush.bf16.msrb.mxu3 %v6380_v45  ;;  %v5945_v12 = vld [vmem:[#allocation5 + $0xc30] sm:$0xf0]  ;;  %v6985_v14 = vld [vmem:[#allocation5 + $0xd24] sm:$0xf]  ;;  %v6348_v16 = vor.u32 %v7053_v1, %v6345_v2  ;;  %v4623_v1 = vld [vmem:[#allocation5 + $0x1c8] sm:$0xf] }
 0x10d   :  { %3575 = vmatpush.bf16.msrb.mxu0 %v5980_v51  ;;  %v6073_v17 = vld [vmem:[#allocation5 + $0xd30] sm:$0xf0]  ;;  %v7017_v21 = vld [vmem:[#allocation5 + $0xe24] sm:$0xf]  ;;  %v5948_v30 = vor.u32 %v6953_v11, %v5945_v12  ;;  %v6628_v51 = vld [vmem:[#allocation5 + $0x1f4] sm:$0xf0]  ;;  %v4496_v11 = vor.u32 %v6592_v0, %v4495_v63 }
 0x10e   :  { %3588 = vmatpush.bf16.msrb.mxu1 %v6108_v54  ;;  %v6201_v24 = vld [vmem:[#allocation5 + $0xe30] sm:$0xf0]  ;;  %v7049_v28 = vld [vmem:[#allocation5 + $0xf24] sm:$0xf]  ;;  %v6076_v33 = vor.u32 %v6985_v14, %v6073_v17  ;;  %v4767_v54 = vld [vmem:[#allocation5 + $0x2e8] sm:$0xf]  ;;  %v4640_v60 = vor.u32 %v6628_v51, %v4639_v48 }
 0x10f   :  { %3601 = vmatpush.bf16.msrb.mxu2 %v6236_v52  ;;  %v6329_v29 = vld [vmem:[#allocation5 + $0xf30] sm:$0xf0]  ;;  %v6949_v31 = vld [vmem:[#allocation5 + $0xc04] sm:$0xf]  ;;  %v6204_v35 = vor.u32 %v7017_v21, %v6201_v24  ;;  %v6660_v52 = vld [vmem:[#allocation5 + $0x2f4] sm:$0xf0] }
 0x110   :  { %3614 = vmatpush.bf16.msrb.mxu3 %v6364_v57  ;;  %v5929_v32 = vld [vmem:[#allocation5 + $0xc10] sm:$0xf0]  ;;  %v6981_v36 = vld [vmem:[#allocation5 + $0xd04] sm:$0xf]  ;;  %v6332_v42 = vor.u32 %v7049_v28, %v6329_v29  ;;  %v6692_v57 = vld [vmem:[#allocation5 + $0x3f4] sm:$0xf0]  ;;  %v4768_v61 = vor.u32 %v6660_v52, %v4767_v54 }
 0x111   :  { %3576 = vmatpush.bf16.msrb.mxu0 %v5964_v4  ;;  %v6057_v39 = vld [vmem:[#allocation5 + $0xd10] sm:$0xf0]  ;;  %v7013_v41 = vld [vmem:[#allocation5 + $0xe04] sm:$0xf]  ;;  %v5932_v50 = vor.u32 %v6949_v31, %v5929_v32  ;;  %v4896_v2 = vor.u32 %v6692_v57, %v4895_v56  ;;  %v6624_v3 = vld [vmem:[#allocation5 + $0x1d4] sm:$0xf0] }
 0x112   :  { %3589 = vmatpush.bf16.msrb.mxu1 %v6092_v7  ;;  %v6185_v43 = vld [vmem:[#allocation5 + $0xe10] sm:$0xf0]  ;;  %v7045_v44 = vld [vmem:[#allocation5 + $0xf04] sm:$0xf]  ;;  %v6060_v53 = vor.u32 %v6981_v36, %v6057_v39  ;;  %v4751_v4 = vld [vmem:[#allocation5 + $0x2c8] sm:$0xf]  ;;  %v4624_v12 = vor.u32 %v6624_v3, %v4623_v1 }
 0x113   :  { %3602 = vmatpush.bf16.msrb.mxu2 %v6220_v10  ;;  %v6313_v45 = vld [vmem:[#allocation5 + $0xf10] sm:$0xf0]  ;;  %v6188_v55 = vor.u32 %v7013_v41, %v6185_v43  ;;  %v4879_v7 = vld [vmem:[#allocation5 + $0x3c8] sm:$0xf]  ;;  %v6688_v10 = vld [vmem:[#allocation5 + $0x3d4] sm:$0xf0]  ;;  %v4752_v14 = vor.u32 %v6656_v5, %v4751_v4 }
 0x114   :  { %3615 = vmatpush.bf16.msrb.mxu3 %v6348_v16  ;;  %v6316_v58 = vor.u32 %v7045_v44, %v6313_v45  ;;  %v4479_v16 = vld [vmem:[#allocation5 + $0xa8] sm:$0xf]  ;;  %v6588_v17 = vld [vmem:[#allocation5 + $0xb4] sm:$0xf0]  ;;  %v4880_v24 = vor.u32 %v6688_v10, %v4879_v7 }
 0x115   :  { %3577 = vmatpush.bf16.msrb.mxu0 %v5948_v30  ;;  %v4607_v21 = vld [vmem:[#allocation5 + $0x1a8] sm:$0xf]  ;;  %v6620_v28 = vld [vmem:[#allocation5 + $0x1b4] sm:$0xf0] }
 0x116   :  { %3590 = vmatpush.bf16.msrb.mxu1 %v6076_v33  ;;  %v4735_v29 = vld [vmem:[#allocation5 + $0x2a8] sm:$0xf]  ;;  %v6652_v30 = vld [vmem:[#allocation5 + $0x2b4] sm:$0xf0]  ;;  %v4480_v33 = vor.u32 %v6588_v17, %v4479_v16 }
 0x117   :  { %3603 = vmatpush.bf16.msrb.mxu2 %v6204_v35  ;;  %v4863_v31 = vld [vmem:[#allocation5 + $0x3a8] sm:$0xf]  ;;  %v6684_v32 = vld [vmem:[#allocation5 + $0x3b4] sm:$0xf0]  ;;  %v4608_v35 = vor.u32 %v6620_v28, %v4607_v21  ;;  %v4736_v36 = vor.u32 %v6652_v30, %v4735_v29 }
 0x118   :  { %3616 = vmatpush.bf16.msrb.mxu3 %v6332_v42  ;;  %v4463_v39 = vld [vmem:[#allocation5 + $0x88] sm:$0xf]  ;;  %v6584_v41 = vld [vmem:[#allocation5 + $0x94] sm:$0xf0]  ;;  %v4864_v43 = vor.u32 %v6684_v32, %v4863_v31 }
 0x119   :  { %3578 = vmatpush.bf16.msrb.mxu0 %v5932_v50  ;;  %v4591_v42 = vld [vmem:[#allocation5 + $0x188] sm:$0xf]  ;;  %v6616_v44 = vld [vmem:[#allocation5 + $0x194] sm:$0xf0]  ;;  %v4464_v50 = vor.u32 %v6584_v41, %v4463_v39 }
 0x11a   :  { %3591 = vmatpush.bf16.msrb.mxu1 %v6060_v53  ;;  %v4719_v45 = vld [vmem:[#allocation5 + $0x288] sm:$0xf]  ;;  %v6648_v62 = vld [vmem:[#allocation5 + $0x294] sm:$0xf0]  ;;  %v3385_v51 = vpop.f32.mrf.mxu1  ;;  %v4592_v54 = vor.u32 %v6616_v44, %v4591_v42 }
 0x11b   :  { %3604 = vmatpush.bf16.msrb.mxu2 %v6188_v55  ;;  %v3372_v46 = vpop.f32.mrf.mxu0  ;;  %v4847_v47 = vld [vmem:[#allocation5 + $0x388] sm:$0xf]  ;;  %v6680_v48 = vld [vmem:[#allocation5 + $0x394] sm:$0xf0]  ;;  %v4720_v52 = vor.u32 %v6648_v62, %v4719_v45 }
 0x11c   :  { %3617 = vmatpush.bf16.msrb.mxu3 %v6316_v58  ;;  %3579 = vmatmul.bf16.vlgmr.msrb.gmra.mxu0 %v7369_v13  ;;  %v3373_v49 = vadd.f32 %v3372_v46, %v7399_v6  ;;  %v4447_v53 = vld [vmem:[#allocation5 + $0x68] sm:$0xf]  ;;  %v6580_v55 = vld [vmem:[#allocation5 + $0x74] sm:$0xf0]  ;;  %v4848_v57 = vor.u32 %v6680_v48, %v4847_v47 }
 0x11d   :  { %3623 = vmatpush.bf16.msra.mxu0 %v4512_v59  ;;  %3592 = vmatmul.bf16.vlgmr.msrb.gmra.mxu1 %v7373_v20  ;;  %v4575_v56 = vld [vmem:[#allocation5 + $0x168] sm:$0xf]  ;;  %v6612_v59 = vld [vmem:[#allocation5 + $0x174] sm:$0xf0]  ;;  %v4448_v1 = vor.u32 %v6580_v55, %v4447_v53 }
 0x11e   :  { %3636 = vmatpush.bf16.msra.mxu1 %v4640_v60  ;;  %3605 = vmatmul.bf16.vlgmr.msrb.gmra.mxu2 %v7371_v19  ;;  %v3386_v58 = vadd.f32 %v3385_v51, %v3373_v49  ;;  %v4703_v60 = vld [vmem:[#allocation5 + $0x268] sm:$0xf]  ;;  %v6676_v0 = vld [vmem:[#allocation5 + $0x374] sm:$0xf0]  ;;  %v4576_v6 = vor.u32 %v6612_v59, %v4575_v56 }
 0x11f   :  { %3649 = vmatpush.bf16.msra.mxu2 %v4768_v61  ;;  %3618 = vmatmul.bf16.vlgmr.msrb.gmra.mxu3 %v7375_v26  ;;  %v6644_v61 = vld [vmem:[#allocation5 + $0x274] sm:$0xf0]  ;;  %v4831_v63 = vld [vmem:[#allocation5 + $0x368] sm:$0xf] }
 0x120   :  { %3662 = vmatpush.bf16.msra.mxu3 %v4896_v2  ;;  %v4704_v2 = vor.u32 %v6644_v61, %v4703_v60  ;;  %v4431_v3 = vld [vmem:[#allocation5 + $0x48] sm:$0xf]  ;;  %v6576_v4 = vld [vmem:[#allocation5 + $0x54] sm:$0xf0]  ;;  %v4832_v7 = vor.u32 %v6676_v0, %v4831_v63 }
 0x121   :  { %3624 = vmatpush.bf16.msra.mxu0 %v4496_v11  ;;  %v4559_v5 = vld [vmem:[#allocation5 + $0x148] sm:$0xf]  ;;  %v6608_v11 = vld [vmem:[#allocation5 + $0x154] sm:$0xf0]  ;;  %v4432_v29 = vor.u32 %v6576_v4, %v4431_v3 }
 0x122   :  { %3637 = vmatpush.bf16.msra.mxu1 %v4624_v12  ;;  %v4687_v12 = vld [vmem:[#allocation5 + $0x248] sm:$0xf]  ;;  %v3411_v17 = vpop.f32.mrf.mxu3  ;;  %v3387_v30 = vpop.f32.mrf.mxu1  ;;  %v4560_v32 = vor.u32 %v6608_v11, %v4559_v5  ;;  %v6604_v42 = vld [vmem:[#allocation5 + $0x134] sm:$0xf0] }
 0x123   :  { %3650 = vmatpush.bf16.msra.mxu2 %v4752_v14  ;;  %v3398_v10 = vpop.f32.mrf.mxu2  ;;  %v6640_v14 = vld [vmem:[#allocation5 + $0x254] sm:$0xf0]  ;;  %v4815_v21 = vld [vmem:[#allocation5 + $0x348] sm:$0xf]  ;;  %v3374_v28 = vpop.f32.mrf.mxu0 }
 0x124   :  { %3663 = vmatpush.bf16.msra.mxu3 %v4880_v24  ;;  %v3399_v16 = vadd.f32 %v3398_v10, %v3386_v58  ;;  %v6672_v24 = vld [vmem:[#allocation5 + $0x354] sm:$0xf0]  ;;  %v4543_v39 = vld [vmem:[#allocation5 + $0x128] sm:$0xf] }
 0x125   :  { %3625 = vmatpush.bf16.msra.mxu0 %v4480_v33  ;;  %v4688_v33 = vor.u32 %v6640_v14, %v4687_v12  ;;  %v4816_v41 = vor.u32 %v6672_v24, %v4815_v21  ;;  %v6636_v44 = vld [vmem:[#allocation5 + $0x234] sm:$0xf0]  ;;  %v4799_v45 = vld [vmem:[#allocation5 + $0x328] sm:$0xf]  ;;  %v4544_v49 = vor.u32 %v6604_v42, %v4543_v39 }
 0x126   :  { %3638 = vmatpush.bf16.msra.mxu1 %v4608_v35  ;;  %v7406_v31 = vadd.f32 %v3411_v17, %v3399_v16  ;;  %v4415_v35 = vld [vmem:[#allocation5 + $0x28] sm:$0xf]  ;;  %v6668_v62 = vld [vmem:[#allocation5 + $0x334] sm:$0xf0] }
 0x127   :  { %3651 = vmatpush.bf16.msra.mxu2 %v4736_v36  ;;  %v6572_v36 = vld [vmem:[#allocation5 + $0x34] sm:$0xf0]  ;;  %v4399_v47 = vld [vmem:[#allocation5 + $0x8] sm:$0xf]  ;;  %v4800_v53 = vor.u32 %v6668_v62, %v4799_v45 }
 0x128   :  { %3664 = vmatpush.bf16.msra.mxu3 %v4864_v43  ;;  %v4671_v43 = vld [vmem:[#allocation5 + $0x228] sm:$0xf]  ;;  %v4416_v46 = vor.u32 %v6572_v36, %v4415_v35  ;;  %v6568_v48 = vld [vmem:[#allocation5 + $0x14] sm:$0xf0] }
 0x129   :  { %3626 = vmatpush.bf16.msra.mxu0 %v4464_v50  ;;  %v4672_v50 = vor.u32 %v6636_v44, %v4671_v43  ;;  %v4527_v51 = vld [vmem:[#allocation5 + $0x108] sm:$0xf]  ;;  %v6632_v55 = vld [vmem:[#allocation5 + $0x214] sm:$0xf0]  ;;  %v4400_v0 = vor.u32 %v6568_v48, %v4399_v47 }
 0x12a   :  { %3639 = vmatpush.bf16.msra.mxu1 %v4592_v54  ;;  %v6600_v54 = vld [vmem:[#allocation5 + $0x114] sm:$0xf0]  ;;  %v4783_v56 = vld [vmem:[#allocation5 + $0x308] sm:$0xf]  ;;  %v3413_v63 = vpop.f32.mrf.mxu3 }
 0x12b   :  { %3652 = vmatpush.bf16.msra.mxu2 %v4720_v52  ;;  %v4655_v52 = vld [vmem:[#allocation5 + $0x208] sm:$0xf]  ;;  %v3400_v58 = vpop.f32.mrf.mxu2  ;;  %v6724_v60 = vld [vmem:[#allocation5 + $0x4f4] sm:$0xf0]  ;;  %v4528_v3 = vor.u32 %v6600_v54, %v4527_v51 }
 0x12c   :  { %3665 = vmatpush.bf16.msra.mxu3 %v4848_v57  ;;  %v6664_v57 = vld [vmem:[#allocation5 + $0x314] sm:$0xf0]  ;;  %v5023_v59 = vld [vmem:[#allocation5 + $0x4e8] sm:$0xf]  ;;  %v4656_v4 = vor.u32 %v6632_v55, %v4655_v52  ;;  %v7124_v55 = vld [vmem:[#allocation7] sm:$0xf] }
 0x12d   :  { %3627 = vmatpush.bf16.msra.mxu0 %v4448_v1  ;;  %v5151_v61 = vld [vmem:[#allocation5 + $0x5e8] sm:$0xf]  ;;  %v6756_v1 = vld [vmem:[#allocation5 + $0x5f4] sm:$0xf0]  ;;  %v4784_v10 = vor.u32 %v6664_v57, %v4783_v56  ;;  %v5024_v11 = vor.u32 %v6724_v60, %v5023_v59  ;;  %v640_v56 = vperm.slane %v7124_v55, 1 }
 0x12e   :  { %3640 = vmatpush.bf16.msra.mxu1 %v4576_v6  ;;  %v5279_v6 = vld [vmem:[#allocation5 + $0x6e8] sm:$0xf]  ;;  %v5152_v12 = vor.u32 %v6756_v1, %v5151_v61  ;;  %v6720_v17 = vld [vmem:[#allocation5 + $0x4d4] sm:$0xf0] }
 0x12f   :  { %3653 = vmatpush.bf16.msra.mxu2 %v4704_v2  ;;  %v6788_v2 = vld [vmem:[#allocation5 + $0x6f4] sm:$0xf0]  ;;  %v5407_v5 = vld [vmem:[#allocation5 + $0x7e8] sm:$0xf] }
 0x130   :  { %3666 = vmatpush.bf16.msra.mxu3 %v4832_v7  ;;  %v6820_v7 = vld [vmem:[#allocation5 + $0x7f4] sm:$0xf0]  ;;  %v5280_v14 = vor.u32 %v6788_v2, %v5279_v6  ;;  %v5007_v16 = vld [vmem:[#allocation5 + $0x4c8] sm:$0xf] }
 0x131   :  { %3628 = vmatpush.bf16.msra.mxu0 %v4432_v29  ;;  %v5135_v21 = vld [vmem:[#allocation5 + $0x5c8] sm:$0xf]  ;;  %v5408_v24 = vor.u32 %v6820_v7, %v5407_v5  ;;  %v6752_v28 = vld [vmem:[#allocation5 + $0x5d4] sm:$0xf0]  ;;  %v5008_v35 = vor.u32 %v6720_v17, %v5007_v16 }
 0x132   :  { %3641 = vmatpush.bf16.msra.mxu1 %v4560_v32  ;;  %v5263_v29 = vld [vmem:[#allocation5 + $0x6c8] sm:$0xf]  ;;  %v6784_v30 = vld [vmem:[#allocation5 + $0x6d4] sm:$0xf0]  ;;  %v5136_v36 = vor.u32 %v6752_v28, %v5135_v21 }
 0x133   :  { %3654 = vmatpush.bf16.msra.mxu2 %v4688_v33  ;;  %v5391_v32 = vld [vmem:[#allocation5 + $0x7c8] sm:$0xf]  ;;  %v6816_v33 = vld [vmem:[#allocation5 + $0x7d4] sm:$0xf0]  ;;  %v5264_v39 = vor.u32 %v6784_v30, %v5263_v29 }
 0x134   :  { %3667 = vmatpush.bf16.msra.mxu3 %v4816_v41  ;;  %v4991_v41 = vld [vmem:[#allocation5 + $0x4a8] sm:$0xf]  ;;  %v6716_v42 = vld [vmem:[#allocation5 + $0x4b4] sm:$0xf0]  ;;  %v5392_v44 = vor.u32 %v6816_v33, %v5391_v32 }
 0x135   :  { %3629 = vmatpush.bf16.msra.mxu0 %v4416_v46  ;;  %v5119_v43 = vld [vmem:[#allocation5 + $0x5a8] sm:$0xf]  ;;  %v6748_v45 = vld [vmem:[#allocation5 + $0x5b4] sm:$0xf0] }
 0x136   :  { %3642 = vmatpush.bf16.msra.mxu1 %v4544_v49  ;;  %v5247_v62 = vld [vmem:[#allocation5 + $0x6a8] sm:$0xf]  ;;  %v6780_v46 = vld [vmem:[#allocation5 + $0x6b4] sm:$0xf0]  ;;  %v4992_v49 = vor.u32 %v6716_v42, %v4991_v41  ;;  %v5120_v51 = vor.u32 %v6748_v45, %v5119_v43 }
 0x137   :  { %3655 = vmatpush.bf16.msra.mxu2 %v4672_v50  ;;  %v5375_v47 = vld [vmem:[#allocation5 + $0x7a8] sm:$0xf]  ;;  %v6812_v48 = vld [vmem:[#allocation5 + $0x7b4] sm:$0xf0]  ;;  %v5248_v54 = vor.u32 %v6780_v46, %v5247_v62 }
 0x138   :  { %3668 = vmatpush.bf16.msra.mxu3 %v4800_v53  ;;  %v4975_v50 = vld [vmem:[#allocation5 + $0x488] sm:$0xf]  ;;  %v6712_v52 = vld [vmem:[#allocation5 + $0x494] sm:$0xf0]  ;;  %v5376_v57 = vor.u32 %v6812_v48, %v5375_v47 }
 0x139   :  { %3630 = vmatpush.bf16.msra.mxu0 %v4400_v0  ;;  %v5103_v53 = vld [vmem:[#allocation5 + $0x588] sm:$0xf]  ;;  %v6744_v58 = vld [vmem:[#allocation5 + $0x594] sm:$0xf0]  ;;  %v4976_v0 = vor.u32 %v6712_v52, %v4975_v50  ;;  %v3424_v1 = vpop.f32.mrf.mxu0 }
 0x13a   :  { %3643 = vmatpush.bf16.msra.mxu1 %v4528_v3  ;;  %v5231_v59 = vld [vmem:[#allocation5 + $0x688] sm:$0xf]  ;;  %v6776_v60 = vld [vmem:[#allocation5 + $0x694] sm:$0xf0]  ;;  %v5104_v6 = vor.u32 %v6744_v58, %v5103_v53  ;;  %v3425_v7 = vadd.f32 %v3424_v1, %v640_v56 }
 0x13b   :  { %3656 = vmatpush.bf16.msra.mxu2 %v4656_v4  ;;  %v5359_v61 = vld [vmem:[#allocation5 + $0x788] sm:$0xf]  ;;  %v6808_v63 = vld [vmem:[#allocation5 + $0x794] sm:$0xf0]  ;;  %v5232_v2 = vor.u32 %v6776_v60, %v5231_v59 }
 0x13c   :  { %3669 = vmatpush.bf16.msra.mxu3 %v4784_v10  ;;  %3631 = vmatmul.bf16.vlgmr.msra.gmra.mxu0 %v7335_v9  ;;  %v4959_v3 = vld [vmem:[#allocation5 + $0x468] sm:$0xf]  ;;  %v6708_v4 = vld [vmem:[#allocation5 + $0x474] sm:$0xf0]  ;;  %v3437_v10 = vpop.f32.mrf.mxu1 }
 0x13d   :  { %3675 = vmatpush.bf16.msrb.mxu0 %v5024_v11  ;;  %3644 = vmatmul.bf16.vlgmr.msra.gmra.mxu1 %v7342_v25  ;;  %v5087_v5 = vld [vmem:[#allocation5 + $0x568] sm:$0xf]  ;;  %v5360_v11 = vor.u32 %v6808_v63, %v5359_v61  ;;  %v6772_v16 = vld [vmem:[#allocation5 + $0x674] sm:$0xf0]  ;;  %v4960_v28 = vor.u32 %v6708_v4, %v4959_v3 }
 0x13e   :  { %3688 = vmatpush.bf16.msrb.mxu1 %v5152_v12  ;;  %3657 = vmatmul.bf16.vlgmr.msra.gmra.mxu2 %v7333_v8  ;;  %v6740_v12 = vld [vmem:[#allocation5 + $0x574] sm:$0xf0]  ;;  %v5343_v17 = vld [vmem:[#allocation5 + $0x768] sm:$0xf] }
 0x13f   :  { %3701 = vmatpush.bf16.msrb.mxu2 %v5280_v14  ;;  %3670 = vmatmul.bf16.vlgmr.msra.gmra.mxu3 %v7337_v15  ;;  %v5215_v14 = vld [vmem:[#allocation5 + $0x668] sm:$0xf]  ;;  %v6804_v21 = vld [vmem:[#allocation5 + $0x774] sm:$0xf0]  ;;  %v5088_v29 = vor.u32 %v6740_v12, %v5087_v5 }
 0x140   :  { %3714 = vmatpush.bf16.msrb.mxu3 %v5408_v24  ;;  %v3438_v24 = vadd.f32 %v3437_v10, %v3425_v7  ;;  %v5216_v30 = vor.u32 %v6772_v16, %v5215_v14  ;;  %v4943_v32 = vld [vmem:[#allocation5 + $0x448] sm:$0xf]  ;;  %v6704_v33 = vld [vmem:[#allocation5 + $0x454] sm:$0xf0] }
 0x141   :  { %3676 = vmatpush.bf16.msrb.mxu0 %v5008_v35  ;;  %v5071_v35 = vld [vmem:[#allocation5 + $0x548] sm:$0xf]  ;;  %v6736_v41 = vld [vmem:[#allocation5 + $0x554] sm:$0xf0]  ;;  %v4944_v47 = vor.u32 %v6704_v33, %v4943_v32 }
 0x142   :  { %3689 = vmatpush.bf16.msrb.mxu1 %v5136_v36  ;;  %v3450_v36 = vpop.f32.mrf.mxu2  ;;  %v5199_v42 = vld [vmem:[#allocation5 + $0x648] sm:$0xf]  ;;  %v6768_v43 = vld [vmem:[#allocation5 + $0x654] sm:$0xf0]  ;;  %v3463_v45 = vpop.f32.mrf.mxu3  ;;  %v5072_v50 = vor.u32 %v6736_v41, %v5071_v35 }
 0x143   :  { %3702 = vmatpush.bf16.msrb.mxu2 %v5264_v39  ;;  %v5344_v39 = vor.u32 %v6804_v21, %v5343_v17  ;;  %v5327_v62 = vld [vmem:[#allocation5 + $0x748] sm:$0xf]  ;;  %v6800_v46 = vld [vmem:[#allocation5 + $0x754] sm:$0xf0] }
 0x144   :  { %3715 = vmatpush.bf16.msrb.mxu3 %v5392_v44  ;;  %v3451_v44 = vadd.f32 %v3450_v36, %v3438_v24  ;;  %v6700_v52 = vld [vmem:[#allocation5 + $0x434] sm:$0xf0]  ;;  %v5055_v53 = vld [vmem:[#allocation5 + $0x528] sm:$0xf]  ;;  %v3439_v55 = vpop.f32.mrf.mxu1  ;;  %v5328_v56 = vor.u32 %v6800_v46, %v5327_v62 }
 0x145   :  { %3677 = vmatpush.bf16.msrb.mxu0 %v4992_v49  ;;  %v3426_v49 = vpop.f32.mrf.mxu0  ;;  %v5183_v58 = vld [vmem:[#allocation5 + $0x628] sm:$0xf]  ;;  %v6764_v59 = vld [vmem:[#allocation5 + $0x634] sm:$0xf0] }
 0x146   :  { %3690 = vmatpush.bf16.msrb.mxu1 %v5120_v51  ;;  %v7412_v48 = vadd.f32 %v3463_v45, %v3451_v44  ;;  %v5200_v51 = vor.u32 %v6768_v43, %v5199_v42  ;;  %v5311_v60 = vld [vmem:[#allocation5 + $0x728] sm:$0xf]  ;;  %v6796_v61 = vld [vmem:[#allocation5 + $0x734] sm:$0xf0] }
 0x147   :  { %3703 = vmatpush.bf16.msrb.mxu2 %v5248_v54  ;;  %v4927_v54 = vld [vmem:[#allocation5 + $0x428] sm:$0xf]  ;;  %v6696_v1 = vld [vmem:[#allocation5 + $0x414] sm:$0xf0]  ;;  %v5312_v10 = vor.u32 %v6796_v61, %v5311_v60 }
 0x148   :  { %3716 = vmatpush.bf16.msrb.mxu3 %v5376_v57  ;;  %v6732_v57 = vld [vmem:[#allocation5 + $0x534] sm:$0xf0]  ;;  %v4928_v63 = vor.u32 %v6700_v52, %v4927_v54  ;;  %v5039_v3 = vld [vmem:[#allocation5 + $0x508] sm:$0xf] }
 0x149   :  { %3678 = vmatpush.bf16.msrb.mxu0 %v4976_v0  ;;  %v4911_v0 = vld [vmem:[#allocation5 + $0x408] sm:$0xf]  ;;  %v6728_v4 = vld [vmem:[#allocation5 + $0x514] sm:$0xf0] }
 0x14a   :  { %3691 = vmatpush.bf16.msrb.mxu1 %v5104_v6  ;;  %v5056_v6 = vor.u32 %v6732_v57, %v5055_v53  ;;  %v5167_v5 = vld [vmem:[#allocation5 + $0x608] sm:$0xf]  ;;  %v3452_v7 = vpop.f32.mrf.mxu2  ;;  %v6792_v14 = vld [vmem:[#allocation5 + $0x714] sm:$0xf0]  ;;  %v3465_v16 = vpop.f32.mrf.mxu3  ;;  %v5040_v33 = vor.u32 %v6728_v4, %v5039_v3 }
 0x14b   :  { %3704 = vmatpush.bf16.msrb.mxu2 %v5232_v2  ;;  %v5184_v2 = vor.u32 %v6764_v59, %v5183_v58  ;;  %v5295_v12 = vld [vmem:[#allocation5 + $0x708] sm:$0xf]  ;;  %v6852_v21 = vld [vmem:[#allocation5 + $0x8f4] sm:$0xf0] }
 0x14c   :  { %3717 = vmatpush.bf16.msrb.mxu3 %v5360_v11  ;;  %v6760_v11 = vld [vmem:[#allocation5 + $0x614] sm:$0xf0]  ;;  %v5535_v17 = vld [vmem:[#allocation5 + $0x8e8] sm:$0xf]  ;;  %v5296_v41 = vor.u32 %v6792_v14, %v5295_v12 }
 0x14d   :  { %3679 = vmatpush.bf16.msrb.mxu0 %v4960_v28  ;;  %v5663_v24 = vld [vmem:[#allocation5 + $0x9e8] sm:$0xf]  ;;  %v4912_v28 = vor.u32 %v6696_v1, %v4911_v0  ;;  %v6916_v32 = vld [vmem:[#allocation5 + $0xaf4] sm:$0xf0]  ;;  %v5168_v35 = vor.u32 %v6760_v11, %v5167_v5  ;;  %v5536_v42 = vor.u32 %v6852_v21, %v5535_v17 }
 0x14e   :  { %3692 = vmatpush.bf16.msrb.mxu1 %v5088_v29  ;;  %v6884_v29 = vld [vmem:[#allocation5 + $0x9f4] sm:$0xf0]  ;;  %v5919_v36 = vld [vmem:[#allocation5 + $0xbe8] sm:$0xf] }
 0x14f   :  { %3705 = vmatpush.bf16.msrb.mxu2 %v5216_v30  ;;  %v5791_v30 = vld [vmem:[#allocation5 + $0xae8] sm:$0xf]  ;;  %v5664_v43 = vor.u32 %v6884_v29, %v5663_v24  ;;  %v6848_v62 = vld [vmem:[#allocation5 + $0x8d4] sm:$0xf0] }
 0x150   :  { %3718 = vmatpush.bf16.msrb.mxu3 %v5344_v39  ;;  %v6948_v39 = vld [vmem:[#allocation5 + $0xbf4] sm:$0xf0]  ;;  %v5792_v44 = vor.u32 %v6916_v32, %v5791_v30  ;;  %v5519_v45 = vld [vmem:[#allocation5 + $0x8c8] sm:$0xf] }
 0x151   :  { %3680 = vmatpush.bf16.msrb.mxu0 %v4944_v47  ;;  %v5647_v46 = vld [vmem:[#allocation5 + $0x9c8] sm:$0xf]  ;;  %v5920_v47 = vor.u32 %v6948_v39, %v5919_v36  ;;  %v6880_v49 = vld [vmem:[#allocation5 + $0x9d4] sm:$0xf0]  ;;  %v5520_v53 = vor.u32 %v6848_v62, %v5519_v45 }
 0x152   :  { %3693 = vmatpush.bf16.msrb.mxu1 %v5072_v50  ;;  %v5775_v50 = vld [vmem:[#allocation5 + $0xac8] sm:$0xf]  ;;  %v6944_v52 = vld [vmem:[#allocation5 + $0xbd4] sm:$0xf0]  ;;  %v5648_v55 = vor.u32 %v6880_v49, %v5647_v46 }
 0x153   :  { %3706 = vmatpush.bf16.msrb.mxu2 %v5200_v51  ;;  %v6912_v51 = vld [vmem:[#allocation5 + $0xad4] sm:$0xf0]  ;;  %v5903_v54 = vld [vmem:[#allocation5 + $0xbc8] sm:$0xf] }
 0x154   :  { %3719 = vmatpush.bf16.msrb.mxu3 %v5328_v56  ;;  %v5776_v56 = vor.u32 %v6912_v51, %v5775_v50  ;;  %v5503_v57 = vld [vmem:[#allocation5 + $0x8a8] sm:$0xf]  ;;  %v6844_v58 = vld [vmem:[#allocation5 + $0x8b4] sm:$0xf0]  ;;  %v5904_v60 = vor.u32 %v6944_v52, %v5903_v54 }
 0x155   :  { %3681 = vmatpush.bf16.msrb.mxu0 %v4928_v63  ;;  %v5631_v59 = vld [vmem:[#allocation5 + $0x9a8] sm:$0xf]  ;;  %v6876_v61 = vld [vmem:[#allocation5 + $0x9b4] sm:$0xf0] }
 0x156   :  { %3694 = vmatpush.bf16.msrb.mxu1 %v5056_v6  ;;  %v5759_v63 = vld [vmem:[#allocation5 + $0xaa8] sm:$0xf]  ;;  %v6908_v0 = vld [vmem:[#allocation5 + $0xab4] sm:$0xf0]  ;;  %v5632_v3 = vor.u32 %v6876_v61, %v5631_v59 }
 0x157   :  { %3707 = vmatpush.bf16.msrb.mxu2 %v5184_v2  ;;  %v5887_v1 = vld [vmem:[#allocation5 + $0xba8] sm:$0xf]  ;;  %v6940_v6 = vld [vmem:[#allocation5 + $0xbb4] sm:$0xf0]  ;;  %v5504_v2 = vor.u32 %v6844_v58, %v5503_v57  ;;  %v5760_v4 = vor.u32 %v6908_v0, %v5759_v63 }
 0x158   :  { %3720 = vmatpush.bf16.msrb.mxu3 %v5312_v10  ;;  %v5487_v5 = vld [vmem:[#allocation5 + $0x888] sm:$0xf]  ;;  %v6840_v7 = vld [vmem:[#allocation5 + $0x894] sm:$0xf0]  ;;  %v5888_v11 = vor.u32 %v6940_v6, %v5887_v1 }
 0x159   :  { %3682 = vmatpush.bf16.msrb.mxu0 %v4912_v28  ;;  %v5615_v10 = vld [vmem:[#allocation5 + $0x988] sm:$0xf]  ;;  %v6872_v12 = vld [vmem:[#allocation5 + $0x994] sm:$0xf0]  ;;  %v5488_v24 = vor.u32 %v6840_v7, %v5487_v5  ;;  %v3476_v28 = vpop.f32.mrf.mxu0 }
 0x15a   :  { %3695 = vmatpush.bf16.msrb.mxu1 %v5040_v33  ;;  %v5743_v14 = vld [vmem:[#allocation5 + $0xa88] sm:$0xf]  ;;  %v6904_v16 = vld [vmem:[#allocation5 + $0xa94] sm:$0xf0]  ;;  %v5616_v29 = vor.u32 %v6872_v12, %v5615_v10  ;;  %v3477_v36 = vadd.f32 %v3476_v28, %v7412_v48  ;;  %v3489_v39 = vpop.f32.mrf.mxu1 }
 0x15b   :  { %3708 = vmatpush.bf16.msrb.mxu2 %v5168_v35  ;;  %v5871_v17 = vld [vmem:[#allocation5 + $0xb88] sm:$0xf]  ;;  %v6936_v21 = vld [vmem:[#allocation5 + $0xb94] sm:$0xf0]  ;;  %v5744_v30 = vor.u32 %v6904_v16, %v5743_v14 }
 0x15c   :  { %3721 = vmatpush.bf16.msrb.mxu3 %v5296_v41  ;;  %3683 = vmatmul.bf16.vlgmr.msrb.gmra.mxu0 %v7347_v37  ;;  %v5471_v32 = vld [vmem:[#allocation5 + $0x868] sm:$0xf]  ;;  %v6836_v33 = vld [vmem:[#allocation5 + $0x874] sm:$0xf0]  ;;  %v5872_v41 = vor.u32 %v6936_v21, %v5871_v17  ;;  %v3490_v46 = vadd.f32 %v3489_v39, %v3477_v36 }
 0x15d   :  { %3727 = vmatpush.bf16.msra.mxu0 %v5536_v42  ;;  %3696 = vmatmul.bf16.vlgmr.msrb.gmra.mxu1 %v7351_v40  ;;  %v5599_v35 = vld [vmem:[#allocation5 + $0x968] sm:$0xf]  ;;  %v6868_v42 = vld [vmem:[#allocation5 + $0x974] sm:$0xf0] }
 0x15e   :  { %3740 = vmatpush.bf16.msra.mxu1 %v5664_v43  ;;  %3709 = vmatmul.bf16.vlgmr.msrb.gmra.mxu2 %v7345_v34  ;;  %v5727_v43 = vld [vmem:[#allocation5 + $0xa68] sm:$0xf]  ;;  %v6932_v62 = vld [vmem:[#allocation5 + $0xb74] sm:$0xf0]  ;;  %v5600_v49 = vor.u32 %v6868_v42, %v5599_v35 }
 0x15f   :  { %3753 = vmatpush.bf16.msra.mxu2 %v5792_v44  ;;  %3722 = vmatmul.bf16.vlgmr.msrb.gmra.mxu3 %v7349_v38  ;;  %v6900_v44 = vld [vmem:[#allocation5 + $0xa74] sm:$0xf0]  ;;  %v5855_v45 = vld [vmem:[#allocation5 + $0xb68] sm:$0xf] }
 0x160   :  { %3766 = vmatpush.bf16.msra.mxu3 %v5920_v47  ;;  %v5472_v47 = vor.u32 %v6836_v33, %v5471_v32  ;;  %v5728_v50 = vor.u32 %v6900_v44, %v5727_v43  ;;  %v5455_v51 = vld [vmem:[#allocation5 + $0x848] sm:$0xf]  ;;  %v6832_v54 = vld [vmem:[#allocation5 + $0x854] sm:$0xf0]  ;;  %v5856_v48 = vor.u32 %v6932_v62, %v5855_v45 }
 0x161   :  { %3728 = vmatpush.bf16.msra.mxu0 %v5520_v53  ;;  %v5583_v52 = vld [vmem:[#allocation5 + $0x948] sm:$0xf]  ;;  %v3502_v53 = vpop.f32.mrf.mxu2  ;;  %v6896_v57 = vld [vmem:[#allocation5 + $0xa54] sm:$0xf0]  ;;  %v5456_v63 = vor.u32 %v6832_v54, %v5455_v51  ;;  %v3478_v1 = vpop.f32.mrf.mxu0 }
 0x162   :  { %3741 = vmatpush.bf16.msra.mxu1 %v5648_v55  ;;  %v6864_v55 = vld [vmem:[#allocation5 + $0x954] sm:$0xf0]  ;;  %v3503_v58 = vadd.f32 %v3502_v53, %v3490_v46  ;;  %v3515_v59 = vpop.f32.mrf.mxu3  ;;  %v5567_v5 = vld [vmem:[#allocation5 + $0x928] sm:$0xf]  ;;  %v3491_v7 = vpop.f32.mrf.mxu1 }
 0x163   :  { %3754 = vmatpush.bf16.msra.mxu2 %v5776_v56  ;;  %v5711_v56 = vld [vmem:[#allocation5 + $0xa48] sm:$0xf]  ;;  %v6928_v61 = vld [vmem:[#allocation5 + $0xb54] sm:$0xf0]  ;;  %v5584_v6 = vor.u32 %v6864_v55, %v5583_v52 }
 0x164   :  { %3767 = vmatpush.bf16.msra.mxu3 %v5904_v60  ;;  %v5839_v60 = vld [vmem:[#allocation5 + $0xb48] sm:$0xf]  ;;  %v7419_v0 = vadd.f32 %v3515_v59, %v3503_v58  ;;  %v6892_v14 = vld [vmem:[#allocation5 + $0xa34] sm:$0xf0] }
 0x165   :  { %3729 = vmatpush.bf16.msra.mxu0 %v5504_v2  ;;  %v5712_v2 = vor.u32 %v6896_v57, %v5711_v56  ;;  %v5840_v10 = vor.u32 %v6928_v61, %v5839_v60  ;;  %v5695_v12 = vld [vmem:[#allocation5 + $0xa28] sm:$0xf]  ;;  %v6924_v17 = vld [vmem:[#allocation5 + $0xb34] sm:$0xf0] }
 0x166   :  { %3742 = vmatpush.bf16.msra.mxu1 %v5632_v3  ;;  %v5439_v3 = vld [vmem:[#allocation5 + $0x828] sm:$0xf]  ;;  %v6824_v28 = vld [vmem:[#allocation5 + $0x814] sm:$0xf0] }
 0x167   :  { %3755 = vmatpush.bf16.msra.mxu2 %v5760_v4  ;;  %v6828_v4 = vld [vmem:[#allocation5 + $0x834] sm:$0xf0]  ;;  %v5823_v16 = vld [vmem:[#allocation5 + $0xb28] sm:$0xf] }
 0x168   :  { %3768 = vmatpush.bf16.msra.mxu3 %v5888_v11  ;;  %v6860_v11 = vld [vmem:[#allocation5 + $0x934] sm:$0xf0]  ;;  %v5440_v21 = vor.u32 %v6828_v4, %v5439_v3  ;;  %v5551_v32 = vld [vmem:[#allocation5 + $0x908] sm:$0xf]  ;;  %v5824_v39 = vor.u32 %v6924_v17, %v5823_v16 }
 0x169   :  { %3730 = vmatpush.bf16.msra.mxu0 %v5488_v24  ;;  %v5423_v24 = vld [vmem:[#allocation5 + $0x808] sm:$0xf]  ;;  %v6856_v33 = vld [vmem:[#allocation5 + $0x914] sm:$0xf0]  ;;  %v3504_v36 = vpop.f32.mrf.mxu2 }
 0x16a   :  { %3743 = vmatpush.bf16.msra.mxu1 %v5616_v29  ;;  %v5568_v29 = vor.u32 %v6860_v11, %v5567_v5  ;;  %v5679_v35 = vld [vmem:[#allocation5 + $0xa08] sm:$0xf]  ;;  %v6920_v43 = vld [vmem:[#allocation5 + $0xb14] sm:$0xf0]  ;;  %v3517_v44 = vpop.f32.mrf.mxu3  ;;  %v5552_v54 = vor.u32 %v6856_v33, %v5551_v32 }
 0x16b   :  { %3756 = vmatpush.bf16.msra.mxu2 %v5744_v30  ;;  %v5696_v30 = vor.u32 %v6892_v14, %v5695_v12  ;;  %v5807_v42 = vld [vmem:[#allocation5 + $0xb08] sm:$0xf]  ;;  %v6980_v62 = vld [vmem:[#allocation5 + $0xcf4] sm:$0xf0] }
 0x16c   :  { %3769 = vmatpush.bf16.msra.mxu3 %v5872_v41  ;;  %v6888_v41 = vld [vmem:[#allocation5 + $0xa14] sm:$0xf0]  ;;  %v6047_v45 = vld [vmem:[#allocation5 + $0xce8] sm:$0xf]  ;;  %v5808_v55 = vor.u32 %v6920_v43, %v5807_v42 }
 0x16d   :  { %3731 = vmatpush.bf16.msra.mxu0 %v5472_v47  ;;  %v6175_v46 = vld [vmem:[#allocation5 + $0xde8] sm:$0xf]  ;;  %v5424_v47 = vor.u32 %v6824_v28, %v5423_v24  ;;  %v7044_v51 = vld [vmem:[#allocation5 + $0xef4] sm:$0xf0]  ;;  %v5680_v52 = vor.u32 %v6888_v41, %v5679_v35  ;;  %v6048_v56 = vor.u32 %v6980_v62, %v6047_v45 }
 0x16e   :  { %3744 = vmatpush.bf16.msra.mxu1 %v5600_v49  ;;  %v7012_v49 = vld [vmem:[#allocation5 + $0xdf4] sm:$0xf0]  ;;  %v6431_v53 = vld [vmem:[#allocation5 + $0xfe8] sm:$0xf] }
 0x16f   :  { %3757 = vmatpush.bf16.msra.mxu2 %v5728_v50  ;;  %v6303_v50 = vld [vmem:[#allocation5 + $0xee8] sm:$0xf]  ;;  %v6176_v57 = vor.u32 %v7012_v49, %v6175_v46  ;;  %v6976_v60 = vld [vmem:[#allocation5 + $0xcd4] sm:$0xf0] }
 0x170   :  { %3770 = vmatpush.bf16.msra.mxu3 %v5856_v48  ;;  %v7076_v48 = vld [vmem:[#allocation5 + $0xff4] sm:$0xf0]  ;;  %v6304_v58 = vor.u32 %v7044_v51, %v6303_v50  ;;  %v6031_v59 = vld [vmem:[#allocation5 + $0xcc8] sm:$0xf] }
 0x171   :  { %3732 = vmatpush.bf16.msra.mxu0 %v5456_v63  ;;  %v6159_v61 = vld [vmem:[#allocation5 + $0xdc8] sm:$0xf]  ;;  %v6432_v63 = vor.u32 %v7076_v48, %v6431_v53  ;;  %v7008_v1 = vld [vmem:[#allocation5 + $0xdd4] sm:$0xf0]  ;;  %v6032_v5 = vor.u32 %v6976_v60, %v6031_v59 }
 0x172   :  { %3745 = vmatpush.bf16.msra.mxu1 %v5584_v6  ;;  %v6287_v6 = vld [vmem:[#allocation5 + $0xec8] sm:$0xf]  ;;  %v7072_v4 = vld [vmem:[#allocation5 + $0xfd4] sm:$0xf0]  ;;  %v6160_v7 = vor.u32 %v7008_v1, %v6159_v61 }
 0x173   :  { %3758 = vmatpush.bf16.msra.mxu2 %v5712_v2  ;;  %v7040_v2 = vld [vmem:[#allocation5 + $0xed4] sm:$0xf0]  ;;  %v6415_v3 = vld [vmem:[#allocation5 + $0xfc8] sm:$0xf] }
 0x174   :  { %3771 = vmatpush.bf16.msra.mxu3 %v5840_v10  ;;  %v6288_v10 = vor.u32 %v7040_v2, %v6287_v6  ;;  %v6015_v11 = vld [vmem:[#allocation5 + $0xca8] sm:$0xf]  ;;  %v6972_v12 = vld [vmem:[#allocation5 + $0xcb4] sm:$0xf0]  ;;  %v6416_v16 = vor.u32 %v7072_v4, %v6415_v3 }
 0x175   :  { %3733 = vmatpush.bf16.msra.mxu0 %v5440_v21  ;;  %v6143_v14 = vld [vmem:[#allocation5 + $0xda8] sm:$0xf]  ;;  %v7004_v17 = vld [vmem:[#allocation5 + $0xdb4] sm:$0xf0] }
 0x176   :  { %3746 = vmatpush.bf16.msra.mxu1 %v5568_v29  ;;  %v6271_v21 = vld [vmem:[#allocation5 + $0xea8] sm:$0xf]  ;;  %v7036_v24 = vld [vmem:[#allocation5 + $0xeb4] sm:$0xf0]  ;;  %v6144_v32 = vor.u32 %v7004_v17, %v6143_v14 }
 0x177   :  { %3759 = vmatpush.bf16.msra.mxu2 %v5696_v30  ;;  %v6399_v28 = vld [vmem:[#allocation5 + $0xfa8] sm:$0xf]  ;;  %v7068_v29 = vld [vmem:[#allocation5 + $0xfb4] sm:$0xf0]  ;;  %v6016_v30 = vor.u32 %v6972_v12, %v6015_v11  ;;  %v6272_v33 = vor.u32 %v7036_v24, %v6271_v21 }
 0x178   :  { %3772 = vmatpush.bf16.msra.mxu3 %v5824_v39  ;;  %v5999_v35 = vld [vmem:[#allocation5 + $0xc88] sm:$0xf]  ;;  %v6968_v36 = vld [vmem:[#allocation5 + $0xc94] sm:$0xf0]  ;;  %v6400_v41 = vor.u32 %v7068_v29, %v6399_v28 }
 0x179   :  { %3734 = vmatpush.bf16.msra.mxu0 %v5424_v47  ;;  %v6127_v39 = vld [vmem:[#allocation5 + $0xd88] sm:$0xf]  ;;  %v7000_v42 = vld [vmem:[#allocation5 + $0xd94] sm:$0xf0]  ;;  %v3528_v45 = vpop.f32.mrf.mxu0  ;;  %v6000_v49 = vor.u32 %v6968_v36, %v5999_v35 }
 0x17a   :  { %3747 = vmatpush.bf16.msra.mxu1 %v5552_v54  ;;  %v6255_v43 = vld [vmem:[#allocation5 + $0xe88] sm:$0xf]  ;;  %v7032_v44 = vld [vmem:[#allocation5 + $0xe94] sm:$0xf0]  ;;  %v3529_v47 = vadd.f32 %v3528_v45, %v7419_v0  ;;  %v3541_v50 = vpop.f32.mrf.mxu1  ;;  %v6128_v51 = vor.u32 %v7000_v42, %v6127_v39 }
 0x17b   :  { %3760 = vmatpush.bf16.msra.mxu2 %v5680_v52  ;;  %v6383_v62 = vld [vmem:[#allocation5 + $0xf88] sm:$0xf]  ;;  %v7064_v46 = vld [vmem:[#allocation5 + $0xf94] sm:$0xf0]  ;;  %v6256_v54 = vor.u32 %v7032_v44, %v6255_v43 }
 0x17c   :  { %3773 = vmatpush.bf16.msra.mxu3 %v5808_v55  ;;  %3735 = vmatmul.bf16.vlgmr.msra.gmra.mxu0 %v7357_v18  ;;  %v5983_v52 = vld [vmem:[#allocation5 + $0xc68] sm:$0xf]  ;;  %v6964_v53 = vld [vmem:[#allocation5 + $0xc74] sm:$0xf0]  ;;  %v6384_v55 = vor.u32 %v7064_v46, %v6383_v62 }
 0x17d   :  { %3779 = vmatpush.bf16.msrb.mxu0 %v6048_v56  ;;  %3748 = vmatmul.bf16.vlgmr.msra.gmra.mxu1 %v7361_v23  ;;  %v6111_v48 = vld [vmem:[#allocation5 + $0xd68] sm:$0xf]  ;;  %v3542_v56 = vadd.f32 %v3541_v50, %v3529_v47  ;;  %v7028_v59 = vld [vmem:[#allocation5 + $0xe74] sm:$0xf0] }
 0x17e   :  { %3792 = vmatpush.bf16.msrb.mxu1 %v6176_v57  ;;  %3761 = vmatmul.bf16.vlgmr.msra.gmra.mxu2 %v7359_v22  ;;  %v6996_v57 = vld [vmem:[#allocation5 + $0xd74] sm:$0xf0]  ;;  %v6367_v60 = vld [vmem:[#allocation5 + $0xf68] sm:$0xf] }
 0x17f   :  { %3805 = vmatpush.bf16.msrb.mxu2 %v6304_v58  ;;  %3774 = vmatmul.bf16.vlgmr.msra.gmra.mxu3 %v7363_v27  ;;  %v6239_v58 = vld [vmem:[#allocation5 + $0xe68] sm:$0xf]  ;;  %v7060_v61 = vld [vmem:[#allocation5 + $0xf74] sm:$0xf0]  ;;  %v6112_v0 = vor.u32 %v6996_v57, %v6111_v48 }
 0x180   :  { %3818 = vmatpush.bf16.msrb.mxu3 %v6432_v63  ;;  %v5984_v63 = vor.u32 %v6964_v53, %v5983_v52  ;;  %v6240_v1 = vor.u32 %v7028_v59, %v6239_v58  ;;  %v5967_v6 = vld [vmem:[#allocation5 + $0xc48] sm:$0xf]  ;;  %v6960_v2 = vld [vmem:[#allocation5 + $0xc54] sm:$0xf0]  ;;  %v6368_v4 = vor.u32 %v7060_v61, %v6367_v60  ;;  %v6594_v58 = vld [vmem:[#allocation5 + $0xec] sm:$0xf] }
 0x181   :  { %3780 = vmatpush.bf16.msrb.mxu0 %v6032_v5  ;;  %v6095_v3 = vld [vmem:[#allocation5 + $0xd48] sm:$0xf]  ;;  %v3554_v5 = vpop.f32.mrf.mxu2  ;;  %v7024_v11 = vld [vmem:[#allocation5 + $0xe54] sm:$0xf0]  ;;  %v3530_v21 = vpop.f32.mrf.mxu0  ;;  %v5968_v24 = vor.u32 %v6960_v2, %v5967_v6  ;;  %v4513_v59 = vld [vmem:[#allocation5 + $0xf8] sm:$0xf0] }
 0x182   :  { %3793 = vmatpush.bf16.msrb.mxu1 %v6160_v7  ;;  %v6992_v7 = vld [vmem:[#allocation5 + $0xd54] sm:$0xf0]  ;;  %v3555_v12 = vadd.f32 %v3554_v5, %v3542_v56  ;;  %v3567_v14 = vpop.f32.mrf.mxu3  ;;  %v3543_v28 = vpop.f32.mrf.mxu1  ;;  %v6079_v36 = vld [vmem:[#allocation5 + $0xd28] sm:$0xf]  ;;  %v6626_v60 = vld [vmem:[#allocation5 + $0x1ec] sm:$0xf] }
 0x183   :  { %3806 = vmatpush.bf16.msrb.mxu2 %v6288_v10  ;;  %v6223_v10 = vld [vmem:[#allocation5 + $0xe48] sm:$0xf]  ;;  %v7056_v17 = vld [vmem:[#allocation5 + $0xf54] sm:$0xf0]  ;;  %v4769_v6 = vld [vmem:[#allocation5 + $0x2f8] sm:$0xf0] }
 0x184   :  { %3819 = vmatpush.bf16.msrb.mxu3 %v6416_v16  ;;  %v6351_v16 = vld [vmem:[#allocation5 + $0xf48] sm:$0xf]  ;;  %v7426_v29 = vadd.f32 %v3567_v14, %v3555_v12  ;;  %v6956_v35 = vld [vmem:[#allocation5 + $0xc34] sm:$0xf0]  ;;  %v4897_v5 = vld [vmem:[#allocation5 + $0x3f8] sm:$0xf0] }
 0x185   :  { %3781 = vmatpush.bf16.msrb.mxu0 %v6016_v30  ;;  %v6096_v30 = vor.u32 %v6992_v7, %v6095_v3  ;;  %v6352_v39 = vor.u32 %v7056_v17, %v6351_v16  ;;  %v6207_v42 = vld [vmem:[#allocation5 + $0xe28] sm:$0xf]  ;;  %v7020_v43 = vld [vmem:[#allocation5 + $0xe34] sm:$0xf0]  ;;  %v6590_v14 = vld [vmem:[#allocation5 + $0xcc] sm:$0xf] }
 0x186   :  { %3794 = vmatpush.bf16.msrb.mxu1 %v6144_v32  ;;  %v6224_v32 = vor.u32 %v7024_v11, %v6223_v10  ;;  %v6335_v44 = vld [vmem:[#allocation5 + $0xf28] sm:$0xf]  ;;  %v7052_v45 = vld [vmem:[#allocation5 + $0xf34] sm:$0xf0]  ;;  %v6208_v50 = vor.u32 %v7020_v43, %v6207_v42  ;;  %v4516_v10 = vor.u32 %v6594_v58, %v4513_v59  ;;  %v4497_v16 = vld [vmem:[#allocation5 + $0xd8] sm:$0xf0] }
 0x187   :  { %3807 = vmatpush.bf16.msrb.mxu2 %v6272_v33  ;;  %v5951_v33 = vld [vmem:[#allocation5 + $0xc28] sm:$0xf]  ;;  %v6952_v47 = vld [vmem:[#allocation5 + $0xc14] sm:$0xf0]  ;;  %v6336_v53 = vor.u32 %v7052_v45, %v6335_v44  ;;  %v6622_v17 = vld [vmem:[#allocation5 + $0x1cc] sm:$0xf] }
 0x188   :  { %3820 = vmatpush.bf16.msrb.mxu3 %v6400_v41  ;;  %v6988_v41 = vld [vmem:[#allocation5 + $0xd34] sm:$0xf0]  ;;  %v5952_v62 = vor.u32 %v6956_v35, %v5951_v33  ;;  %v5935_v46 = vld [vmem:[#allocation5 + $0xc08] sm:$0xf]  ;;  %v6654_v28 = vld [vmem:[#allocation5 + $0x2cc] sm:$0xf]  ;;  %v4500_v35 = vor.u32 %v6590_v14, %v4497_v16 }
 0x189   :  { %3782 = vmatpush.bf16.msrb.mxu0 %v6000_v49  ;;  %v6080_v49 = vor.u32 %v6988_v41, %v6079_v36  ;;  %v6191_v52 = vld [vmem:[#allocation5 + $0xe08] sm:$0xf]  ;;  %v7016_v48 = vld [vmem:[#allocation5 + $0xe14] sm:$0xf0]  ;;  %v3556_v57 = vpop.f32.mrf.mxu2  ;;  %v4881_v33 = vld [vmem:[#allocation5 + $0x3d8] sm:$0xf0] }
 0x18a   :  { %3795 = vmatpush.bf16.msrb.mxu1 %v6128_v51  ;;  %v6063_v51 = vld [vmem:[#allocation5 + $0xd08] sm:$0xf]  ;;  %v7048_v56 = vld [vmem:[#allocation5 + $0xf14] sm:$0xf0]  ;;  %v3569_v61 = vpop.f32.mrf.mxu3  ;;  %v6192_v3 = vor.u32 %v7016_v48, %v6191_v52  ;;  %v6586_v41 = vld [vmem:[#allocation5 + $0xac] sm:$0xf] }
 0x18b   :  { %3808 = vmatpush.bf16.msrb.mxu2 %v6256_v54  ;;  %v6984_v54 = vld [vmem:[#allocation5 + $0xd14] sm:$0xf0]  ;;  %v4481_v42 = vld [vmem:[#allocation5 + $0xb8] sm:$0xf0]  ;;  %v6618_v43 = vld [vmem:[#allocation5 + $0x1ac] sm:$0xf] }
 0x18c   :  { %3821 = vmatpush.bf16.msrb.mxu3 %v6384_v55  ;;  %v6319_v55 = vld [vmem:[#allocation5 + $0xf08] sm:$0xf]  ;;  %v6064_v2 = vor.u32 %v6984_v54, %v6063_v51  ;;  %v4609_v45 = vld [vmem:[#allocation5 + $0x1b8] sm:$0xf0]  ;;  %v6582_v52 = vld [vmem:[#allocation5 + $0x8c] sm:$0xf] }
 0x18d   :  { %3783 = vmatpush.bf16.msrb.mxu0 %v5984_v63  ;;  %v5936_v63 = vor.u32 %v6952_v47, %v5935_v46  ;;  %v6320_v7 = vor.u32 %v7048_v56, %v6319_v55  ;;  %v4737_v46 = vld [vmem:[#allocation5 + $0x2b8] sm:$0xf0]  ;;  %v6682_v47 = vld [vmem:[#allocation5 + $0x3ac] sm:$0xf]  ;;  %v4612_v51 = vor.u32 %v6618_v43, %v4609_v45 }
 0x18e   :  { %3796 = vmatpush.bf16.msrb.mxu1 %v6112_v0  ;;  %v4641_v0 = vld [vmem:[#allocation5 + $0x1f8] sm:$0xf0]  ;;  %v6614_v48 = vld [vmem:[#allocation5 + $0x18c] sm:$0xf] }
 0x18f   :  { %3809 = vmatpush.bf16.msrb.mxu2 %v6240_v1  ;;  %v6658_v1 = vld [vmem:[#allocation5 + $0x2ec] sm:$0xf]  ;;  %v4644_v11 = vor.u32 %v6626_v60, %v4641_v0  ;;  %v4593_v56 = vld [vmem:[#allocation5 + $0x198] sm:$0xf0] }
 0x190   :  { %3822 = vmatpush.bf16.msrb.mxu3 %v6368_v4  ;;  %v6690_v4 = vld [vmem:[#allocation5 + $0x3ec] sm:$0xf]  ;;  %v4772_v12 = vor.u32 %v6658_v1, %v4769_v6  ;;  %v4721_v58 = vld [vmem:[#allocation5 + $0x298] sm:$0xf0]  ;;  %v4596_v6 = vor.u32 %v6614_v48, %v4593_v56 }
 0x191   :  { %3784 = vmatpush.bf16.msrb.mxu0 %v5968_v24  ;;  %v4900_v21 = vor.u32 %v6690_v4, %v4897_v5  ;;  %v4625_v24 = vld [vmem:[#allocation5 + $0x1d8] sm:$0xf0]  ;;  %v6646_v57 = vld [vmem:[#allocation5 + $0x28c] sm:$0xf] }
 0x192   :  { %3797 = vmatpush.bf16.msrb.mxu1 %v6096_v30  ;;  %v4753_v30 = vld [vmem:[#allocation5 + $0x2d8] sm:$0xf0]  ;;  %v4628_v36 = vor.u32 %v6622_v17, %v4625_v24  ;;  %v6678_v60 = vld [vmem:[#allocation5 + $0x38c] sm:$0xf] }
 0x193   :  { %3810 = vmatpush.bf16.msrb.mxu2 %v6224_v32  ;;  %v6686_v32 = vld [vmem:[#allocation5 + $0x3cc] sm:$0xf]  ;;  %v4849_v61 = vld [vmem:[#allocation5 + $0x398] sm:$0xf0] }
 0x194   :  { %3823 = vmatpush.bf16.msrb.mxu3 %v6352_v39  ;;  %v4756_v39 = vor.u32 %v6654_v28, %v4753_v30  ;;  %v4884_v44 = vor.u32 %v6686_v32, %v4881_v33  ;;  %v4449_v4 = vld [vmem:[#allocation5 + $0x78] sm:$0xf0]  ;;  %v6610_v5 = vld [vmem:[#allocation5 + $0x16c] sm:$0xf] }
 0x195   :  { %3785 = vmatpush.bf16.msrb.mxu0 %v5952_v62  ;;  %v6650_v62 = vld [vmem:[#allocation5 + $0x2ac] sm:$0xf]  ;;  %v4705_v14 = vld [vmem:[#allocation5 + $0x278] sm:$0xf0] }
 0x196   :  { %3798 = vmatpush.bf16.msrb.mxu1 %v6080_v49  ;;  %v4865_v49 = vld [vmem:[#allocation5 + $0x3b8] sm:$0xf0]  ;;  %v4740_v54 = vor.u32 %v6650_v62, %v4737_v46  ;;  %v6674_v16 = vld [vmem:[#allocation5 + $0x36c] sm:$0xf] }
 0x197   :  { %3811 = vmatpush.bf16.msrb.mxu2 %v6208_v50  ;;  %v4484_v50 = vor.u32 %v6586_v41, %v4481_v42  ;;  %v4868_v55 = vor.u32 %v6682_v47, %v4865_v49  ;;  %v4833_v17 = vld [vmem:[#allocation5 + $0x378] sm:$0xf0]  ;;  %v6574_v28 = vld [vmem:[#allocation5 + $0x4c] sm:$0xf] }
 0x198   :  { %3824 = vmatpush.bf16.msrb.mxu3 %v6336_v53  ;;  %v4465_v53 = vld [vmem:[#allocation5 + $0x98] sm:$0xf0]  ;;  %v6606_v32 = vld [vmem:[#allocation5 + $0x14c] sm:$0xf]  ;;  %v4836_v33 = vor.u32 %v6674_v16, %v4833_v17 }
 0x199   :  { %3786 = vmatpush.bf16.msrb.mxu0 %v5936_v63  ;;  %v3580_v59 = vpop.f32.mrf.mxu0  ;;  %v4468_v0 = vor.u32 %v6582_v52, %v4465_v53  ;;  %v4433_v30 = vld [vmem:[#allocation5 + $0x58] sm:$0xf0]  ;;  %v6602_v53 = vld [vmem:[#allocation5 + $0x12c] sm:$0xf] }
 0x19a   :  { %3799 = vmatpush.bf16.msrb.mxu1 %v6064_v2  ;;  %v3581_v63 = vadd.f32 %v3580_v59, %v7426_v29  ;;  %v3593_v1 = vpop.f32.mrf.mxu1  ;;  %v4724_v2 = vor.u32 %v6646_v57, %v4721_v58  ;;  %v4689_v41 = vld [vmem:[#allocation5 + $0x258] sm:$0xf0]  ;;  %v4436_v46 = vor.u32 %v6574_v28, %v4433_v30  ;;  %v6634_v56 = vld [vmem:[#allocation5 + $0x22c] sm:$0xf] }
 0x19b   :  { %3812 = vmatpush.bf16.msrb.mxu2 %v6192_v3  ;;  %v6578_v3 = vld [vmem:[#allocation5 + $0x6c] sm:$0xf]  ;;  %v4817_v45 = vld [vmem:[#allocation5 + $0x358] sm:$0xf0] }
 0x19c   :  { %3825 = vmatpush.bf16.msrb.mxu3 %v6320_v7  ;;  %3787 = vmatmul.bf16.vlgmr.msrb.gmra.mxu0 %v7369_v13  ;;  %v4852_v7 = vor.u32 %v6678_v60, %v4849_v61  ;;  %v4417_v52 = vld [vmem:[#allocation5 + $0x38] sm:$0xf0]  ;;  %v6666_v58 = vld [vmem:[#allocation5 + $0x32c] sm:$0xf] }
 0x19d   :  { %3831 = vmatpush.bf16.msra.mxu0 %v4516_v10  ;;  %3800 = vmatmul.bf16.vlgmr.msrb.gmra.mxu1 %v7373_v20  ;;  %v3594_v10 = vadd.f32 %v3593_v1, %v3581_v63  ;;  %v4673_v57 = vld [vmem:[#allocation5 + $0x238] sm:$0xf0]  ;;  %v6566_v61 = vld [vmem:[#allocation5 + $0xc] sm:$0xf] }
 0x19e   :  { %3844 = vmatpush.bf16.msra.mxu1 %v4644_v11  ;;  %3813 = vmatmul.bf16.vlgmr.msrb.gmra.mxu2 %v7371_v19  ;;  %v4577_v11 = vld [vmem:[#allocation5 + $0x178] sm:$0xf0]  ;;  %v4676_v1 = vor.u32 %v6634_v56, %v4673_v57  ;;  %v6754_v16 = vld [vmem:[#allocation5 + $0x5ec] sm:$0xf] }
 0x19f   :  { %3857 = vmatpush.bf16.msra.mxu2 %v4772_v12  ;;  %3826 = vmatmul.bf16.vlgmr.msrb.gmra.mxu3 %v7375_v26  ;;  %v6642_v12 = vld [vmem:[#allocation5 + $0x26c] sm:$0xf]  ;;  %v4580_v29 = vor.u32 %v6610_v5, %v4577_v11  ;;  %v4801_v59 = vld [vmem:[#allocation5 + $0x338] sm:$0xf0] }
 0x1a0   :  { %3870 = vmatpush.bf16.msra.mxu3 %v4900_v21  ;;  %v4452_v21 = vor.u32 %v6578_v3, %v4449_v4  ;;  %v4708_v24 = vor.u32 %v6642_v12, %v4705_v14  ;;  %v4401_v63 = vld [vmem:[#allocation5 + $0x18] sm:$0xf0]  ;;  %v6630_v3 = vld [vmem:[#allocation5 + $0x20c] sm:$0xf]  ;;  %v4804_v4 = vor.u32 %v6666_v58, %v4801_v59 }
 0x1a1   :  { %3832 = vmatpush.bf16.msra.mxu0 %v4500_v35  ;;  %v3606_v35 = vpop.f32.mrf.mxu2  ;;  %v3582_v62 = vpop.f32.mrf.mxu0  ;;  %v4657_v5 = vld [vmem:[#allocation5 + $0x218] sm:$0xf0]  ;;  %v6722_v12 = vld [vmem:[#allocation5 + $0x4ec] sm:$0xf] }
 0x1a2   :  { %3845 = vmatpush.bf16.msra.mxu1 %v4628_v36  ;;  %v4561_v36 = vld [vmem:[#allocation5 + $0x158] sm:$0xf0]  ;;  %v3607_v42 = vadd.f32 %v3606_v35, %v3594_v10  ;;  %v3619_v43 = vpop.f32.mrf.mxu3  ;;  %v3595_v47 = vpop.f32.mrf.mxu1  ;;  %v6746_v57 = vld [vmem:[#allocation5 + $0x5ac] sm:$0xf] }
 0x1a3   :  { %3858 = vmatpush.bf16.msra.mxu2 %v4756_v39  ;;  %v6638_v39 = vld [vmem:[#allocation5 + $0x24c] sm:$0xf]  ;;  %v4785_v10 = vld [vmem:[#allocation5 + $0x318] sm:$0xf0] }
 0x1a4   :  { %3871 = vmatpush.bf16.msra.mxu3 %v4884_v44  ;;  %v6670_v44 = vld [vmem:[#allocation5 + $0x34c] sm:$0xf]  ;;  %v7433_v49 = vadd.f32 %v3619_v43, %v3607_v42  ;;  %v5025_v14 = vld [vmem:[#allocation5 + $0x4f8] sm:$0xf0] }
 0x1a5   :  { %3833 = vmatpush.bf16.msra.mxu0 %v4484_v50  ;;  %v4564_v50 = vor.u32 %v6606_v32, %v4561_v36  ;;  %v4820_v48 = vor.u32 %v6670_v44, %v4817_v45  ;;  %v5281_v28 = vld [vmem:[#allocation5 + $0x6f8] sm:$0xf0]  ;;  %v4660_v32 = vor.u32 %v6630_v3, %v4657_v5  ;;  %v6718_v43 = vld [vmem:[#allocation5 + $0x4cc] sm:$0xf] }
 0x1a6   :  { %3846 = vmatpush.bf16.msra.mxu1 %v4612_v51  ;;  %v4692_v51 = vor.u32 %v6638_v39, %v4689_v41  ;;  %v5409_v35 = vld [vmem:[#allocation5 + $0x7f8] sm:$0xf0]  ;;  %v5028_v39 = vor.u32 %v6722_v12, %v5025_v14  ;;  %v6750_v45 = vld [vmem:[#allocation5 + $0x5cc] sm:$0xf] }
 0x1a7   :  { %3859 = vmatpush.bf16.msra.mxu2 %v4740_v54  ;;  %v6570_v54 = vld [vmem:[#allocation5 + $0x2c] sm:$0xf]  ;;  %v5009_v44 = vld [vmem:[#allocation5 + $0x4d8] sm:$0xf0] }
 0x1a8   :  { %3872 = vmatpush.bf16.msra.mxu3 %v4868_v55  ;;  %v4545_v55 = vld [vmem:[#allocation5 + $0x138] sm:$0xf0]  ;;  %v4420_v60 = vor.u32 %v6570_v54, %v4417_v52  ;;  %v6782_v47 = vld [vmem:[#allocation5 + $0x6cc] sm:$0xf]  ;;  %v5012_v52 = vor.u32 %v6718_v43, %v5009_v44 }
 0x1a9   :  { %3834 = vmatpush.bf16.msra.mxu0 %v4468_v0  ;;  %v4548_v0 = vor.u32 %v6602_v53, %v4545_v55  ;;  %v3608_v11 = vpop.f32.mrf.mxu2  ;;  %v5393_v54 = vld [vmem:[#allocation5 + $0x7d8] sm:$0xf0]  ;;  %v6714_v55 = vld [vmem:[#allocation5 + $0x4ac] sm:$0xf] }
 0x1aa   :  { %3847 = vmatpush.bf16.msra.mxu1 %v4596_v6  ;;  %v6598_v6 = vld [vmem:[#allocation5 + $0x10c] sm:$0xf]  ;;  %v3621_v17 = vpop.f32.mrf.mxu3  ;;  %v4993_v56 = vld [vmem:[#allocation5 + $0x4b8] sm:$0xf0] }
 0x1ab   :  { %3860 = vmatpush.bf16.msra.mxu2 %v4724_v2  ;;  %v4529_v2 = vld [vmem:[#allocation5 + $0x118] sm:$0xf0]  ;;  %v6742_v5 = vld [vmem:[#allocation5 + $0x58c] sm:$0xf] }
 0x1ac   :  { %3873 = vmatpush.bf16.msra.mxu3 %v4852_v7  ;;  %v6662_v7 = vld [vmem:[#allocation5 + $0x30c] sm:$0xf]  ;;  %v4532_v30 = vor.u32 %v6598_v6, %v4529_v2  ;;  %v5121_v59 = vld [vmem:[#allocation5 + $0x5b8] sm:$0xf0] }
 0x1ad   :  { %3835 = vmatpush.bf16.msra.mxu0 %v4452_v21  ;;  %v4404_v21 = vor.u32 %v6566_v61, %v4401_v63  ;;  %v4788_v36 = vor.u32 %v6662_v7, %v4785_v10  ;;  %v5249_v61 = vld [vmem:[#allocation5 + $0x6b8] sm:$0xf0]  ;;  %v6810_v63 = vld [vmem:[#allocation5 + $0x7ac] sm:$0xf]  ;;  %v5124_v2 = vor.u32 %v6746_v57, %v5121_v59  ;;  %v7439_v7 = vld [vmem:[#allocation7] sm:$0xf] }
 0x1ae   :  { %3848 = vmatpush.bf16.msra.mxu1 %v4580_v29  ;;  %v5153_v29 = vld [vmem:[#allocation5 + $0x5f8] sm:$0xf0]  ;;  %v6710_v6 = vld [vmem:[#allocation5 + $0x48c] sm:$0xf] }
 0x1af   :  { %3861 = vmatpush.bf16.msra.mxu2 %v4708_v24  ;;  %v6786_v24 = vld [vmem:[#allocation5 + $0x6ec] sm:$0xf]  ;;  %v5156_v41 = vor.u32 %v6754_v16, %v5153_v29  ;;  %v5361_v14 = vld [vmem:[#allocation5 + $0x798] sm:$0xf0] }
 0x1b0   :  { %3874 = vmatpush.bf16.msra.mxu3 %v4836_v33  ;;  %v6818_v33 = vld [vmem:[#allocation5 + $0x7ec] sm:$0xf]  ;;  %v5284_v42 = vor.u32 %v6786_v24, %v5281_v28  ;;  %v4961_v24 = vld [vmem:[#allocation5 + $0x478] sm:$0xf0] }
 0x1b1   :  { %3836 = vmatpush.bf16.msra.mxu0 %v4436_v46  ;;  %v5412_v62 = vor.u32 %v6818_v33, %v5409_v35  ;;  %v5137_v46 = vld [vmem:[#allocation5 + $0x5d8] sm:$0xf0]  ;;  %v6774_v11 = vld [vmem:[#allocation5 + $0x68c] sm:$0xf] }
 0x1b2   :  { %3849 = vmatpush.bf16.msra.mxu1 %v4564_v50  ;;  %v5265_v50 = vld [vmem:[#allocation5 + $0x6d8] sm:$0xf0]  ;;  %v5140_v53 = vor.u32 %v6750_v45, %v5137_v46  ;;  %v6806_v12 = vld [vmem:[#allocation5 + $0x78c] sm:$0xf] }
 0x1b3   :  { %3862 = vmatpush.bf16.msra.mxu2 %v4692_v51  ;;  %v6814_v51 = vld [vmem:[#allocation5 + $0x7cc] sm:$0xf]  ;;  %v5364_v33 = vor.u32 %v6806_v12, %v5361_v14  ;;  %v5089_v35 = vld [vmem:[#allocation5 + $0x578] sm:$0xf0] }
 0x1b4   :  { %3875 = vmatpush.bf16.msra.mxu3 %v4820_v48  ;;  %v5268_v48 = vor.u32 %v6782_v47, %v5265_v50  ;;  %v5396_v58 = vor.u32 %v6814_v51, %v5393_v54  ;;  %v6706_v29 = vld [vmem:[#allocation5 + $0x46c] sm:$0xf]  ;;  %v4945_v47 = vld [vmem:[#allocation5 + $0x458] sm:$0xf0] }
 0x1b5   :  { %3837 = vmatpush.bf16.msra.mxu0 %v4420_v60  ;;  %v6778_v60 = vld [vmem:[#allocation5 + $0x6ac] sm:$0xf]  ;;  %v4964_v44 = vor.u32 %v6706_v29, %v4961_v24  ;;  %v4913_v14 = vld [vmem:[#allocation5 + $0x418] sm:$0xf0] }
 0x1b6   :  { %3850 = vmatpush.bf16.msra.mxu1 %v4548_v0  ;;  %v5377_v0 = vld [vmem:[#allocation5 + $0x7b8] sm:$0xf0]  ;;  %v5252_v3 = vor.u32 %v6778_v60, %v5249_v61  ;;  %v6738_v28 = vld [vmem:[#allocation5 + $0x56c] sm:$0xf] }
 0x1b7   :  { %3863 = vmatpush.bf16.msra.mxu2 %v4676_v1  ;;  %v4996_v1 = vor.u32 %v6714_v55, %v4993_v56  ;;  %v5380_v10 = vor.u32 %v6810_v63, %v5377_v0  ;;  %v5092_v45 = vor.u32 %v6738_v28, %v5089_v35  ;;  %v6702_v46 = vld [vmem:[#allocation5 + $0x44c] sm:$0xf] }
 0x1b8   :  { %3876 = vmatpush.bf16.msra.mxu3 %v4804_v4  ;;  %v4977_v4 = vld [vmem:[#allocation5 + $0x498] sm:$0xf0]  ;;  %v6734_v50 = vld [vmem:[#allocation5 + $0x54c] sm:$0xf]  ;;  %v4948_v59 = vor.u32 %v6702_v46, %v4945_v47 }
 0x1b9   :  { %3838 = vmatpush.bf16.msra.mxu0 %v4404_v21  ;;  %v4980_v16 = vor.u32 %v6710_v6, %v4977_v4  ;;  %v6798_v57 = vld [vmem:[#allocation5 + $0x74c] sm:$0xf]  ;;  %v4929_v6 = vld [vmem:[#allocation5 + $0x438] sm:$0xf0] }
 0x1ba   :  { %3851 = vmatpush.bf16.msra.mxu1 %v4532_v30  ;;  %v6694_v12 = vld [vmem:[#allocation5 + $0x40c] sm:$0xf] }
 0x1bb   :  { %3864 = vmatpush.bf16.msra.mxu2 %v4660_v32  ;;  %v3645_v32 = vpop.f32.mrf.mxu1  ;;  %v6758_v29 = vld [vmem:[#allocation5 + $0x60c] sm:$0xf] }
 0x1bc   :  { %3877 = vmatpush.bf16.msra.mxu3 %v4788_v36  ;;  %3839 = vmatmul.bf16.vlgmr.msra.gmra.mxu0 %v7335_v9  ;;  %v5105_v9 = vld [vmem:[#allocation5 + $0x598] sm:$0xf0]  ;;  %v6770_v36 = vld [vmem:[#allocation5 + $0x66c] sm:$0xf] }
 0x1bd   :  { %3883 = vmatpush.bf16.msrb.mxu0 %v5028_v39  ;;  %3852 = vmatmul.bf16.vlgmr.msra.gmra.mxu1 %v7342_v25  ;;  %v3632_v25 = vpop.f32.mrf.mxu0  ;;  %v5108_v17 = vor.u32 %v6742_v5, %v5105_v9  ;;  %v5217_v39 = vld [vmem:[#allocation5 + $0x678] sm:$0xf0]  ;;  %v6794_v9 = vld [vmem:[#allocation5 + $0x72c] sm:$0xf] }
 0x1be   :  { %3896 = vmatpush.bf16.msrb.mxu1 %v5156_v41  ;;  %3865 = vmatmul.bf16.vlgmr.msra.gmra.mxu2 %v7333_v8  ;;  %v641_v8 = vperm.slane %v7439_v7, 2  ;;  %v6802_v41 = vld [vmem:[#allocation5 + $0x76c] sm:$0xf]  ;;  %v5057_v5 = vld [vmem:[#allocation5 + $0x538] sm:$0xf0] }
 0x1bf   :  { %3909 = vmatpush.bf16.msrb.mxu2 %v5284_v42  ;;  %3878 = vmatmul.bf16.vlgmr.msra.gmra.mxu3 %v7337_v15  ;;  %v5233_v15 = vld [vmem:[#allocation5 + $0x698] sm:$0xf0]  ;;  %v6946_v47 = vld [vmem:[#allocation5 + $0xbec] sm:$0xf] }
 0x1c0   :  { %3922 = vmatpush.bf16.msrb.mxu3 %v5412_v62  ;;  %v5236_v21 = vor.u32 %v6774_v11, %v5233_v15  ;;  %v3633_v30 = vadd.f32 %v3632_v25, %v641_v8  ;;  %v5345_v42 = vld [vmem:[#allocation5 + $0x778] sm:$0xf0]  ;;  %v5220_v62 = vor.u32 %v6770_v36, %v5217_v39  ;;  %v6762_v8 = vld [vmem:[#allocation5 + $0x62c] sm:$0xf] }
 0x1c1   :  { %3884 = vmatpush.bf16.msrb.mxu0 %v5012_v52  ;;  %v3658_v51 = vpop.f32.mrf.mxu2  ;;  %v5348_v54 = vor.u32 %v6802_v41, %v5345_v42  ;;  %v5073_v52 = vld [vmem:[#allocation5 + $0x558] sm:$0xf0]  ;;  %v6850_v36 = vld [vmem:[#allocation5 + $0x8ec] sm:$0xf]  ;;  %v4916_v42 = vor.u32 %v6694_v12, %v4913_v14 }
 0x1c2   :  { %3897 = vmatpush.bf16.msrb.mxu1 %v5140_v53  ;;  %v3646_v43 = vadd.f32 %v3645_v32, %v3633_v30  ;;  %v6766_v53 = vld [vmem:[#allocation5 + $0x64c] sm:$0xf]  ;;  %v3671_v56 = vpop.f32.mrf.mxu3  ;;  %v5076_v63 = vor.u32 %v6734_v50, %v5073_v52  ;;  %v5313_v11 = vld [vmem:[#allocation5 + $0x738] sm:$0xf0] }
 0x1c3   :  { %3910 = vmatpush.bf16.msrb.mxu2 %v5268_v48  ;;  %v5201_v48 = vld [vmem:[#allocation5 + $0x658] sm:$0xf0]  ;;  %v5316_v28 = vor.u32 %v6794_v9, %v5313_v11  ;;  %v6790_v32 = vld [vmem:[#allocation5 + $0x70c] sm:$0xf] }
 0x1c4   :  { %3923 = vmatpush.bf16.msrb.mxu3 %v5396_v58  ;;  %v3659_v55 = vadd.f32 %v3658_v51, %v3646_v43  ;;  %v5329_v58 = vld [vmem:[#allocation5 + $0x758] sm:$0xf0]  ;;  %v5204_v0 = vor.u32 %v6766_v53, %v5201_v48  ;;  %v6882_v41 = vld [vmem:[#allocation5 + $0x9ec] sm:$0xf] }
 0x1c5   :  { %3885 = vmatpush.bf16.msrb.mxu0 %v4996_v1  ;;  %v3634_v61 = vpop.f32.mrf.mxu0  ;;  %v6698_v1 = vld [vmem:[#allocation5 + $0x42c] sm:$0xf]  ;;  %v5332_v4 = vor.u32 %v6798_v57, %v5329_v58  ;;  %v5169_v30 = vld [vmem:[#allocation5 + $0x618] sm:$0xf0] }
 0x1c6   :  { %3898 = vmatpush.bf16.msrb.mxu1 %v5124_v2  ;;  %v7442_v60 = vadd.f32 %v3671_v56, %v3659_v55  ;;  %v6730_v2 = vld [vmem:[#allocation5 + $0x52c] sm:$0xf]  ;;  %v4932_v15 = vor.u32 %v6698_v1, %v4929_v6  ;;  %v5537_v39 = vld [vmem:[#allocation5 + $0x8f8] sm:$0xf0]  ;;  %v5172_v46 = vor.u32 %v6758_v29, %v5169_v30 }
 0x1c7   :  { %3911 = vmatpush.bf16.msrb.mxu2 %v5252_v3  ;;  %v3647_v3 = vpop.f32.mrf.mxu1  ;;  %v5665_v43 = vld [vmem:[#allocation5 + $0x9f8] sm:$0xf0]  ;;  %v6846_v48 = vld [vmem:[#allocation5 + $0x8cc] sm:$0xf] }
 0x1c8   :  { %3924 = vmatpush.bf16.msrb.mxu3 %v5380_v10  ;;  %v5185_v10 = vld [vmem:[#allocation5 + $0x638] sm:$0xf0]  ;;  %v5668_v52 = vor.u32 %v6882_v41, %v5665_v43  ;;  %v6878_v56 = vld [vmem:[#allocation5 + $0x9cc] sm:$0xf] }
 0x1c9   :  { %3886 = vmatpush.bf16.msrb.mxu0 %v4980_v16  ;;  %v5060_v16 = vor.u32 %v6730_v2, %v5057_v5  ;;  %v5188_v25 = vor.u32 %v6762_v8, %v5185_v10  ;;  %v3660_v24 = vpop.f32.mrf.mxu2  ;;  %v5921_v50 = vld [vmem:[#allocation5 + $0xbf8] sm:$0xf0]  ;;  %v6842_v3 = vld [vmem:[#allocation5 + $0x8ac] sm:$0xf] }
 0x1ca   :  { %3899 = vmatpush.bf16.msrb.mxu1 %v5108_v17  ;;  %v6726_v17 = vld [vmem:[#allocation5 + $0x50c] sm:$0xf]  ;;  %v3673_v35 = vpop.f32.mrf.mxu3  ;;  %v5521_v55 = vld [vmem:[#allocation5 + $0x8d8] sm:$0xf0]  ;;  %v5924_v57 = vor.u32 %v6946_v47, %v5921_v50 }
 0x1cb   :  { %3912 = vmatpush.bf16.msrb.mxu2 %v5236_v21  ;;  %v5041_v21 = vld [vmem:[#allocation5 + $0x518] sm:$0xf0]  ;;  %v5524_v1 = vor.u32 %v6846_v48, %v5521_v55  ;;  %v6874_v5 = vld [vmem:[#allocation5 + $0x9ac] sm:$0xf] }
 0x1cc   :  { %3925 = vmatpush.bf16.msrb.mxu3 %v5364_v33  ;;  %v5297_v33 = vld [vmem:[#allocation5 + $0x718] sm:$0xf0]  ;;  %v6906_v9 = vld [vmem:[#allocation5 + $0xaac] sm:$0xf] }
 0x1cd   :  { %3887 = vmatpush.bf16.msrb.mxu0 %v4964_v44  ;;  %v6914_v44 = vld [vmem:[#allocation5 + $0xaec] sm:$0xf]  ;;  %v5300_v51 = vor.u32 %v6790_v32, %v5297_v33  ;;  %v5649_v58 = vld [vmem:[#allocation5 + $0x9d8] sm:$0xf0] }
 0x1ce   :  { %3900 = vmatpush.bf16.msrb.mxu1 %v5092_v45  ;;  %v5793_v45 = vld [vmem:[#allocation5 + $0xaf8] sm:$0xf0]  ;;  %v5652_v6 = vor.u32 %v6878_v56, %v5649_v58  ;;  %v6934_v32 = vld [vmem:[#allocation5 + $0xb8c] sm:$0xf] }
 0x1cf   :  { %3913 = vmatpush.bf16.msrb.mxu2 %v5220_v62  ;;  %v5044_v62 = vor.u32 %v6726_v17, %v5041_v21  ;;  %v5796_v53 = vor.u32 %v6914_v44, %v5793_v45  ;;  %v5777_v61 = vld [vmem:[#allocation5 + $0xad8] sm:$0xf0]  ;;  %v6838_v17 = vld [vmem:[#allocation5 + $0x88c] sm:$0xf] }
 0x1d0   :  { %3926 = vmatpush.bf16.msrb.mxu3 %v5348_v54  ;;  %v5540_v54 = vor.u32 %v6850_v36, %v5537_v39  ;;  %v5633_v10 = vld [vmem:[#allocation5 + $0x9b8] sm:$0xf0]  ;;  %v6834_v36 = vld [vmem:[#allocation5 + $0x86c] sm:$0xf] }
 0x1d1   :  { %3888 = vmatpush.bf16.msrb.mxu0 %v4948_v59  ;;  %v6910_v59 = vld [vmem:[#allocation5 + $0xacc] sm:$0xf]  ;;  %v5761_v11 = vld [vmem:[#allocation5 + $0xab8] sm:$0xf0] }
 0x1d2   :  { %3901 = vmatpush.bf16.msrb.mxu1 %v5076_v63  ;;  %v6942_v63 = vld [vmem:[#allocation5 + $0xbcc] sm:$0xf]  ;;  %v5780_v2 = vor.u32 %v6910_v59, %v5777_v61  ;;  %v5889_v12 = vld [vmem:[#allocation5 + $0xbb8] sm:$0xf0] }
 0x1d3   :  { %3914 = vmatpush.bf16.msrb.mxu2 %v5204_v0  ;;  %v5905_v0 = vld [vmem:[#allocation5 + $0xbd8] sm:$0xf0]  ;;  %v6866_v41 = vld [vmem:[#allocation5 + $0x96c] sm:$0xf] }
 0x1d4   :  { %3927 = vmatpush.bf16.msrb.mxu3 %v5332_v4  ;;  %v5505_v4 = vld [vmem:[#allocation5 + $0x8b8] sm:$0xf0]  ;;  %v5908_v8 = vor.u32 %v6942_v63, %v5905_v0  ;;  %v6898_v45 = vld [vmem:[#allocation5 + $0xa6c] sm:$0xf] }
 0x1d5   :  { %3889 = vmatpush.bf16.msrb.mxu0 %v4932_v15  ;;  %v6938_v15 = vld [vmem:[#allocation5 + $0xbac] sm:$0xf]  ;;  %v5508_v14 = vor.u32 %v6842_v3, %v5505_v4  ;;  %v5489_v21 = vld [vmem:[#allocation5 + $0x898] sm:$0xf0] }
 0x1d6   :  { %3902 = vmatpush.bf16.msrb.mxu1 %v5060_v16  ;;  %v5636_v16 = vor.u32 %v6874_v5, %v5633_v10  ;;  %v5892_v29 = vor.u32 %v6938_v15, %v5889_v12  ;;  %v5617_v24 = vld [vmem:[#allocation5 + $0x998] sm:$0xf0]  ;;  %v6862_v48 = vld [vmem:[#allocation5 + $0x94c] sm:$0xf] }
 0x1d7   :  { %3915 = vmatpush.bf16.msrb.mxu2 %v5188_v25  ;;  %v5764_v25 = vor.u32 %v6906_v9, %v5761_v11  ;;  %v5745_v30 = vld [vmem:[#allocation5 + $0xa98] sm:$0xf0]  ;;  %v6894_v58 = vld [vmem:[#allocation5 + $0xa4c] sm:$0xf] }
 0x1d8   :  { %3928 = vmatpush.bf16.msrb.mxu3 %v5316_v28  ;;  %v6902_v28 = vld [vmem:[#allocation5 + $0xa8c] sm:$0xf]  ;;  %v5473_v39 = vld [vmem:[#allocation5 + $0x878] sm:$0xf0] }
 0x1d9   :  { %3890 = vmatpush.bf16.msrb.mxu0 %v4916_v42  ;;  %v7448_v33 = vpop.f32.mrf.mxu0  ;;  %v5748_v35 = vor.u32 %v6902_v28, %v5745_v30  ;;  %v5601_v44 = vld [vmem:[#allocation5 + $0x978] sm:$0xf0]  ;;  %v5476_v50 = vor.u32 %v6834_v36, %v5473_v39  ;;  %v6926_v63 = vld [vmem:[#allocation5 + $0xb4c] sm:$0xf] }
 0x1da   :  { %3903 = vmatpush.bf16.msrb.mxu1 %v5044_v62  ;;  %v7450_v42 = vpop.f32.mrf.mxu1  ;;  %v5729_v62 = vld [vmem:[#allocation5 + $0xa78] sm:$0xf0]  ;;  %v6826_v4 = vld [vmem:[#allocation5 + $0x82c] sm:$0xf] }
 0x1db   :  { %3916 = vmatpush.bf16.msrb.mxu2 %v5172_v46  ;;  %v6930_v46 = vld [vmem:[#allocation5 + $0xb6c] sm:$0xf]  ;;  %v5857_v47 = vld [vmem:[#allocation5 + $0xb78] sm:$0xf0] }
 0x1dc   :  { %3929 = vmatpush.bf16.msrb.mxu3 %v5300_v51  ;;  %3891 = vmatmul.bf16.vlgmr.msrb.gmra.mxu0 %v7347_v37  ;;  %v5873_v37 = vld [vmem:[#allocation5 + $0xb98] sm:$0xf0]  ;;  %v5604_v51 = vor.u32 %v6866_v41, %v5601_v44  ;;  %v5860_v56 = vor.u32 %v6930_v46, %v5857_v47  ;;  %v6890_v15 = vld [vmem:[#allocation5 + $0xa2c] sm:$0xf] }
 0x1dd   :  { %3935 = vmatpush.bf16.msra.mxu0 %v5540_v54  ;;  %3904 = vmatmul.bf16.vlgmr.msrb.gmra.mxu1 %v7351_v40  ;;  %v5876_v43 = vor.u32 %v6934_v32, %v5873_v37  ;;  %v5732_v54 = vor.u32 %v6898_v45, %v5729_v62  ;;  %v5713_v59 = vld [vmem:[#allocation5 + $0xa58] sm:$0xf0]  ;;  %v6886_v30 = vld [vmem:[#allocation5 + $0xa0c] sm:$0xf] }
 0x1de   :  { %3948 = vmatpush.bf16.msra.mxu1 %v5668_v52  ;;  %3917 = vmatmul.bf16.vlgmr.msrb.gmra.mxu2 %v7345_v34  ;;  %v6870_v34 = vld [vmem:[#allocation5 + $0x98c] sm:$0xf]  ;;  %v5841_v0 = vld [vmem:[#allocation5 + $0xb58] sm:$0xf0]  ;;  %v5716_v3 = vor.u32 %v6894_v58, %v5713_v59 }
 0x1df   :  { %3961 = vmatpush.bf16.msra.mxu2 %v5796_v53  ;;  %3930 = vmatmul.bf16.vlgmr.msrb.gmra.mxu3 %v7349_v38  ;;  %v5492_v38 = vor.u32 %v6838_v17, %v5489_v21  ;;  %v5620_v40 = vor.u32 %v6870_v34, %v5617_v24  ;;  %v6830_v52 = vld [vmem:[#allocation5 + $0x84c] sm:$0xf]  ;;  %v5457_v53 = vld [vmem:[#allocation5 + $0x858] sm:$0xf0]  ;;  %v5844_v9 = vor.u32 %v6926_v63, %v5841_v0 }
 0x1e0   :  { %3974 = vmatpush.bf16.msra.mxu3 %v5924_v57  ;;  %v5585_v57 = vld [vmem:[#allocation5 + $0x958] sm:$0xf0]  ;;  %v6822_v17 = vld [vmem:[#allocation5 + $0x80c] sm:$0xf] }
 0x1e1   :  { %3936 = vmatpush.bf16.msra.mxu0 %v5524_v1  ;;  %v7452_v55 = vpop.f32.mrf.mxu2  ;;  %v5460_v1 = vor.u32 %v6830_v52, %v5457_v53  ;;  %v5441_v5 = vld [vmem:[#allocation5 + $0x838] sm:$0xf0]  ;;  %v6854_v24 = vld [vmem:[#allocation5 + $0x90c] sm:$0xf] }
 0x1e2   :  { %3949 = vmatpush.bf16.msra.mxu1 %v5652_v6  ;;  %v7454_v61 = vpop.f32.mrf.mxu3  ;;  %v3686_v6 = vpop.f32.mrf.mxu0  ;;  %v5569_v11 = vld [vmem:[#allocation5 + $0x938] sm:$0xf0]  ;;  %v6978_v39 = vld [vmem:[#allocation5 + $0xcec] sm:$0xf] }
 0x1e3   :  { %3962 = vmatpush.bf16.msra.mxu2 %v5780_v2  ;;  %v5588_v2 = vor.u32 %v6862_v48, %v5585_v57  ;;  %v3699_v10 = vpop.f32.mrf.mxu1  ;;  %v5697_v12 = vld [vmem:[#allocation5 + $0xa38] sm:$0xf0]  ;;  %v7042_v62 = vld [vmem:[#allocation5 + $0xeec] sm:$0xf] }
 0x1e4   :  { %3975 = vmatpush.bf16.msra.mxu3 %v5908_v8  ;;  %v6858_v8 = vld [vmem:[#allocation5 + $0x92c] sm:$0xf]  ;;  %v5425_v21 = vld [vmem:[#allocation5 + $0x818] sm:$0xf0] }
 0x1e5   :  { %3937 = vmatpush.bf16.msra.mxu0 %v5508_v14  ;;  %v6922_v14 = vld [vmem:[#allocation5 + $0xb2c] sm:$0xf]  ;;  %v5572_v34 = vor.u32 %v6858_v8, %v5569_v11  ;;  %v5553_v28 = vld [vmem:[#allocation5 + $0x918] sm:$0xf0]  ;;  %v5428_v44 = vor.u32 %v6822_v17, %v5425_v21 }
 0x1e6   :  { %3950 = vmatpush.bf16.msra.mxu1 %v5636_v16  ;;  %v5825_v16 = vld [vmem:[#allocation5 + $0xb38] sm:$0xf0]  ;;  %v5556_v47 = vor.u32 %v6854_v24, %v5553_v28  ;;  %v6974_v57 = vld [vmem:[#allocation5 + $0xccc] sm:$0xf] }
 0x1e7   :  { %3963 = vmatpush.bf16.msra.mxu2 %v5764_v25  ;;  %v5444_v25 = vor.u32 %v6826_v4, %v5441_v5  ;;  %v5828_v37 = vor.u32 %v6922_v14, %v5825_v16  ;;  %v6049_v41 = vld [vmem:[#allocation5 + $0xcf8] sm:$0xf0]  ;;  %v7006_v59 = vld [vmem:[#allocation5 + $0xdcc] sm:$0xf] }
 0x1e8   :  { %3976 = vmatpush.bf16.msra.mxu3 %v5892_v29  ;;  %v5700_v29 = vor.u32 %v6890_v15, %v5697_v12  ;;  %v6177_v45 = vld [vmem:[#allocation5 + $0xdf8] sm:$0xf0]  ;;  %v6052_v53 = vor.u32 %v6978_v39, %v6049_v41  ;;  %v6970_v10 = vld [vmem:[#allocation5 + $0xcac] sm:$0xf] }
 0x1e9   :  { %3938 = vmatpush.bf16.msra.mxu0 %v5492_v38  ;;  %v3712_v32 = vpop.f32.mrf.mxu2  ;;  %v5681_v38 = vld [vmem:[#allocation5 + $0xa18] sm:$0xf0]  ;;  %v7002_v11 = vld [vmem:[#allocation5 + $0xdac] sm:$0xf] }
 0x1ea   :  { %3951 = vmatpush.bf16.msra.mxu1 %v5620_v40  ;;  %v6918_v40 = vld [vmem:[#allocation5 + $0xb0c] sm:$0xf]  ;;  %v3725_v36 = vpop.f32.mrf.mxu3  ;;  %v6305_v46 = vld [vmem:[#allocation5 + $0xef8] sm:$0xf0] }
 0x1eb   :  { %3964 = vmatpush.bf16.msra.mxu2 %v5748_v35  ;;  %v5809_v35 = vld [vmem:[#allocation5 + $0xb18] sm:$0xf0]  ;;  %v7034_v14 = vld [vmem:[#allocation5 + $0xeac] sm:$0xf] }
 0x1ec   :  { %3977 = vmatpush.bf16.msra.mxu3 %v5876_v43  ;;  %v7010_v43 = vld [vmem:[#allocation5 + $0xdec] sm:$0xf]  ;;  %v5812_v52 = vor.u32 %v6918_v40, %v5809_v35  ;;  %v6033_v58 = vld [vmem:[#allocation5 + $0xcd8] sm:$0xf0] }
 0x1ed   :  { %3939 = vmatpush.bf16.msra.mxu0 %v5476_v50  ;;  %v5684_v50 = vor.u32 %v6886_v30, %v5681_v38  ;;  %v6180_v48 = vor.u32 %v7010_v43, %v6177_v45  ;;  %v6161_v0 = vld [vmem:[#allocation5 + $0xdd8] sm:$0xf0]  ;;  %v6036_v4 = vor.u32 %v6974_v57, %v6033_v58  ;;  %v6966_v24 = vld [vmem:[#allocation5 + $0xc8c] sm:$0xf] }
 0x1ee   :  { %3952 = vmatpush.bf16.msra.mxu1 %v5604_v51  ;;  %v7074_v51 = vld [vmem:[#allocation5 + $0xfec] sm:$0xf]  ;;  %v6289_v6 = vld [vmem:[#allocation5 + $0xed8] sm:$0xf0]  ;;  %v6164_v5 = vor.u32 %v7006_v59, %v6161_v0 }
 0x1ef   :  { %3965 = vmatpush.bf16.msra.mxu2 %v5732_v54  ;;  %v6433_v54 = vld [vmem:[#allocation5 + $0xff8] sm:$0xf0]  ;;  %v6998_v28 = vld [vmem:[#allocation5 + $0xd8c] sm:$0xf] }
 0x1f0   :  { %3978 = vmatpush.bf16.msra.mxu3 %v5860_v56  ;;  %v6308_v56 = vor.u32 %v7042_v62, %v6305_v46  ;;  %v6436_v63 = vor.u32 %v7074_v51, %v6433_v54  ;;  %v6145_v12 = vld [vmem:[#allocation5 + $0xdb8] sm:$0xf0]  ;;  %v6962_v41 = vld [vmem:[#allocation5 + $0xc6c] sm:$0xf] }
 0x1f1   :  { %3940 = vmatpush.bf16.msra.mxu0 %v5460_v1  ;;  %v7038_v1 = vld [vmem:[#allocation5 + $0xecc] sm:$0xf]  ;;  %v6273_v16 = vld [vmem:[#allocation5 + $0xeb8] sm:$0xf0] }
 0x1f2   :  { %3953 = vmatpush.bf16.msra.mxu1 %v5588_v2  ;;  %v7070_v2 = vld [vmem:[#allocation5 + $0xfcc] sm:$0xf]  ;;  %v6292_v8 = vor.u32 %v7038_v1, %v6289_v6  ;;  %v6401_v17 = vld [vmem:[#allocation5 + $0xfb8] sm:$0xf0] }
 0x1f3   :  { %3966 = vmatpush.bf16.msra.mxu2 %v5716_v3  ;;  %v6417_v3 = vld [vmem:[#allocation5 + $0xfd8] sm:$0xf0]  ;;  %v7026_v46 = vld [vmem:[#allocation5 + $0xe6c] sm:$0xf] }
 0x1f4   :  { %3979 = vmatpush.bf16.msra.mxu3 %v5844_v9  ;;  %v6017_v9 = vld [vmem:[#allocation5 + $0xcb8] sm:$0xf0]  ;;  %v6420_v15 = vor.u32 %v7070_v2, %v6417_v3  ;;  %v6990_v57 = vld [vmem:[#allocation5 + $0xd4c] sm:$0xf] }
 0x1f5   :  { %3941 = vmatpush.bf16.msra.mxu0 %v5444_v25  ;;  %v7066_v25 = vld [vmem:[#allocation5 + $0xfac] sm:$0xf]  ;;  %v6020_v21 = vor.u32 %v6970_v10, %v6017_v9  ;;  %v6129_v32 = vld [vmem:[#allocation5 + $0xd98] sm:$0xf0] }
 0x1f6   :  { %3954 = vmatpush.bf16.msra.mxu1 %v5572_v34  ;;  %v6148_v34 = vor.u32 %v7002_v11, %v6145_v12  ;;  %v6404_v30 = vor.u32 %v7066_v25, %v6401_v17  ;;  %v6385_v40 = vld [vmem:[#allocation5 + $0xf98] sm:$0xf0]  ;;  %v6132_v36 = vor.u32 %v6998_v28, %v6129_v32  ;;  %v7022_v0 = vld [vmem:[#allocation5 + $0xe4c] sm:$0xf] }
 0x1f7   :  { %3967 = vmatpush.bf16.msra.mxu2 %v5700_v29  ;;  %v6276_v29 = vor.u32 %v7034_v14, %v6273_v16  ;;  %v5985_v43 = vld [vmem:[#allocation5 + $0xc78] sm:$0xf0]  ;;  %v7054_v2 = vld [vmem:[#allocation5 + $0xf4c] sm:$0xf] }
 0x1f8   :  { %3980 = vmatpush.bf16.msra.mxu3 %v5828_v37  ;;  %v7030_v37 = vld [vmem:[#allocation5 + $0xe8c] sm:$0xf]  ;;  %v6113_v62 = vld [vmem:[#allocation5 + $0xd78] sm:$0xf0]  ;;  %v5988_v54 = vor.u32 %v6962_v41, %v5985_v43 }
 0x1f9   :  { %3942 = vmatpush.bf16.msra.mxu0 %v5428_v44  ;;  %v7460_v38 = vpop.f32.mrf.mxu0  ;;  %v6994_v44 = vld [vmem:[#allocation5 + $0xd6c] sm:$0xf]  ;;  %v6369_v51 = vld [vmem:[#allocation5 + $0xf78] sm:$0xf0] }
 0x1fa   :  { %3955 = vmatpush.bf16.msra.mxu1 %v5556_v47  ;;  %v7462_v35 = vpop.f32.mrf.mxu1  ;;  %v6241_v47 = vld [vmem:[#allocation5 + $0xe78] sm:$0xf0]  ;;  %v6986_v14 = vld [vmem:[#allocation5 + $0xd2c] sm:$0xf] }
 0x1fb   :  { %3968 = vmatpush.bf16.msra.mxu2 %v5684_v50  ;;  %v7058_v50 = vld [vmem:[#allocation5 + $0xf6c] sm:$0xf]  ;;  %v6225_v1 = vld [vmem:[#allocation5 + $0xe58] sm:$0xf0] }
 0x1fc   :  { %3981 = vmatpush.bf16.msra.mxu3 %v5812_v52  ;;  %3943 = vmatmul.bf16.vlgmr.msra.gmra.mxu0 %v7357_v18  ;;  %v6001_v18 = vld [vmem:[#allocation5 + $0xc98] sm:$0xf0]  ;;  %v6116_v52 = vor.u32 %v6994_v44, %v6113_v62  ;;  %v6372_v58 = vor.u32 %v7058_v50, %v6369_v51  ;;  %v6228_v11 = vor.u32 %v7022_v0, %v6225_v1  ;;  %v7018_v17 = vld [vmem:[#allocation5 + $0xe2c] sm:$0xf] }
 0x1fd   :  { %3987 = vmatpush.bf16.msrb.mxu0 %v6052_v53  ;;  %3956 = vmatmul.bf16.vlgmr.msra.gmra.mxu1 %v7361_v23  ;;  %v7062_v23 = vld [vmem:[#allocation5 + $0xf8c] sm:$0xf]  ;;  %v6244_v53 = vor.u32 %v7026_v46, %v6241_v47  ;;  %v6353_v3 = vld [vmem:[#allocation5 + $0xf58] sm:$0xf0] }
 0x1fe   :  { %4000 = vmatpush.bf16.msrb.mxu1 %v6180_v48  ;;  %3969 = vmatmul.bf16.vlgmr.msra.gmra.mxu2 %v7359_v22  ;;  %v6257_v22 = vld [vmem:[#allocation5 + $0xe98] sm:$0xf0]  ;;  %v6388_v45 = vor.u32 %v7062_v23, %v6385_v40  ;;  %v6958_v48 = vld [vmem:[#allocation5 + $0xc4c] sm:$0xf]  ;;  %v6356_v16 = vor.u32 %v7054_v2, %v6353_v3 }
 0x1ff   :  { %4013 = vmatpush.bf16.msrb.mxu2 %v6308_v56  ;;  %3982 = vmatmul.bf16.vlgmr.msra.gmra.mxu3 %v7363_v27  ;;  %v6004_v27 = vor.u32 %v6966_v24, %v6001_v18  ;;  %v6260_v39 = vor.u32 %v7030_v37, %v6257_v22  ;;  %v5969_v56 = vld [vmem:[#allocation5 + $0xc58] sm:$0xf0]  ;;  %v6950_v28 = vld [vmem:[#allocation5 + $0xc0c] sm:$0xf] }
 0x200   :  { %4026 = vmatpush.bf16.msrb.mxu3 %v6436_v63  ;;  %v6097_v63 = vld [vmem:[#allocation5 + $0xd58] sm:$0xf0]  ;;  %v6982_v32 = vld [vmem:[#allocation5 + $0xd0c] sm:$0xf] }
 0x201   :  { %3988 = vmatpush.bf16.msrb.mxu0 %v6036_v4  ;;  %v7464_v59 = vpop.f32.mrf.mxu2  ;;  %v3738_v4 = vpop.f32.mrf.mxu0  ;;  %v6100_v9 = vor.u32 %v6990_v57, %v6097_v63  ;;  %v5953_v12 = vld [vmem:[#allocation5 + $0xc38] sm:$0xf0]  ;;  %v7014_v23 = vld [vmem:[#allocation5 + $0xe0c] sm:$0xf]  ;;  %v7081_v63 = vld [vmem:[#allocation8 + $0x20] sm:$0xff] }
 0x202   :  { %4001 = vmatpush.bf16.msrb.mxu1 %v6164_v5  ;;  %v7466_v6 = vpop.f32.mrf.mxu3  ;;  %v3685_v5 = vadd.f32 %v7448_v33, %v7442_v60  ;;  %v3751_v10 = vpop.f32.mrf.mxu1  ;;  %v6081_v25 = vld [vmem:[#allocation5 + $0xd38] sm:$0xf0] }
 0x203   :  { %4014 = vmatpush.bf16.msrb.mxu2 %v6292_v8  ;;  %v5972_v8 = vor.u32 %v6958_v48, %v5969_v56  ;;  %v6084_v33 = vor.u32 %v6986_v14, %v6081_v25  ;;  %v6065_v22 = vld [vmem:[#allocation5 + $0xd18] sm:$0xf0]  ;;  %v7082_v48 = vld [vmem:[#allocation8 + $0x28] sm:$0xff] }
 0x204   :  { %4027 = vmatpush.bf16.msrb.mxu3 %v6420_v15  ;;  %v6954_v15 = vld [vmem:[#allocation5 + $0xc2c] sm:$0xf]  ;;  %v3698_v24 = vadd.f32 %v7450_v42, %v3685_v5  ;;  %v6193_v40 = vld [vmem:[#allocation5 + $0xe18] sm:$0xf0]  ;;  %v6068_v44 = vor.u32 %v6982_v32, %v6065_v22  ;;  %v642_v32 = vperm.slane %v7439_v7, 3  ;;  %v7107_v7 = vld [vmem:[#allocation8 + $0xf0] sm:$0xff] }
 0x205   :  { %3989 = vmatpush.bf16.msrb.mxu0 %v6020_v21  ;;  %v6209_v21 = vld [vmem:[#allocation5 + $0xe38] sm:$0xf0]  ;;  %v5956_v60 = vor.u32 %v6954_v15, %v5953_v12  ;;  %v7098_v56 = vld [vmem:[#allocation8 + $0xa8] sm:$0xff] }
 0x206   :  { %4002 = vmatpush.bf16.msrb.mxu1 %v6148_v34  ;;  %v7050_v34 = vld [vmem:[#allocation5 + $0xf2c] sm:$0xf]  ;;  %v6212_v18 = vor.u32 %v7018_v17, %v6209_v21  ;;  %v3711_v42 = vadd.f32 %v7452_v55, %v3698_v24  ;;  %v7084_v46 = vld [vmem:[#allocation8 + $0x38] sm:$0xff]  ;;  %v7083_v55 = vld [vmem:[#allocation8 + $0x30] sm:$0xff] }
 0x207   :  { %4015 = vmatpush.bf16.msrb.mxu2 %v6276_v29  ;;  %v6337_v29 = vld [vmem:[#allocation5 + $0xf38] sm:$0xf0]  ;;  %v7086_v12 = vld [vmem:[#allocation8 + $0x48] sm:$0xff]  ;;  %v7077_v21 = vld [vmem:[#allocation8] sm:$0xff] }
 0x208   :  { %4028 = vmatpush.bf16.msrb.mxu3 %v6404_v30  ;;  %v5937_v30 = vld [vmem:[#allocation5 + $0xc18] sm:$0xf0]  ;;  %v6340_v37 = vor.u32 %v7050_v34, %v6337_v29  ;;  %v3724_v51 = vadd.f32 %v7454_v61, %v3711_v42  ;;  %v7094_v14 = vld [vmem:[#allocation8 + $0x88] sm:$0xff]  ;;  %v4039_v34 = vmax.f32 %v7406_v31, 0.0  ;;  %v7085_v29 = vld [vmem:[#allocation8 + $0x40] sm:$0xff] }
 0x209   :  { %3990 = vmatpush.bf16.msrb.mxu0 %v6004_v27  ;;  %v3764_v27 = vpop.f32.mrf.mxu2  ;;  %v5940_v43 = vor.u32 %v6950_v28, %v5937_v30  ;;  %v7092_v47 = vld [vmem:[#allocation8 + $0x78] sm:$0xff]  ;;  %v7093_v24 = vld [vmem:[#allocation8 + $0x80] sm:$0xff] }
 0x20a   :  { %4003 = vmatpush.bf16.msrb.mxu1 %v6132_v36  ;;  %v7046_v36 = vld [vmem:[#allocation5 + $0xf0c] sm:$0xf]  ;;  %v3777_v41 = vpop.f32.mrf.mxu3  ;;  %v7100_v50 = vld [vmem:[#allocation8 + $0xb8] sm:$0xff] }
 0x20b   :  { %4016 = vmatpush.bf16.msrb.mxu2 %v6260_v39  ;;  %v6321_v39 = vld [vmem:[#allocation5 + $0xf18] sm:$0xf0] }
 0x20c   :  { %4029 = vmatpush.bf16.msrb.mxu3 %v6388_v45  ;;  %v6196_v45 = vor.u32 %v7014_v23, %v6193_v40  ;;  %v6324_v62 = vor.u32 %v7046_v36, %v6321_v39  ;;  %v7088_v1 = vld [vmem:[#allocation8 + $0x58] sm:$0xff] }
 0x20d   :  { %3991 = vmatpush.bf16.msrb.mxu0 %v5988_v54  ;;  %v3737_v54 = vadd.f32 %v7460_v38, %v3724_v51  ;;  %v7090_v38 = vld [vmem:[#allocation8 + $0x68] sm:$0xff]  ;;  %v7096_v2 = vld [vmem:[#allocation8 + $0x98] sm:$0xff] }
 0x20e   :  { %4004 = vmatpush.bf16.msrb.mxu1 %v6116_v52  ;;  %v7091_v52 = vld [vmem:[#allocation8 + $0x70] sm:$0xff] }
 0x20f   :  { %4017 = vmatpush.bf16.msrb.mxu2 %v6244_v53  ;;  %v7099_v53 = vld [vmem:[#allocation8 + $0xb0] sm:$0xff]  ;;  %v3750_v61 = vadd.f32 %v7462_v35, %v3737_v54  ;;  %v7080_v35 = vld [vmem:[#allocation8 + $0x18] sm:$0xff] }
 0x210   :  { %4030 = vmatpush.bf16.msrb.mxu3 %v6372_v58 }
 0x211   :  { %3992 = vmatpush.bf16.msrb.mxu0 %v5972_v8  ;;  %v3763_v57 = vadd.f32 %v7464_v59, %v3750_v61  ;;  %v7079_v8 = vld [vmem:[#allocation8 + $0x10] sm:$0xff]  ;;  %v7104_v61 = vld [vmem:[#allocation8 + $0xd8] sm:$0xff] }
 0x212   :  { %4005 = vmatpush.bf16.msrb.mxu1 %v6100_v9  ;;  %v7087_v9 = vld [vmem:[#allocation8 + $0x50] sm:$0xff] }
 0x213   :  { %4018 = vmatpush.bf16.msrb.mxu2 %v6228_v11  ;;  %v7095_v11 = vld [vmem:[#allocation8 + $0x90] sm:$0xff] }
 0x214   :  { %4031 = vmatpush.bf16.msrb.mxu3 %v6356_v16 }
 0x215   :  { %3993 = vmatpush.bf16.msrb.mxu0 %v5956_v60  ;;  %v4040_v60 = vmax.f32 %v7433_v49, 0.0 }
 0x216   :  { %4006 = vmatpush.bf16.msrb.mxu1 %v6084_v33 }
 0x217   :  { %4019 = vmatpush.bf16.msrb.mxu2 %v6212_v18  ;;  %v4043_v18 = vpack.c.bf16 %v4039_v34, %v4039_v34  ;;  %v4044_v28 = vpack.c.bf16 %v4040_v60, %v4040_v60  ;;  %v7119_v60 = vld [vmem:[#allocation10] ss:$0 sm:$0xff] }
 0x218   :  { %4032 = vmatpush.bf16.msrb.mxu3 %v6340_v37 }
 0x219   :  { %3994 = vmatpush.bf16.msrb.mxu0 %v5940_v43  ;;  %v3788_v58 = vpop.f32.mrf.mxu0 }
 0x21a   :  { %4007 = vmatpush.bf16.msrb.mxu1 %v6068_v44 }
 0x21b   :  { %4020 = vmatpush.bf16.msrb.mxu2 %v6196_v45 }
 0x21c   :  { %4033 = vmatpush.bf16.msrb.mxu3 %v6324_v62  ;;  %3995 = vmatmul.bf16.vlgmr.msrb.gmra.mxu0 %v7369_v13  ;;  %v3801_v13 = vpop.f32.mrf.mxu1 }
 0x21d   :  { %4307 = vmatpush.bf16.msra.mxu0 %v7084_v46  ;;  %4008 = vmatmul.bf16.vlgmr.msrb.gmra.mxu1 %v7373_v20  ;;  %v7089_v20 = vld [vmem:[#allocation8 + $0x60] sm:$0xff] }
 0x21e   :  { %4320 = vmatpush.bf16.msra.mxu1 %v7092_v47  ;;  %4021 = vmatmul.bf16.vlgmr.msrb.gmra.mxu2 %v7371_v19  ;;  %v7097_v19 = vld [vmem:[#allocation8 + $0xa0] sm:$0xff]  ;;  %v7108_v47 = vld [vmem:[#allocation8 + $0xf8] sm:$0xff] }
 0x21f   :  { %4333 = vmatpush.bf16.msra.mxu2 %v7100_v50  ;;  %4034 = vmatmul.bf16.vlgmr.msrb.gmra.mxu3 %v7375_v26  ;;  %v3776_v26 = vadd.f32 %v7466_v6, %v3763_v57  ;;  %v7078_v6 = vld [vmem:[#allocation8 + $0x8] sm:$0xff] }
 0x220   :  { %4346 = vmatpush.bf16.msra.mxu3 %v7108_v47  ;;  %v7102_v57 = vld [vmem:[#allocation8 + $0xc8] sm:$0xff] }
 0x221   :  { %4308 = vmatpush.bf16.msra.mxu0 %v7083_v55  ;;  %v3789_v0 = vadd.f32 %v3788_v58, %v3776_v26  ;;  %v3814_v3 = vpop.f32.mrf.mxu2  ;;  %v3790_v59 = vpop.f32.mrf.mxu0  ;;  %v7106_v55 = vld [vmem:[#allocation8 + $0xe8] sm:$0xff]  ;;  %v7101_v26 = vld [vmem:[#allocation8 + $0xc0] sm:$0xff] }
 0x222   :  { %4321 = vmatpush.bf16.msra.mxu1 %v7091_v52  ;;  %v3827_v4 = vpop.f32.mrf.mxu3 }
 0x223   :  { %4334 = vmatpush.bf16.msra.mxu2 %v7099_v53  ;;  %v3802_v5 = vadd.f32 %v3801_v13, %v3789_v0  ;;  %v7105_v53 = vld [vmem:[#allocation8 + $0xe0] sm:$0xff] }
 0x224   :  { %v3803_v10 = vpop.f32.mrf.mxu1  ;;  %4347 = vmatpush.bf16.msra.mxu3 %v7107_v7 }
 0x225   :  { %4309 = vmatpush.bf16.msra.mxu0 %v7082_v48  ;;  %v3815_v15 = vadd.f32 %v3814_v3, %v3802_v5 }
 0x226   :  { %4322 = vmatpush.bf16.msra.mxu1 %v7090_v38 }
 0x227   :  { %4335 = vmatpush.bf16.msra.mxu2 %v7098_v56  ;;  %v3828_v16 = vadd.f32 %v3827_v4, %v3815_v15  ;;  %v7103_v56 = vld [vmem:[#allocation8 + $0xd0] sm:$0xff] }
 0x228   :  { %4348 = vmatpush.bf16.msra.mxu3 %v7106_v55 }
 0x229   :  { %4310 = vmatpush.bf16.msra.mxu0 %v7081_v63  ;;  %v3816_v25 = vpop.f32.mrf.mxu2  ;;  %v4041_v33 = vmax.f32 %v3828_v16, 0.0 }
 0x22a   :  { %4323 = vmatpush.bf16.msra.mxu1 %v7089_v20  ;;  %v3829_v17 = vpop.f32.mrf.mxu3 }
 0x22b   :  { %4336 = vmatpush.bf16.msra.mxu2 %v7097_v19  ;;  %v4045_v30 = vpack.c.bf16 %v4041_v33, %v4041_v33 }
 0x22c   :  { %4349 = vmatpush.bf16.msra.mxu3 %v7105_v53 }
 0x22d   :  { %4311 = vmatpush.bf16.msra.mxu0 %v7080_v35 }
 0x22e   :  { %4324 = vmatpush.bf16.msra.mxu1 %v7088_v1 }
 0x22f   :  { %4337 = vmatpush.bf16.msra.mxu2 %v7096_v2 }
 0x230   :  { %4350 = vmatpush.bf16.msra.mxu3 %v7104_v61 }
 0x231   :  { %4312 = vmatpush.bf16.msra.mxu0 %v7079_v8 }
 0x232   :  { %4325 = vmatpush.bf16.msra.mxu1 %v7087_v9 }
 0x233   :  { %4338 = vmatpush.bf16.msra.mxu2 %v7095_v11 }
 0x234   :  { %4351 = vmatpush.bf16.msra.mxu3 %v7103_v56 }
 0x235   :  { %4313 = vmatpush.bf16.msra.mxu0 %v7078_v6 }
 0x236   :  { %4326 = vmatpush.bf16.msra.mxu1 %v7086_v12 }
 0x237   :  { %4339 = vmatpush.bf16.msra.mxu2 %v7094_v14 }
 0x238   :  { %4352 = vmatpush.bf16.msra.mxu3 %v7102_v57 }
 0x239   :  { %4314 = vmatpush.bf16.msra.mxu0 %v7077_v21  ;;  %v3840_v37 = vpop.f32.mrf.mxu0 }
 0x23a   :  { %4327 = vmatpush.bf16.msra.mxu1 %v7085_v29  ;;  %v3841_v31 = vadd.f32 %v3840_v37, %v642_v32  ;;  %v3853_v22 = vpop.f32.mrf.mxu1 }
 0x23b   :  { %4340 = vmatpush.bf16.msra.mxu2 %v7093_v24 }
 0x23c   :  { %4315 = vmatmul.bf16.vlgmr.msra.gmra.mxu0 %v4043_v18  ;;  %v3854_v23 = vadd.f32 %v3853_v22, %v3841_v31  ;;  %4353 = vmatpush.bf16.msra.mxu3 %v7101_v26 }
 0x23d   :  { %4328 = vmatmul.bf16.vlgmr.msra.gmra.mxu1 %v4044_v28 }
 0x23e   :  { %4341 = vmatmul.bf16.vlgmr.msra.gmra.mxu2 %v4045_v30 }
 0x241   :  { %v3866_v40 = vpop.f32.mrf.mxu2  ;;  %v3842_v39 = vpop.f32.mrf.mxu0 }
 0x242   :  { %v3867_v27 = vadd.f32 %v3866_v40, %v3854_v23  ;;  %v3879_v36 = vpop.f32.mrf.mxu3  ;;  %v3855_v41 = vpop.f32.mrf.mxu1 }
 0x244   :  { %v3880_v49 = vadd.f32 %v3879_v36, %v3867_v27 }
 0x249   :  { %v3868_v42 = vpop.f32.mrf.mxu2 }
 0x24a   :  { %v3881_v43 = vpop.f32.mrf.mxu3 }
 0x259   :  { %v3892_v44 = vpop.f32.mrf.mxu0 }
 0x25a   :  { %v3905_v45 = vpop.f32.mrf.mxu1  ;;  %v3893_v58 = vadd.f32 %v3892_v44, %v3880_v49 }
 0x25c   :  { %v3906_v0 = vadd.f32 %v3905_v45, %v3893_v58 }
 0x261   :  { %v3918_v62 = vpop.f32.mrf.mxu2  ;;  %v3894_v50 = vpop.f32.mrf.mxu0 }
 0x262   :  { %v3931_v46 = vpop.f32.mrf.mxu3  ;;  %v3907_v51 = vpop.f32.mrf.mxu1  ;;  %v3919_v35 = vadd.f32 %v3918_v62, %v3906_v0 }
 0x264   :  { %v3932_v3 = vadd.f32 %v3931_v46, %v3919_v35 }
 0x269   :  { %v3920_v54 = vpop.f32.mrf.mxu2 }
 0x26a   :  { %v3933_v52 = vpop.f32.mrf.mxu3 }
 0x279   :  { %v3944_v48 = vpop.f32.mrf.mxu0 }
 0x27a   :  { %v3957_v38 = vpop.f32.mrf.mxu1  ;;  %v3945_v4 = vadd.f32 %v3944_v48, %v3932_v3 }
 0x27c   :  { %v3958_v59 = vadd.f32 %v3957_v38, %v3945_v4 }
 0x281   :  { %v3970_v63 = vpop.f32.mrf.mxu2  ;;  %v3946_v20 = vpop.f32.mrf.mxu0 }
 0x282   :  { %v3983_v13 = vpop.f32.mrf.mxu3  ;;  %v3959_v19 = vpop.f32.mrf.mxu1  ;;  %v3971_v5 = vadd.f32 %v3970_v63, %v3958_v59 }
 0x284   :  { %v3984_v8 = vadd.f32 %v3983_v13, %v3971_v5 }
 0x289   :  { %v3972_v1 = vpop.f32.mrf.mxu2 }
 0x28a   :  { %v3985_v2 = vpop.f32.mrf.mxu3 }
 0x299   :  { %v3996_v10 = vpop.f32.mrf.mxu0 }
 0x29a   :  { %v4009_v9 = vpop.f32.mrf.mxu1  ;;  %v3997_v11 = vadd.f32 %v3996_v10, %v3984_v8 }
 0x29c   :  { %v4010_v15 = vadd.f32 %v4009_v9, %v3997_v11 }
 0x2a1   :  { %v4022_v6 = vpop.f32.mrf.mxu2  ;;  %v3998_v16 = vpop.f32.mrf.mxu0 }
 0x2a2   :  { %v4035_v12 = vpop.f32.mrf.mxu3  ;;  %v4023_v14 = vadd.f32 %v4022_v6, %v4010_v15  ;;  %v4011_v25 = vpop.f32.mrf.mxu1 }
 0x2a4   :  { %v4036_v17 = vadd.f32 %v4035_v12, %v4023_v14 }
 0x2a6   :  { %v4042_v21 = vmax.f32 %v4036_v17, 0.0 }
 0x2a8   :  { %v4046_v34 = vpack.c.bf16 %v4042_v21, %v4042_v21 }
 0x2a9   :  { %v4024_v29 = vpop.f32.mrf.mxu2 }
 0x2aa   :  { %v4037_v24 = vpop.f32.mrf.mxu3  ;;  %4354 = vmatmul.bf16.vlgmr.msra.gmra.mxu3 %v4046_v34 }
 0x2b9   :  { %v4316_v33 = vpop.f32.mrf.mxu0 }
 0x2ba   :  { %v4317_v18 = vadd.f32 %v7119_v60, %v4316_v33  ;;  %v4329_v28 = vpop.f32.mrf.mxu1 }
 0x2bc   :  { %v4330_v30 = vadd.f32 %v4329_v28, %v4317_v18 }
 0x2c1   :  { %v4342_v32 = vpop.f32.mrf.mxu2  ;;  %v4318_v31 = vpop.f32.mrf.mxu0 }
 0x2c2   :  { %v4343_v37 = vadd.f32 %v4342_v32, %v4330_v30  ;;  %v4331_v22 = vpop.f32.mrf.mxu1 }
 0x2c9   :  { %v4344_v23 = vpop.f32.mrf.mxu2 }
 0x32d   :  { %v4355_v40 = vpop.f32.mrf.mxu3 }
 0x32e   :  { %v4356_v27 = vadd.f32 %v4355_v40, %v4343_v37 }
 0x330   :  { %4359 = vmax.xlane.f32.xlu0 %v4356_v27 }
 0x335   :  { %v4357_v36 = vpop.f32.mrf.mxu3 }
 0x3a3   :  { %v4360_v49 = vpop.xlane.xlu0 %4359 }
 0x3a4   :  { %v4361_v39 = vsub.f32 %v4356_v27, %v4360_v49 }
 0x3a6   :  { %v4362_v41 = vmul.f32 1.442695, %v4361_v39 }
 0x3a8   :  { %7120 = vpow2.f32 %v4362_v41 }
 0x3ae   :  { %v7121_v42 = vpop.eup %7120 }
 0x3af   :  { %4364 = vadd.xlane.f32.xlu0 %v7121_v42 }
 0x422   :  { %v4365_v43 = vpop.xlane.xlu0 %4364 }
 0x423   :  { %7122 = vlog2.f32 %v4365_v43 }
 0x429   :  { %v7123_v44 = vpop.eup %7122 }
 0x42a   :  { %v4367_v45 = vmul.f32 0.6931472, %v7123_v44 }
 0x42c   :  { %v4368_v62 = vsub.f32 %v4361_v39, %v4367_v45 }
 0x42e   :  { %4369 = vst [vmem:[#allocation11] sm:$0xff] %v4368_v62 }
 0x42f   :  { %4380 = dma.vmem_to_hbm [thread:$0]  %s4376_s4, 128, %s4378_s21, [#allocation4]  }
 0x430   :  { %7276 = dma.done.wait [#allocation4], 128  }
 0x431   :  { %7277 = vsyncadd [#allocation4], 4294967168 }
 0x432   :  { %4385 = vsyncpa [#allocation3], 1 }
 0x433   :  { %4386 = vsyncpa [#allocation6], 1 }
 0x434   :  { %4387 = vsyncpa [#allocation9], 1 }
 0x435   :  { %4388 = vsyncpa [#allocation4], 1 }

</bundles_post_ra>
